<compile_context>
chip_gen: v5e
topology: v5e:2x2
jax: 0.10.0
libtpu: 0.0.40
codegen_flags: <defaults>
</compile_context>

<pallas_src>
import functools
import math

import jax
import jax.numpy as jnp
from jax.experimental import pallas as pl
from jax.experimental.pallas import tpu as pltpu


def _transformer_block_kernel(x_ref, wqkv_ref, wo_ref,
                              ln1_w_ref, ln1_b_ref, ln2_w_ref, ln2_b_ref,
                              fc1_w_ref, fc1_b_ref, fc2_w_ref, fc2_b_ref,
                              o_ref, k_scratch, v_scratch,
                              *, n_heads, q_tile):
    qi = pl.program_id(1)
    TQ, K = x_ref.shape                 # (q_tile, K); batch dim squeezed by BlockSpec
    H = n_heads
    hs = K // H
    cdt = wqkv_ref.dtype                # bf16 compute dtype for MXU inputs

    x_q = x_ref[...]                    # (TQ, K) f32 residual input

    # ---- fused QKV projection for THIS query tile only (incremental KV) ----
    # The 1/sqrt(K) softmax scale is folded into the Q columns of wqkv (wrapper side).
    qkv = jnp.dot(x_q.astype(cdt), wqkv_ref[...],
                  preferred_element_type=jnp.float32)                   # (TQ, 3K) f32
    q_new = qkv[:, 0:K].astype(cdt)
    k_new = qkv[:, K:2 * K].astype(cdt)
    v_new = qkv[:, 2 * K:3 * K].astype(cdt)

    # Head-major layout; tile-sized shuffles only (done once per kv tile over the whole run).
    qh = jnp.transpose(q_new.reshape(TQ, H, hs), (1, 0, 2))             # (H, TQ, hs)
    kh_new = jnp.transpose(k_new.reshape(TQ, H, hs), (1, 0, 2))
    vh_new = jnp.transpose(v_new.reshape(TQ, H, hs), (1, 0, 2))

    # Append this tile's K/V to the persistent per-batch-row cache.
    # Correctness relies on the qi grid axis being sequential ("arbitrary").
    k_scratch[qi] = kh_new
    v_scratch[qi] = vh_new

    # ---- flash-style causal attention over kv tiles 0..qi (online softmax) ----
    q_start = qi * q_tile
    q_pos = q_start + jax.lax.broadcasted_iota(jnp.int32, (H, TQ, q_tile), 1)
    k_iota = jax.lax.broadcasted_iota(jnp.int32, (H, TQ, q_tile), 2)

    def kv_step(ki, carry):
        m, l, acc = carry
        kh = k_scratch[ki]                                              # (H, TQk, hs) bf16
        vh = v_scratch[ki]
        s = jnp.einsum('hqd,hkd->hqk', qh, kh,
                       preferred_element_type=jnp.float32)              # (H, TQ, TQk)
        k_pos = ki * q_tile + k_iota
        s = jnp.where(k_pos <= q_pos, s, -jnp.inf)
        m_new = jnp.maximum(m, jnp.max(s, axis=-1, keepdims=True))
        alpha = jnp.exp(m - m_new)
        p = jnp.exp(s - m_new)
        l_new = alpha * l + jnp.sum(p, axis=-1, keepdims=True)
        acc_new = alpha * acc + jnp.einsum('hqk,hkd->hqd', p.astype(cdt), vh,
                                           preferred_element_type=jnp.float32)
        return m_new, l_new, acc_new

    m0 = jnp.full((H, TQ, 1), -jnp.inf, jnp.float32)
    l0 = jnp.zeros((H, TQ, 1), jnp.float32)
    acc0 = jnp.zeros((H, TQ, hs), jnp.float32)
    _, l_fin, acc = jax.lax.fori_loop(0, qi + 1, kv_step, (m0, l0, acc0))

    o = acc * pl.reciprocal(l_fin, approx=False)                        # (H, TQ, hs) f32, exact

    # ---- output projection without an output-side transpose ----
    # wo_ref is pre-reshaped to (H, hs, K): contract each head, then sum over heads.
    y_h = jnp.einsum('hqd,hdk->hqk', o.astype(cdt), wo_ref[...],
                     preferred_element_type=jnp.float32)                # (H, TQ, K)
    y = jnp.sum(y_h, axis=0)                                            # (TQ, K)

    # ---- residual + LayerNorm1 (eps = 1e-5, biased variance, f32 math) ----
    h1 = y + x_q
    m1 = jnp.mean(h1, axis=-1, keepdims=True)
    v1 = jnp.mean((h1 - m1) ** 2, axis=-1, keepdims=True)
    h1n = (h1 - m1) * jax.lax.rsqrt(v1 + 1e-5) * ln1_w_ref[...] + ln1_b_ref[...]

    # ---- feed-forward: Linear(K, 4K) -> exact GeLU -> Linear(4K, K) ----
    f = jnp.dot(h1n.astype(cdt), fc1_w_ref[...],
                preferred_element_type=jnp.float32) + fc1_b_ref[...]
    # Exact-erf GeLU to match F.gelu's default.
    # TODO(synk): tanh-approximate GeLU would move this VALU polynomial onto the EUP; gate on tolerance.
    f = 0.5 * f * (1.0 + jax.lax.erf(f * (1.0 / math.sqrt(2.0))))
    f = jnp.dot(f.astype(cdt), fc2_w_ref[...],
                preferred_element_type=jnp.float32) + fc2_b_ref[...]

    # ---- residual + LayerNorm2 ----
    h2 = f + h1n
    m2 = jnp.mean(h2, axis=-1, keepdims=True)
    v2 = jnp.mean((h2 - m2) ** 2, axis=-1, keepdims=True)
    out = (h2 - m2) * jax.lax.rsqrt(v2 + 1e-5) * ln2_w_ref[...] + ln2_b_ref[...]

    o_ref[...] = out.astype(o_ref.dtype)


def _prepare_params(params, k, n_heads, compute_dtype):
    """Pre-transpose to (in, out), fuse QKV, fold 1/sqrt(K), reshape Wo per-head, cast to bf16."""
    (wq, wk, wv, wo, ln1_w, ln1_b, ln2_w, ln2_b, fc1_w, fc1_b, fc2_w, fc2_b) = params
    hs = k // n_heads
    scale = 1.0 / (k ** 0.5)            # PyTorch divides by sqrt(k) (full embedding dim)
    wqkv = jnp.concatenate([wq.T * scale, wk.T, wv.T], axis=1).astype(compute_dtype)  # (K, 3K)
    wo_h = wo.T.reshape(n_heads, hs, k).astype(compute_dtype)                          # (H, hs, K)
    fc1_w_t = fc1_w.T.astype(compute_dtype)                                            # (K, 4K)
    fc2_w_t = fc2_w.T.astype(compute_dtype)                                            # (4K, K)
    return (wqkv, wo_h, ln1_w, ln1_b, ln2_w, ln2_b, fc1_w_t, fc1_b, fc2_w_t, fc2_b)


def _pick_q_tile(T):
    """Largest tile that satisfies the (8,128) block rule: multiple of 8 dividing T, or T itself."""
    if T <= 128:
        return T
    for d in range(128, 0, -8):
        if T % d == 0:
            return d
    # TODO(synk): pad T to a multiple of 8/128 in the wrapper instead of falling back to full T.
    return T


def _vmem_estimate_bytes(T, K, H, q_tile, cdt_bytes):
    hs = K // H
    weights = 12 * K * K * cdt_bytes             # wqkv + wo + fc1 + fc2 (single-buffered)
    kv_cache = 2 * T * K * cdt_bytes             # persistent head-major K/V scratch
    io_blocks = 2 * 2 * q_tile * K * 4           # x + out blocks, double-buffered, f32
    mlp = 3 * q_tile * 4 * K * 4                 # (TQ, 4K) f32 intermediates + headroom
    attn = (H * q_tile * K * 4                   # per-head output-projection intermediate
            + 4 * H * q_tile * q_tile * 4        # score / p tiles
            + 3 * H * q_tile * hs * 4)           # online-softmax carries
    small = 8 * (4 * K) * 4                      # LN params, biases, misc
    return int(weights + kv_cache + io_blocks + mlp + attn + small)


def transformer_block(x, params, n_heads, *, q_tile=None, compute_dtype=jnp.bfloat16):
    B, T, K = x.shape
    assert K % n_heads == 0
    hs = K // n_heads

    if q_tile is None:
        q_tile = _pick_q_tile(T)
    assert T % q_tile == 0
    n_q_tiles = T // q_tile

    prepped = _prepare_params(params, K, n_heads, compute_dtype)
    args = (x,) + prepped

    kernel = functools.partial(_transformer_block_kernel, n_heads=n_heads, q_tile=q_tile)

    # --- capacity-aware VMEM limit (v5e default 16 MiB, v6e/v7x 32 MiB; v7x cap 64 MiB) ---
    cdt_bytes = jnp.dtype(compute_dtype).itemsize
    est = _vmem_estimate_bytes(T, K, n_heads, q_tile, cdt_bytes)
    try:
        vmem_cap = int(pltpu.get_tpu_info().vmem_capacity_bytes)
    except Exception:
        vmem_cap = 64 << 20                       # conservative (v7x per-core)
    vmem_limit = int(min(max(int(est * 1.5), 32 << 20), int(0.9 * vmem_cap)))
    # TODO(synk): if 12*K^2 bf16 weights + KV cache exceed ~0.9*VMEM (mainly v7x at large K),
    # stream fc1/fc2 over the 4K hidden dim (memory_space=pl.ANY + pltpu.emit_pipeline).

    def build(single_buffer_weights):
        def const_spec(shape):
            zeros = (0,) * len(shape)
            if single_buffer_weights:
                return pl.BlockSpec(shape, lambda b, qi, _z=zeros: _z,
                                    pipeline_mode=pl.Buffered(1))
            return pl.BlockSpec(shape, lambda b, qi, _z=zeros: _z)

        in_specs = [pl.BlockSpec((None, q_tile, K), lambda b, qi: (b, qi, 0))]  # x: streamed tile
        in_specs += [const_spec(a.shape) for a in prepped]                      # resident weights
        out_spec = pl.BlockSpec((None, q_tile, K), lambda b, qi: (b, qi, 0))

        return pl.pallas_call(
            kernel,
            out_shape=jax.ShapeDtypeStruct((B, T, K), x.dtype),
            grid=(B, n_q_tiles),
            in_specs=in_specs,
            out_specs=out_spec,
            scratch_shapes=[
                pltpu.VMEM((n_q_tiles, n_heads, q_tile, hs), compute_dtype),  # K cache (head-major)
                pltpu.VMEM((n_q_tiles, n_heads, q_tile, hs), compute_dtype),  # V cache (head-major)
            ],
            compiler_params=pltpu.CompilerParams(
                # qi axis MUST stay "arbitrary": the KV cache written at tile qi is read by
                # every later query tile of the same batch row.
                dimension_semantics=("parallel", "arbitrary"),
                vmem_limit_bytes=vmem_limit),
        )

    # TODO(synk): with B < 2, v7x's second TensorCore idles (batch is the only "parallel" axis);
    # splitting query tiles across cores would require sharing the KV cache (VMEM_SHARED/CMEM).
    try:
        return build(True)(*args)       # single-buffered resident weights (pl.Buffered(1))
    except Exception:
        # Fallback if pipeline_mode=pl.Buffered(1) is not supported in this environment.
        return build(False)(*args)


def reference_transformer_block(x, params, n_heads):
    """Pure-JAX (f32) reference mirroring the PyTorch forward exactly."""
    (wq, wk, wv, wo, ln1_w, ln1_b, ln2_w, ln2_b, fc1_w, fc1_b, fc2_w, fc2_b) = params
    B, T, K = x.shape
    hs = K // n_heads

    def mha(x):
        q = (x @ wq.T).reshape(B, T, n_heads, hs).transpose(0, 2, 1, 3)
        k = (x @ wk.T).reshape(B, T, n_heads, hs).transpose(0, 2, 1, 3)
        v = (x @ wv.T).reshape(B, T, n_heads, hs).transpose(0, 2, 1, 3)
        s = q @ k.transpose(0, 1, 3, 2) / (K ** 0.5)
        mask = jnp.tril(jnp.ones((T, T)))[None, None]
        s = jnp.where(mask == 0, -jnp.inf, s)
        p = jax.nn.softmax(s, axis=-1)
        o = (p @ v).transpose(0, 2, 1, 3).reshape(B, T, K)
        return o @ wo.T

    def ln(x, w, b):
        m = jnp.mean(x, axis=-1, keepdims=True)
        var = jnp.mean((x - m) ** 2, axis=-1, keepdims=True)
        return (x - m) * jax.lax.rsqrt(var + 1e-5) * w.reshape(-1) + b.reshape(-1)

    h = ln(mha(x) + x, ln1_w, ln1_b)
    f = h @ fc1_w.T + fc1_b.reshape(-1)
    f = jax.nn.gelu(f, approximate=False)
    f = f @ fc2_w.T + fc2_b.reshape(-1)
    return ln(f + h, ln2_w, ln2_b)


def init_params(key, k):
    ks = jax.random.split(key, 8)
    scale = 0.02
    wq = jax.random.normal(ks[0], (k, k), jnp.float32) * scale
    wk = jax.random.normal(ks[1], (k, k), jnp.float32) * scale
    wv = jax.random.normal(ks[2], (k, k), jnp.float32) * scale
    wo = jax.random.normal(ks[3], (k, k), jnp.float32) * scale
    ln1_w = jnp.ones((1, k), jnp.float32)
    ln1_b = jnp.zeros((1, k), jnp.float32)
    ln2_w = jnp.ones((1, k), jnp.float32)
    ln2_b = jnp.zeros((1, k), jnp.float32)
    fc1_w = jax.random.normal(ks[4], (4 * k, k), jnp.float32) * scale
    fc1_b = jax.random.normal(ks[5], (1, 4 * k), jnp.float32) * scale
    fc2_w = jax.random.normal(ks[6], (k, 4 * k), jnp.float32) * scale
    fc2_b = jax.random.normal(ks[7], (1, k), jnp.float32) * scale
    return (wq, wk, wv, wo, ln1_w, ln1_b, ln2_w, ln2_b, fc1_w, fc1_b, fc2_w, fc2_b)


if __name__ == "__main__":
    B, T, K, N_HEADS = 2, 16, 32, 4   # two query tiles of 8 -> exercises the causal kv-tiled path
    key = jax.random.PRNGKey(0)
    k_x, k_p = jax.random.split(key)
    x = jax.random.normal(k_x, (B, T, K), jnp.float32)
    params = init_params(k_p, K)

    out = transformer_block(x, params, N_HEADS, q_tile=8)
    out = jax.block_until_ready(out)

    ref = reference_transformer_block(x, params, N_HEADS)
    assert out.shape == (B, T, K)
    # bf16 MXU inputs -> looser tolerance vs the f32 reference (intentional precision tradeoff).
    assert jnp.allclose(out, ref, atol=2e-2, rtol=2e-2), "mismatch vs pure-JAX reference"

    print("KERNEL_OK")
</pallas_src>

<mosaic_0001>
module attributes {stable_mosaic.version = 11 : i64} {
  func.func @_transformer_block_kernel(%arg0: i32, %arg1: i32, %arg2: memref<1x8x32xf32, #tpu.memory_space<vmem>>, %arg3: memref<32x96xbf16, #tpu.memory_space<vmem>>, %arg4: memref<4x8x32xbf16, #tpu.memory_space<vmem>>, %arg5: memref<1x32xf32, #tpu.memory_space<vmem>>, %arg6: memref<1x32xf32, #tpu.memory_space<vmem>>, %arg7: memref<1x32xf32, #tpu.memory_space<vmem>>, %arg8: memref<1x32xf32, #tpu.memory_space<vmem>>, %arg9: memref<32x128xbf16, #tpu.memory_space<vmem>>, %arg10: memref<1x128xf32, #tpu.memory_space<vmem>>, %arg11: memref<128x32xbf16, #tpu.memory_space<vmem>>, %arg12: memref<1x32xf32, #tpu.memory_space<vmem>>, %arg13: memref<1x8x32xf32, #tpu.memory_space<vmem>>, %arg14: memref<2x4x8x8xbf16, #tpu.memory_space<vmem>>, %arg15: memref<2x4x8x8xbf16, #tpu.memory_space<vmem>>) attributes {dimension_semantics = [#tpu.dimension_semantics<parallel>, #tpu.dimension_semantics<arbitrary>], iteration_bounds = array<i64: 2, 2>, scalar_prefetch = 0 : i64, scratch_operands = 2 : i64, tpu.core_type = #tpu.core_type<tc>, window_params = [{transform_indices = @transform_0, window_bounds = array<i64: 1, 8, 32>}, {pipeline_mode = #tpu.pipeline_mode<synchronous>, transform_indices = @transform_1, window_bounds = array<i64: 32, 96>}, {pipeline_mode = #tpu.pipeline_mode<synchronous>, transform_indices = @transform_2, window_bounds = array<i64: 4, 8, 32>}, {pipeline_mode = #tpu.pipeline_mode<synchronous>, transform_indices = @transform_3, window_bounds = array<i64: 1, 32>}, {pipeline_mode = #tpu.pipeline_mode<synchronous>, transform_indices = @transform_4, window_bounds = array<i64: 1, 32>}, {pipeline_mode = #tpu.pipeline_mode<synchronous>, transform_indices = @transform_5, window_bounds = array<i64: 1, 32>}, {pipeline_mode = #tpu.pipeline_mode<synchronous>, transform_indices = @transform_6, window_bounds = array<i64: 1, 32>}, {pipeline_mode = #tpu.pipeline_mode<synchronous>, transform_indices = @transform_7, window_bounds = array<i64: 32, 128>}, {pipeline_mode = #tpu.pipeline_mode<synchronous>, transform_indices = @transform_8, window_bounds = array<i64: 1, 128>}, {pipeline_mode = #tpu.pipeline_mode<synchronous>, transform_indices = @transform_9, window_bounds = array<i64: 128, 32>}, {pipeline_mode = #tpu.pipeline_mode<synchronous>, transform_indices = @transform_10, window_bounds = array<i64: 1, 32>}, {transform_indices = @transform_11, window_bounds = array<i64: 1, 8, 32>}]} {
    %c0 = arith.constant 0 : index
    %c0_0 = arith.constant 0 : index
    %c0_1 = arith.constant 0 : index
    %0 = vector.load %arg2[%c0, %c0_0, %c0_1] : memref<1x8x32xf32, #tpu.memory_space<vmem>>, vector<1x8x32xf32>
    %1 = vector.shape_cast %0 : vector<1x8x32xf32> to vector<8x32xf32>
    %2 = arith.truncf %1 : vector<8x32xf32> to vector<8x32xbf16>
    %c0_2 = arith.constant 0 : index
    %c0_3 = arith.constant 0 : index
    %3 = vector.load %arg3[%c0_2, %c0_3] : memref<32x96xbf16, #tpu.memory_space<vmem>>, vector<32x96xbf16>
    %cst = arith.constant dense<0.000000e+00> : vector<8x96xf32>
    %4 = tpu.matmul %2, %3, %cst {dimension_numbers = #tpu.dot_dimension_numbers<[1], [0], [0], [1], [0, 0, 1, 1], [], []>} : vector<8x32xbf16>, vector<32x96xbf16>, vector<8x96xf32> -> vector<8x96xf32>
    %5 = vector.extract_strided_slice %4 {offsets = [0, 0], sizes = [8, 32], strides = [1, 1]} : vector<8x96xf32> to vector<8x32xf32>
    %6 = arith.truncf %5 : vector<8x32xf32> to vector<8x32xbf16>
    %7 = vector.extract_strided_slice %4 {offsets = [0, 32], sizes = [8, 32], strides = [1, 1]} : vector<8x96xf32> to vector<8x32xf32>
    %8 = arith.truncf %7 : vector<8x32xf32> to vector<8x32xbf16>
    %9 = vector.extract_strided_slice %4 {offsets = [0, 64], sizes = [8, 32], strides = [1, 1]} : vector<8x96xf32> to vector<8x32xf32>
    %10 = arith.truncf %9 : vector<8x32xf32> to vector<8x32xbf16>
    %11 = vector.shape_cast %6 : vector<8x32xbf16> to vector<8x4x8xbf16>
    %12 = tpu.transpose %11, [1, 0, 2] : vector<8x4x8xbf16> -> vector<4x8x8xbf16>
    %13 = vector.shape_cast %8 : vector<8x32xbf16> to vector<8x4x8xbf16>
    %14 = tpu.transpose %13, [1, 0, 2] : vector<8x4x8xbf16> -> vector<4x8x8xbf16>
    %15 = vector.shape_cast %10 : vector<8x32xbf16> to vector<8x4x8xbf16>
    %16 = tpu.transpose %15, [1, 0, 2] : vector<8x4x8xbf16> -> vector<4x8x8xbf16>
    %17 = arith.index_cast %arg1 : i32 to index
    %c0_4 = arith.constant 0 : index
    %c0_5 = arith.constant 0 : index
    %c0_6 = arith.constant 0 : index
    %18 = vector.load %arg14[%17, %c0_4, %c0_5, %c0_6] : memref<2x4x8x8xbf16, #tpu.memory_space<vmem>>, vector<1x4x8x8xbf16>
    %19 = vector.shape_cast %18 : vector<1x4x8x8xbf16> to vector<4x8x8xbf16>
    %20 = vector.shape_cast %14 : vector<4x8x8xbf16> to vector<1x4x8x8xbf16>
    tpu.vector_store %arg14[%17, %c0_4, %c0_5, %c0_6], %20 {strides = array<i32>} : memref<2x4x8x8xbf16, #tpu.memory_space<vmem>>, vector<1x4x8x8xbf16>,
    %21 = arith.index_cast %arg1 : i32 to index
    %c0_7 = arith.constant 0 : index
    %c0_8 = arith.constant 0 : index
    %c0_9 = arith.constant 0 : index
    %22 = vector.load %arg15[%21, %c0_7, %c0_8, %c0_9] : memref<2x4x8x8xbf16, #tpu.memory_space<vmem>>, vector<1x4x8x8xbf16>
    %23 = vector.shape_cast %22 : vector<1x4x8x8xbf16> to vector<4x8x8xbf16>
    %24 = vector.shape_cast %16 : vector<4x8x8xbf16> to vector<1x4x8x8xbf16>
    tpu.vector_store %arg15[%21, %c0_7, %c0_8, %c0_9], %24 {strides = array<i32>} : memref<2x4x8x8xbf16, #tpu.memory_space<vmem>>, vector<1x4x8x8xbf16>,
    %c8_i32 = arith.constant 8 : i32
    %25 = arith.muli %arg1, %c8_i32 : i32
    %26 = tpu.iota {dimensions = array<i32: 1>} : vector<4x8x8xi32>
    %27 = vector.broadcast %25 : i32 to vector<4x8x8xi32>
    %28 = arith.addi %27, %26 : vector<4x8x8xi32>
    %29 = tpu.iota {dimensions = array<i32: 2>} : vector<4x8x8xi32>
    %cst_10 = arith.constant 0xFF800000 : f32
    %30 = vector.broadcast %cst_10 : f32 to vector<4x8x1xf32>
    %cst_11 = arith.constant 0.000000e+00 : f32
    %31 = vector.broadcast %cst_11 : f32 to vector<4x8x1xf32>
    %cst_12 = arith.constant 0.000000e+00 : f32
    %32 = vector.broadcast %cst_12 : f32 to vector<4x8x8xf32>
    %c1_i32 = arith.constant 1 : i32
    %33 = arith.addi %arg1, %c1_i32 : i32
    %c0_i32 = arith.constant 0 : i32
    %34 = arith.subi %33, %c0_i32 : i32
    %35 = arith.addi %c0_i32, %34 : i32
    %c1_i32_13 = arith.constant 1 : i32
    %36:3 = scf.for %arg16 = %c0_i32 to %35 step %c1_i32_13 iter_args(%arg17 = %30, %arg18 = %31, %arg19 = %32) -> (vector<4x8x1xf32>, vector<4x8x1xf32>, vector<4x8x8xf32>)  : i32 {
      %117 = arith.index_cast %arg16 : i32 to index
      %c0_53 = arith.constant 0 : index
      %c0_54 = arith.constant 0 : index
      %c0_55 = arith.constant 0 : index
      %118 = vector.load %arg14[%117, %c0_53, %c0_54, %c0_55] : memref<2x4x8x8xbf16, #tpu.memory_space<vmem>>, vector<1x4x8x8xbf16>
      %119 = vector.shape_cast %118 : vector<1x4x8x8xbf16> to vector<4x8x8xbf16>
      %120 = arith.index_cast %arg16 : i32 to index
      %c0_56 = arith.constant 0 : index
      %c0_57 = arith.constant 0 : index
      %c0_58 = arith.constant 0 : index
      %121 = vector.load %arg15[%120, %c0_56, %c0_57, %c0_58] : memref<2x4x8x8xbf16, #tpu.memory_space<vmem>>, vector<1x4x8x8xbf16>
      %122 = vector.shape_cast %121 : vector<1x4x8x8xbf16> to vector<4x8x8xbf16>
      "tpu.trace_start"() <{level = 10 : i32, message = "hqd,hkd->hqk"}> : () -> ()
      %cst_59 = arith.constant dense<0.000000e+00> : vector<4x8x8xf32>
      %123 = tpu.matmul %12, %119, %cst_59 {dimension_numbers = #tpu.dot_dimension_numbers<[2], [2], [1], [1], [0, 0, 0, 1, 1, 1], [0], [0]>} : vector<4x8x8xbf16>, vector<4x8x8xbf16>, vector<4x8x8xf32> -> vector<4x8x8xf32>
      "tpu.trace_stop"() : () -> ()
      %c8_i32_60 = arith.constant 8 : i32
      %124 = arith.muli %arg16, %c8_i32_60 : i32
      %125 = vector.broadcast %124 : i32 to vector<4x8x8xi32>
      %126 = arith.addi %125, %29 : vector<4x8x8xi32>
      %127 = arith.cmpi sle, %126, %28 : vector<4x8x8xi32>
      %cst_61 = arith.constant 0xFF800000 : f32
      %128 = vector.broadcast %cst_61 : f32 to vector<4x8x8xf32>
      %129 = arith.select %127, %123, %128 : vector<4x8x8xi1>, vector<4x8x8xf32>
      %cst_62 = arith.constant dense<0xFF800000> : vector<4x8xf32>
      %130 = vector.multi_reduction <maximumf>, %129, %cst_62 [2] : vector<4x8x8xf32> to vector<4x8xf32>
      %131 = vector.shape_cast %130 : vector<4x8xf32> to vector<4x8x1xf32>
      %132 = arith.maximumf %arg17, %131 : vector<4x8x1xf32>
      %133 = arith.subf %arg17, %132 : vector<4x8x1xf32>
      %134 = math.exp %133 : vector<4x8x1xf32>
      %135 = vector.broadcast %132 : vector<4x8x1xf32> to vector<4x8x8xf32>
      %136 = arith.subf %129, %135 : vector<4x8x8xf32>
      %137 = math.exp %136 : vector<4x8x8xf32>
      %138 = arith.mulf %134, %arg18 : vector<4x8x1xf32>
      %cst_63 = arith.constant dense<0.000000e+00> : vector<4x8xf32>
      %139 = vector.multi_reduction <add>, %137, %cst_63 [2] : vector<4x8x8xf32> to vector<4x8xf32>
      %140 = vector.shape_cast %139 : vector<4x8xf32> to vector<4x8x1xf32>
      %141 = arith.addf %138, %140 : vector<4x8x1xf32>
      %142 = vector.broadcast %134 : vector<4x8x1xf32> to vector<4x8x8xf32>
      %143 = arith.mulf %142, %arg19 : vector<4x8x8xf32>
      %144 = arith.truncf %137 : vector<4x8x8xf32> to vector<4x8x8xbf16>
      "tpu.trace_start"() <{level = 10 : i32, message = "hqk,hkd->hqd"}> : () -> ()
      %cst_64 = arith.constant dense<0.000000e+00> : vector<4x8x8xf32>
      %145 = tpu.matmul %144, %122, %cst_64 {dimension_numbers = #tpu.dot_dimension_numbers<[2], [1], [1], [2], [0, 0, 0, 1, 1, 2], [0], [0]>} : vector<4x8x8xbf16>, vector<4x8x8xbf16>, vector<4x8x8xf32> -> vector<4x8x8xf32>
      "tpu.trace_stop"() : () -> ()
      %146 = arith.addf %143, %145 : vector<4x8x8xf32>
      scf.yield %132, %141, %146 : vector<4x8x1xf32>, vector<4x8x1xf32>, vector<4x8x8xf32>
    }
    %37 = tpu.reciprocal %36#1 : vector<4x8x1xf32> -> vector<4x8x1xf32>
    %38 = vector.broadcast %37 : vector<4x8x1xf32> to vector<4x8x8xf32>
    %39 = arith.mulf %36#2, %38 : vector<4x8x8xf32>
    %40 = arith.truncf %39 : vector<4x8x8xf32> to vector<4x8x8xbf16>
    %c0_14 = arith.constant 0 : index
    %c0_15 = arith.constant 0 : index
    %c0_16 = arith.constant 0 : index
    %41 = vector.load %arg4[%c0_14, %c0_15, %c0_16] : memref<4x8x32xbf16, #tpu.memory_space<vmem>>, vector<4x8x32xbf16>
    "tpu.trace_start"() <{level = 10 : i32, message = "hqd,hdk->hqk"}> : () -> ()
    %cst_17 = arith.constant dense<0.000000e+00> : vector<4x8x32xf32>
    %42 = tpu.matmul %40, %41, %cst_17 {dimension_numbers = #tpu.dot_dimension_numbers<[2], [1], [1], [2], [0, 0, 0, 1, 1, 2], [0], [0]>} : vector<4x8x8xbf16>, vector<4x8x32xbf16>, vector<4x8x32xf32> -> vector<4x8x32xf32>
    "tpu.trace_stop"() : () -> ()
    %cst_18 = arith.constant dense<0.000000e+00> : vector<8x32xf32>
    %43 = vector.multi_reduction <add>, %42, %cst_18 [0] : vector<4x8x32xf32> to vector<8x32xf32>
    %44 = arith.addf %43, %1 : vector<8x32xf32>
    %cst_19 = arith.constant dense<0.000000e+00> : vector<8xf32>
    %45 = vector.multi_reduction <add>, %44, %cst_19 [1] : vector<8x32xf32> to vector<8xf32>
    %46 = vector.shape_cast %45 : vector<8xf32> to vector<8x1xf32>
    %cst_20 = arith.constant 3.200000e+01 : f32
    %47 = vector.broadcast %cst_20 : f32 to vector<8x1xf32>
    %48 = arith.divf %46, %47 : vector<8x1xf32>
    %49 = vector.broadcast %48 : vector<8x1xf32> to vector<8x32xf32>
    %50 = arith.subf %44, %49 : vector<8x32xf32>
    %51 = arith.mulf %50, %50 : vector<8x32xf32>
    %cst_21 = arith.constant dense<0.000000e+00> : vector<8xf32>
    %52 = vector.multi_reduction <add>, %51, %cst_21 [1] : vector<8x32xf32> to vector<8xf32>
    %53 = vector.shape_cast %52 : vector<8xf32> to vector<8x1xf32>
    %cst_22 = arith.constant 3.200000e+01 : f32
    %54 = vector.broadcast %cst_22 : f32 to vector<8x1xf32>
    %55 = arith.divf %53, %54 : vector<8x1xf32>
    %56 = vector.broadcast %48 : vector<8x1xf32> to vector<8x32xf32>
    %57 = arith.subf %44, %56 : vector<8x32xf32>
    %cst_23 = arith.constant 9.99999974E-6 : f32
    %58 = vector.broadcast %cst_23 : f32 to vector<8x1xf32>
    %59 = arith.addf %55, %58 : vector<8x1xf32>
    %60 = math.rsqrt %59 : vector<8x1xf32>
    %61 = vector.broadcast %60 : vector<8x1xf32> to vector<8x32xf32>
    %62 = arith.mulf %57, %61 : vector<8x32xf32>
    %c0_24 = arith.constant 0 : index
    %c0_25 = arith.constant 0 : index
    %63 = vector.load %arg5[%c0_24, %c0_25] : memref<1x32xf32, #tpu.memory_space<vmem>>, vector<1x32xf32>
    %64 = vector.broadcast %63 : vector<1x32xf32> to vector<8x32xf32>
    %65 = arith.mulf %62, %64 : vector<8x32xf32>
    %c0_26 = arith.constant 0 : index
    %c0_27 = arith.constant 0 : index
    %66 = vector.load %arg6[%c0_26, %c0_27] : memref<1x32xf32, #tpu.memory_space<vmem>>, vector<1x32xf32>
    %67 = vector.broadcast %66 : vector<1x32xf32> to vector<8x32xf32>
    %68 = arith.addf %65, %67 : vector<8x32xf32>
    %69 = arith.truncf %68 : vector<8x32xf32> to vector<8x32xbf16>
    %c0_28 = arith.constant 0 : index
    %c0_29 = arith.constant 0 : index
    %70 = vector.load %arg9[%c0_28, %c0_29] : memref<32x128xbf16, #tpu.memory_space<vmem>>, vector<32x128xbf16>
    %cst_30 = arith.constant dense<0.000000e+00> : vector<8x128xf32>
    %71 = tpu.matmul %69, %70, %cst_30 {dimension_numbers = #tpu.dot_dimension_numbers<[1], [0], [0], [1], [0, 0, 1, 1], [], []>} : vector<8x32xbf16>, vector<32x128xbf16>, vector<8x128xf32> -> vector<8x128xf32>
    %c0_31 = arith.constant 0 : index
    %c0_32 = arith.constant 0 : index
    %72 = vector.load %arg10[%c0_31, %c0_32] : memref<1x128xf32, #tpu.memory_space<vmem>>, vector<1x128xf32>
    %73 = vector.broadcast %72 : vector<1x128xf32> to vector<8x128xf32>
    %74 = arith.addf %71, %73 : vector<8x128xf32>
    %cst_33 = arith.constant 5.000000e-01 : f32
    %75 = vector.broadcast %cst_33 : f32 to vector<8x128xf32>
    %76 = arith.mulf %75, %74 : vector<8x128xf32>
    %cst_34 = arith.constant 0.707106769 : f32
    %77 = vector.broadcast %cst_34 : f32 to vector<8x128xf32>
    %78 = arith.mulf %74, %77 : vector<8x128xf32>
    %79 = math.erf %78 : vector<8x128xf32>
    %cst_35 = arith.constant 1.000000e+00 : f32
    %80 = vector.broadcast %cst_35 : f32 to vector<8x128xf32>
    %81 = arith.addf %80, %79 : vector<8x128xf32>
    %82 = arith.mulf %76, %81 : vector<8x128xf32>
    %83 = arith.truncf %82 : vector<8x128xf32> to vector<8x128xbf16>
    %c0_36 = arith.constant 0 : index
    %c0_37 = arith.constant 0 : index
    %84 = vector.load %arg11[%c0_36, %c0_37] : memref<128x32xbf16, #tpu.memory_space<vmem>>, vector<128x32xbf16>
    %cst_38 = arith.constant dense<0.000000e+00> : vector<8x32xf32>
    %85 = tpu.matmul %83, %84, %cst_38 {dimension_numbers = #tpu.dot_dimension_numbers<[1], [0], [0], [1], [0, 0, 1, 1], [], []>} : vector<8x128xbf16>, vector<128x32xbf16>, vector<8x32xf32> -> vector<8x32xf32>
    %c0_39 = arith.constant 0 : index
    %c0_40 = arith.constant 0 : index
    %86 = vector.load %arg12[%c0_39, %c0_40] : memref<1x32xf32, #tpu.memory_space<vmem>>, vector<1x32xf32>
    %87 = vector.broadcast %86 : vector<1x32xf32> to vector<8x32xf32>
    %88 = arith.addf %85, %87 : vector<8x32xf32>
    %89 = arith.addf %88, %68 : vector<8x32xf32>
    %cst_41 = arith.constant dense<0.000000e+00> : vector<8xf32>
    %90 = vector.multi_reduction <add>, %89, %cst_41 [1] : vector<8x32xf32> to vector<8xf32>
    %91 = vector.shape_cast %90 : vector<8xf32> to vector<8x1xf32>
    %cst_42 = arith.constant 3.200000e+01 : f32
    %92 = vector.broadcast %cst_42 : f32 to vector<8x1xf32>
    %93 = arith.divf %91, %92 : vector<8x1xf32>
    %94 = vector.broadcast %93 : vector<8x1xf32> to vector<8x32xf32>
    %95 = arith.subf %89, %94 : vector<8x32xf32>
    %96 = arith.mulf %95, %95 : vector<8x32xf32>
    %cst_43 = arith.constant dense<0.000000e+00> : vector<8xf32>
    %97 = vector.multi_reduction <add>, %96, %cst_43 [1] : vector<8x32xf32> to vector<8xf32>
    %98 = vector.shape_cast %97 : vector<8xf32> to vector<8x1xf32>
    %cst_44 = arith.constant 3.200000e+01 : f32
    %99 = vector.broadcast %cst_44 : f32 to vector<8x1xf32>
    %100 = arith.divf %98, %99 : vector<8x1xf32>
    %101 = vector.broadcast %93 : vector<8x1xf32> to vector<8x32xf32>
    %102 = arith.subf %89, %101 : vector<8x32xf32>
    %cst_45 = arith.constant 9.99999974E-6 : f32
    %103 = vector.broadcast %cst_45 : f32 to vector<8x1xf32>
    %104 = arith.addf %100, %103 : vector<8x1xf32>
    %105 = math.rsqrt %104 : vector<8x1xf32>
    %106 = vector.broadcast %105 : vector<8x1xf32> to vector<8x32xf32>
    %107 = arith.mulf %102, %106 : vector<8x32xf32>
    %c0_46 = arith.constant 0 : index
    %c0_47 = arith.constant 0 : index
    %108 = vector.load %arg7[%c0_46, %c0_47] : memref<1x32xf32, #tpu.memory_space<vmem>>, vector<1x32xf32>
    %109 = vector.broadcast %108 : vector<1x32xf32> to vector<8x32xf32>
    %110 = arith.mulf %107, %109 : vector<8x32xf32>
    %c0_48 = arith.constant 0 : index
    %c0_49 = arith.constant 0 : index
    %111 = vector.load %arg8[%c0_48, %c0_49] : memref<1x32xf32, #tpu.memory_space<vmem>>, vector<1x32xf32>
    %112 = vector.broadcast %111 : vector<1x32xf32> to vector<8x32xf32>
    %113 = arith.addf %110, %112 : vector<8x32xf32>
    %c0_50 = arith.constant 0 : index
    %c0_51 = arith.constant 0 : index
    %c0_52 = arith.constant 0 : index
    %114 = vector.load %arg13[%c0_50, %c0_51, %c0_52] : memref<1x8x32xf32, #tpu.memory_space<vmem>>, vector<1x8x32xf32>
    %115 = vector.shape_cast %114 : vector<1x8x32xf32> to vector<8x32xf32>
    %116 = vector.shape_cast %113 : vector<8x32xf32> to vector<1x8x32xf32>
    tpu.vector_store %arg13[%c0_50, %c0_51, %c0_52], %116 {strides = array<i32>} : memref<1x8x32xf32, #tpu.memory_space<vmem>>, vector<1x8x32xf32>,
    return
  }
  func.func @transform_0(%arg0: i32, %arg1: i32) -> (i32, i32, i32) {
    %c0_i32 = arith.constant 0 : i32
    %c0_i32_0 = arith.constant 0 : i32
    return %arg0, %arg1, %c0_i32 : i32, i32, i32
  }
  func.func @transform_1(%arg0: i32, %arg1: i32) -> (i32, i32) {
    %c0_i32 = arith.constant 0 : i32
    %c0_i32_0 = arith.constant 0 : i32
    %c0_i32_1 = arith.constant 0 : i32
    return %c0_i32, %c0_i32_0 : i32, i32
  }
  func.func @transform_2(%arg0: i32, %arg1: i32) -> (i32, i32, i32) {
    %c0_i32 = arith.constant 0 : i32
    %c0_i32_0 = arith.constant 0 : i32
    %c0_i32_1 = arith.constant 0 : i32
    %c0_i32_2 = arith.constant 0 : i32
    return %c0_i32, %c0_i32_0, %c0_i32_1 : i32, i32, i32
  }
  func.func @transform_3(%arg0: i32, %arg1: i32) -> (i32, i32) {
    %c0_i32 = arith.constant 0 : i32
    %c0_i32_0 = arith.constant 0 : i32
    %c0_i32_1 = arith.constant 0 : i32
    return %c0_i32, %c0_i32_0 : i32, i32
  }
  func.func @transform_4(%arg0: i32, %arg1: i32) -> (i32, i32) {
    %c0_i32 = arith.constant 0 : i32
    %c0_i32_0 = arith.constant 0 : i32
    %c0_i32_1 = arith.constant 0 : i32
    return %c0_i32, %c0_i32_0 : i32, i32
  }
  func.func @transform_5(%arg0: i32, %arg1: i32) -> (i32, i32) {
    %c0_i32 = arith.constant 0 : i32
    %c0_i32_0 = arith.constant 0 : i32
    %c0_i32_1 = arith.constant 0 : i32
    return %c0_i32, %c0_i32_0 : i32, i32
  }
  func.func @transform_6(%arg0: i32, %arg1: i32) -> (i32, i32) {
    %c0_i32 = arith.constant 0 : i32
    %c0_i32_0 = arith.constant 0 : i32
    %c0_i32_1 = arith.constant 0 : i32
    return %c0_i32, %c0_i32_0 : i32, i32
  }
  func.func @transform_7(%arg0: i32, %arg1: i32) -> (i32, i32) {
    %c0_i32 = arith.constant 0 : i32
    %c0_i32_0 = arith.constant 0 : i32
    %c0_i32_1 = arith.constant 0 : i32
    return %c0_i32, %c0_i32_0 : i32, i32
  }
  func.func @transform_8(%arg0: i32, %arg1: i32) -> (i32, i32) {
    %c0_i32 = arith.constant 0 : i32
    %c0_i32_0 = arith.constant 0 : i32
    %c0_i32_1 = arith.constant 0 : i32
    return %c0_i32, %c0_i32_0 : i32, i32
  }
  func.func @transform_9(%arg0: i32, %arg1: i32) -> (i32, i32) {
    %c0_i32 = arith.constant 0 : i32
    %c0_i32_0 = arith.constant 0 : i32
    %c0_i32_1 = arith.constant 0 : i32
    return %c0_i32, %c0_i32_0 : i32, i32
  }
  func.func @transform_10(%arg0: i32, %arg1: i32) -> (i32, i32) {
    %c0_i32 = arith.constant 0 : i32
    %c0_i32_0 = arith.constant 0 : i32
    %c0_i32_1 = arith.constant 0 : i32
    return %c0_i32, %c0_i32_0 : i32, i32
  }
  func.func @transform_11(%arg0: i32, %arg1: i32) -> (i32, i32, i32) {
    %c0_i32 = arith.constant 0 : i32
    %c0_i32_0 = arith.constant 0 : i32
    return %arg0, %arg1, %c0_i32 : i32, i32, i32
  }
}

module attributes {stable_mosaic.version = 11 : i64} {
  func.func @_transformer_block_kernel(%arg0: i32, %arg1: i32, %arg2: memref<1x8x32xf32, #tpu.memory_space<vmem>>, %arg3: memref<32x96xbf16, #tpu.memory_space<vmem>>, %arg4: memref<4x8x32xbf16, #tpu.memory_space<vmem>>, %arg5: memref<1x32xf32, #tpu.memory_space<vmem>>, %arg6: memref<1x32xf32, #tpu.memory_space<vmem>>, %arg7: memref<1x32xf32, #tpu.memory_space<vmem>>, %arg8: memref<1x32xf32, #tpu.memory_space<vmem>>, %arg9: memref<32x128xbf16, #tpu.memory_space<vmem>>, %arg10: memref<1x128xf32, #tpu.memory_space<vmem>>, %arg11: memref<128x32xbf16, #tpu.memory_space<vmem>>, %arg12: memref<1x32xf32, #tpu.memory_space<vmem>>, %arg13: memref<1x8x32xf32, #tpu.memory_space<vmem>>, %arg14: memref<2x4x8x8xbf16, #tpu.memory_space<vmem>>, %arg15: memref<2x4x8x8xbf16, #tpu.memory_space<vmem>>) attributes {dimension_semantics = [#tpu.dimension_semantics<parallel>, #tpu.dimension_semantics<arbitrary>], iteration_bounds = array<i64: 2, 2>, scalar_prefetch = 0 : i64, scratch_operands = 2 : i64, tpu.core_type = #tpu.core_type<tc>, window_params = [{transform_indices = @transform_0, window_bounds = array<i64: 1, 8, 32>}, {pipeline_mode = #tpu.pipeline_mode<synchronous>, transform_indices = @transform_1, window_bounds = array<i64: 32, 96>}, {pipeline_mode = #tpu.pipeline_mode<synchronous>, transform_indices = @transform_2, window_bounds = array<i64: 4, 8, 32>}, {pipeline_mode = #tpu.pipeline_mode<synchronous>, transform_indices = @transform_3, window_bounds = array<i64: 1, 32>}, {pipeline_mode = #tpu.pipeline_mode<synchronous>, transform_indices = @transform_4, window_bounds = array<i64: 1, 32>}, {pipeline_mode = #tpu.pipeline_mode<synchronous>, transform_indices = @transform_5, window_bounds = array<i64: 1, 32>}, {pipeline_mode = #tpu.pipeline_mode<synchronous>, transform_indices = @transform_6, window_bounds = array<i64: 1, 32>}, {pipeline_mode = #tpu.pipeline_mode<synchronous>, transform_indices = @transform_7, window_bounds = array<i64: 32, 128>}, {pipeline_mode = #tpu.pipeline_mode<synchronous>, transform_indices = @transform_8, window_bounds = array<i64: 1, 128>}, {pipeline_mode = #tpu.pipeline_mode<synchronous>, transform_indices = @transform_9, window_bounds = array<i64: 128, 32>}, {pipeline_mode = #tpu.pipeline_mode<synchronous>, transform_indices = @transform_10, window_bounds = array<i64: 1, 32>}, {transform_indices = @transform_11, window_bounds = array<i64: 1, 8, 32>}]} {
    %c0 = arith.constant 0 : index
    %c0_0 = arith.constant 0 : index
    %c0_1 = arith.constant 0 : index
    %0 = vector.load %arg2[%c0, %c0_0, %c0_1] : memref<1x8x32xf32, #tpu.memory_space<vmem>>, vector<1x8x32xf32>
    %1 = vector.shape_cast %0 : vector<1x8x32xf32> to vector<8x32xf32>
    %2 = arith.truncf %1 : vector<8x32xf32> to vector<8x32xbf16>
    %c0_2 = arith.constant 0 : index
    %c0_3 = arith.constant 0 : index
    %3 = vector.load %arg3[%c0_2, %c0_3] : memref<32x96xbf16, #tpu.memory_space<vmem>>, vector<32x96xbf16>
    %cst = arith.constant dense<0.000000e+00> : vector<8x96xf32>
    %4 = tpu.matmul %2, %3, %cst {dimension_numbers = #tpu.dot_dimension_numbers<[1], [0], [0], [1], [0, 0, 1, 1], [], []>} : vector<8x32xbf16>, vector<32x96xbf16>, vector<8x96xf32> -> vector<8x96xf32>
    %5 = vector.extract_strided_slice %4 {offsets = [0, 0], sizes = [8, 32], strides = [1, 1]} : vector<8x96xf32> to vector<8x32xf32>
    %6 = arith.truncf %5 : vector<8x32xf32> to vector<8x32xbf16>
    %7 = vector.extract_strided_slice %4 {offsets = [0, 32], sizes = [8, 32], strides = [1, 1]} : vector<8x96xf32> to vector<8x32xf32>
    %8 = arith.truncf %7 : vector<8x32xf32> to vector<8x32xbf16>
    %9 = vector.extract_strided_slice %4 {offsets = [0, 64], sizes = [8, 32], strides = [1, 1]} : vector<8x96xf32> to vector<8x32xf32>
    %10 = arith.truncf %9 : vector<8x32xf32> to vector<8x32xbf16>
    %11 = vector.shape_cast %6 : vector<8x32xbf16> to vector<8x4x8xbf16>
    %12 = tpu.transpose %11, [1, 0, 2] : vector<8x4x8xbf16> -> vector<4x8x8xbf16>
    %13 = vector.shape_cast %8 : vector<8x32xbf16> to vector<8x4x8xbf16>
    %14 = tpu.transpose %13, [1, 0, 2] : vector<8x4x8xbf16> -> vector<4x8x8xbf16>
    %15 = vector.shape_cast %10 : vector<8x32xbf16> to vector<8x4x8xbf16>
    %16 = tpu.transpose %15, [1, 0, 2] : vector<8x4x8xbf16> -> vector<4x8x8xbf16>
    %17 = arith.index_cast %arg1 : i32 to index
    %c0_4 = arith.constant 0 : index
    %c0_5 = arith.constant 0 : index
    %c0_6 = arith.constant 0 : index
    %18 = vector.load %arg14[%17, %c0_4, %c0_5, %c0_6] : memref<2x4x8x8xbf16, #tpu.memory_space<vmem>>, vector<1x4x8x8xbf16>
    %19 = vector.shape_cast %18 : vector<1x4x8x8xbf16> to vector<4x8x8xbf16>
    %20 = vector.shape_cast %14 : vector<4x8x8xbf16> to vector<1x4x8x8xbf16>
    tpu.vector_store %arg14[%17, %c0_4, %c0_5, %c0_6], %20 {strides = array<i32>} : memref<2x4x8x8xbf16, #tpu.memory_space<vmem>>, vector<1x4x8x8xbf16>,
    %21 = arith.index_cast %arg1 : i32 to index
    %c0_7 = arith.constant 0 : index
    %c0_8 = arith.constant 0 : index
    %c0_9 = arith.constant 0 : index
    %22 = vector.load %arg15[%21, %c0_7, %c0_8, %c0_9] : memref<2x4x8x8xbf16, #tpu.memory_space<vmem>>, vector<1x4x8x8xbf16>
    %23 = vector.shape_cast %22 : vector<1x4x8x8xbf16> to vector<4x8x8xbf16>
    %24 = vector.shape_cast %16 : vector<4x8x8xbf16> to vector<1x4x8x8xbf16>
    tpu.vector_store %arg15[%21, %c0_7, %c0_8, %c0_9], %24 {strides = array<i32>} : memref<2x4x8x8xbf16, #tpu.memory_space<vmem>>, vector<1x4x8x8xbf16>,
    %c8_i32 = arith.constant 8 : i32
    %25 = arith.muli %arg1, %c8_i32 : i32
    %26 = tpu.iota {dimensions = array<i32: 1>} : vector<4x8x8xi32>
    %27 = vector.broadcast %25 : i32 to vector<4x8x8xi32>
    %28 = arith.addi %27, %26 : vector<4x8x8xi32>
    %29 = tpu.iota {dimensions = array<i32: 2>} : vector<4x8x8xi32>
    %cst_10 = arith.constant 0xFF800000 : f32
    %30 = vector.broadcast %cst_10 : f32 to vector<4x8x1xf32>
    %cst_11 = arith.constant 0.000000e+00 : f32
    %31 = vector.broadcast %cst_11 : f32 to vector<4x8x1xf32>
    %cst_12 = arith.constant 0.000000e+00 : f32
    %32 = vector.broadcast %cst_12 : f32 to vector<4x8x8xf32>
    %c1_i32 = arith.constant 1 : i32
    %33 = arith.addi %arg1, %c1_i32 : i32
    %c0_i32 = arith.constant 0 : i32
    %34 = arith.subi %33, %c0_i32 : i32
    %35 = arith.addi %c0_i32, %34 : i32
    %c1_i32_13 = arith.constant 1 : i32
    %36:3 = scf.for %arg16 = %c0_i32 to %35 step %c1_i32_13 iter_args(%arg17 = %30, %arg18 = %31, %arg19 = %32) -> (vector<4x8x1xf32>, vector<4x8x1xf32>, vector<4x8x8xf32>)  : i32 {
      %117 = arith.index_cast %arg16 : i32 to index
      %c0_53 = arith.constant 0 : index
      %c0_54 = arith.constant 0 : index
      %c0_55 = arith.constant 0 : index
      %118 = vector.load %arg14[%117, %c0_53, %c0_54, %c0_55] : memref<2x4x8x8xbf16, #tpu.memory_space<vmem>>, vector<1x4x8x8xbf16>
      %119 = vector.shape_cast %118 : vector<1x4x8x8xbf16> to vector<4x8x8xbf16>
      %120 = arith.index_cast %arg16 : i32 to index
      %c0_56 = arith.constant 0 : index
      %c0_57 = arith.constant 0 : index
      %c0_58 = arith.constant 0 : index
      %121 = vector.load %arg15[%120, %c0_56, %c0_57, %c0_58] : memref<2x4x8x8xbf16, #tpu.memory_space<vmem>>, vector<1x4x8x8xbf16>
      %122 = vector.shape_cast %121 : vector<1x4x8x8xbf16> to vector<4x8x8xbf16>
      "tpu.trace_start"() <{level = 10 : i32, message = "hqd,hkd->hqk"}> : () -> ()
      %cst_59 = arith.constant dense<0.000000e+00> : vector<4x8x8xf32>
      %123 = tpu.matmul %12, %119, %cst_59 {dimension_numbers = #tpu.dot_dimension_numbers<[2], [2], [1], [1], [0, 0, 0, 1, 1, 1], [0], [0]>} : vector<4x8x8xbf16>, vector<4x8x8xbf16>, vector<4x8x8xf32> -> vector<4x8x8xf32>
      "tpu.trace_stop"() : () -> ()
      %c8_i32_60 = arith.constant 8 : i32
      %124 = arith.muli %arg16, %c8_i32_60 : i32
      %125 = vector.broadcast %124 : i32 to vector<4x8x8xi32>
      %126 = arith.addi %125, %29 : vector<4x8x8xi32>
      %127 = arith.cmpi sle, %126, %28 : vector<4x8x8xi32>
      %cst_61 = arith.constant 0xFF800000 : f32
      %128 = vector.broadcast %cst_61 : f32 to vector<4x8x8xf32>
      %129 = arith.select %127, %123, %128 : vector<4x8x8xi1>, vector<4x8x8xf32>
      %cst_62 = arith.constant dense<0xFF800000> : vector<4x8xf32>
      %130 = vector.multi_reduction <maximumf>, %129, %cst_62 [2] : vector<4x8x8xf32> to vector<4x8xf32>
      %131 = vector.shape_cast %130 : vector<4x8xf32> to vector<4x8x1xf32>
      %132 = arith.maximumf %arg17, %131 : vector<4x8x1xf32>
      %133 = arith.subf %arg17, %132 : vector<4x8x1xf32>
      %134 = math.exp %133 : vector<4x8x1xf32>
      %135 = vector.broadcast %132 : vector<4x8x1xf32> to vector<4x8x8xf32>
      %136 = arith.subf %129, %135 : vector<4x8x8xf32>
      %137 = math.exp %136 : vector<4x8x8xf32>
      %138 = arith.mulf %134, %arg18 : vector<4x8x1xf32>
      %cst_63 = arith.constant dense<0.000000e+00> : vector<4x8xf32>
      %139 = vector.multi_reduction <add>, %137, %cst_63 [2] : vector<4x8x8xf32> to vector<4x8xf32>
      %140 = vector.shape_cast %139 : vector<4x8xf32> to vector<4x8x1xf32>
      %141 = arith.addf %138, %140 : vector<4x8x1xf32>
      %142 = vector.broadcast %134 : vector<4x8x1xf32> to vector<4x8x8xf32>
      %143 = arith.mulf %142, %arg19 : vector<4x8x8xf32>
      %144 = arith.truncf %137 : vector<4x8x8xf32> to vector<4x8x8xbf16>
      "tpu.trace_start"() <{level = 10 : i32, message = "hqk,hkd->hqd"}> : () -> ()
      %cst_64 = arith.constant dense<0.000000e+00> : vector<4x8x8xf32>
      %145 = tpu.matmul %144, %122, %cst_64 {dimension_numbers = #tpu.dot_dimension_numbers<[2], [1], [1], [2], [0, 0, 0, 1, 1, 2], [0], [0]>} : vector<4x8x8xbf16>, vector<4x8x8xbf16>, vector<4x8x8xf32> -> vector<4x8x8xf32>
      "tpu.trace_stop"() : () -> ()
      %146 = arith.addf %143, %145 : vector<4x8x8xf32>
      scf.yield %132, %141, %146 : vector<4x8x1xf32>, vector<4x8x1xf32>, vector<4x8x8xf32>
    }
    %37 = tpu.reciprocal %36#1 : vector<4x8x1xf32> -> vector<4x8x1xf32>
    %38 = vector.broadcast %37 : vector<4x8x1xf32> to vector<4x8x8xf32>
    %39 = arith.mulf %36#2, %38 : vector<4x8x8xf32>
    %40 = arith.truncf %39 : vector<4x8x8xf32> to vector<4x8x8xbf16>
    %c0_14 = arith.constant 0 : index
    %c0_15 = arith.constant 0 : index
    %c0_16 = arith.constant 0 : index
    %41 = vector.load %arg4[%c0_14, %c0_15, %c0_16] : memref<4x8x32xbf16, #tpu.memory_space<vmem>>, vector<4x8x32xbf16>
    "tpu.trace_start"() <{level = 10 : i32, message = "hqd,hdk->hqk"}> : () -> ()
    %cst_17 = arith.constant dense<0.000000e+00> : vector<4x8x32xf32>
    %42 = tpu.matmul %40, %41, %cst_17 {dimension_numbers = #tpu.dot_dimension_numbers<[2], [1], [1], [2], [0, 0, 0, 1, 1, 2], [0], [0]>} : vector<4x8x8xbf16>, vector<4x8x32xbf16>, vector<4x8x32xf32> -> vector<4x8x32xf32>
    "tpu.trace_stop"() : () -> ()
    %cst_18 = arith.constant dense<0.000000e+00> : vector<8x32xf32>
    %43 = vector.multi_reduction <add>, %42, %cst_18 [0] : vector<4x8x32xf32> to vector<8x32xf32>
    %44 = arith.addf %43, %1 : vector<8x32xf32>
    %cst_19 = arith.constant dense<0.000000e+00> : vector<8xf32>
    %45 = vector.multi_reduction <add>, %44, %cst_19 [1] : vector<8x32xf32> to vector<8xf32>
    %46 = vector.shape_cast %45 : vector<8xf32> to vector<8x1xf32>
    %cst_20 = arith.constant 3.200000e+01 : f32
    %47 = vector.broadcast %cst_20 : f32 to vector<8x1xf32>
    %48 = arith.divf %46, %47 : vector<8x1xf32>
    %49 = vector.broadcast %48 : vector<8x1xf32> to vector<8x32xf32>
    %50 = arith.subf %44, %49 : vector<8x32xf32>
    %51 = arith.mulf %50, %50 : vector<8x32xf32>
    %cst_21 = arith.constant dense<0.000000e+00> : vector<8xf32>
    %52 = vector.multi_reduction <add>, %51, %cst_21 [1] : vector<8x32xf32> to vector<8xf32>
    %53 = vector.shape_cast %52 : vector<8xf32> to vector<8x1xf32>
    %cst_22 = arith.constant 3.200000e+01 : f32
    %54 = vector.broadcast %cst_22 : f32 to vector<8x1xf32>
    %55 = arith.divf %53, %54 : vector<8x1xf32>
    %56 = vector.broadcast %48 : vector<8x1xf32> to vector<8x32xf32>
    %57 = arith.subf %44, %56 : vector<8x32xf32>
    %cst_23 = arith.constant 9.99999974E-6 : f32
    %58 = vector.broadcast %cst_23 : f32 to vector<8x1xf32>
    %59 = arith.addf %55, %58 : vector<8x1xf32>
    %60 = math.rsqrt %59 : vector<8x1xf32>
    %61 = vector.broadcast %60 : vector<8x1xf32> to vector<8x32xf32>
    %62 = arith.mulf %57, %61 : vector<8x32xf32>
    %c0_24 = arith.constant 0 : index
    %c0_25 = arith.constant 0 : index
    %63 = vector.load %arg5[%c0_24, %c0_25] : memref<1x32xf32, #tpu.memory_space<vmem>>, vector<1x32xf32>
    %64 = vector.broadcast %63 : vector<1x32xf32> to vector<8x32xf32>
    %65 = arith.mulf %62, %64 : vector<8x32xf32>
    %c0_26 = arith.constant 0 : index
    %c0_27 = arith.constant 0 : index
    %66 = vector.load %arg6[%c0_26, %c0_27] : memref<1x32xf32, #tpu.memory_space<vmem>>, vector<1x32xf32>
    %67 = vector.broadcast %66 : vector<1x32xf32> to vector<8x32xf32>
    %68 = arith.addf %65, %67 : vector<8x32xf32>
    %69 = arith.truncf %68 : vector<8x32xf32> to vector<8x32xbf16>
    %c0_28 = arith.constant 0 : index
    %c0_29 = arith.constant 0 : index
    %70 = vector.load %arg9[%c0_28, %c0_29] : memref<32x128xbf16, #tpu.memory_space<vmem>>, vector<32x128xbf16>
    %cst_30 = arith.constant dense<0.000000e+00> : vector<8x128xf32>
    %71 = tpu.matmul %69, %70, %cst_30 {dimension_numbers = #tpu.dot_dimension_numbers<[1], [0], [0], [1], [0, 0, 1, 1], [], []>} : vector<8x32xbf16>, vector<32x128xbf16>, vector<8x128xf32> -> vector<8x128xf32>
    %c0_31 = arith.constant 0 : index
    %c0_32 = arith.constant 0 : index
    %72 = vector.load %arg10[%c0_31, %c0_32] : memref<1x128xf32, #tpu.memory_space<vmem>>, vector<1x128xf32>
    %73 = vector.broadcast %72 : vector<1x128xf32> to vector<8x128xf32>
    %74 = arith.addf %71, %73 : vector<8x128xf32>
    %cst_33 = arith.constant 5.000000e-01 : f32
    %75 = vector.broadcast %cst_33 : f32 to vector<8x128xf32>
    %76 = arith.mulf %75, %74 : vector<8x128xf32>
    %cst_34 = arith.constant 0.707106769 : f32
    %77 = vector.broadcast %cst_34 : f32 to vector<8x128xf32>
    %78 = arith.mulf %74, %77 : vector<8x128xf32>
    %79 = math.erf %78 : vector<8x128xf32>
    %cst_35 = arith.constant 1.000000e+00 : f32
    %80 = vector.broadcast %cst_35 : f32 to vector<8x128xf32>
    %81 = arith.addf %80, %79 : vector<8x128xf32>
    %82 = arith.mulf %76, %81 : vector<8x128xf32>
    %83 = arith.truncf %82 : vector<8x128xf32> to vector<8x128xbf16>
    %c0_36 = arith.constant 0 : index
    %c0_37 = arith.constant 0 : index
    %84 = vector.load %arg11[%c0_36, %c0_37] : memref<128x32xbf16, #tpu.memory_space<vmem>>, vector<128x32xbf16>
    %cst_38 = arith.constant dense<0.000000e+00> : vector<8x32xf32>
    %85 = tpu.matmul %83, %84, %cst_38 {dimension_numbers = #tpu.dot_dimension_numbers<[1], [0], [0], [1], [0, 0, 1, 1], [], []>} : vector<8x128xbf16>, vector<128x32xbf16>, vector<8x32xf32> -> vector<8x32xf32>
    %c0_39 = arith.constant 0 : index
    %c0_40 = arith.constant 0 : index
    %86 = vector.load %arg12[%c0_39, %c0_40] : memref<1x32xf32, #tpu.memory_space<vmem>>, vector<1x32xf32>
    %87 = vector.broadcast %86 : vector<1x32xf32> to vector<8x32xf32>
    %88 = arith.addf %85, %87 : vector<8x32xf32>
    %89 = arith.addf %88, %68 : vector<8x32xf32>
    %cst_41 = arith.constant dense<0.000000e+00> : vector<8xf32>
    %90 = vector.multi_reduction <add>, %89, %cst_41 [1] : vector<8x32xf32> to vector<8xf32>
    %91 = vector.shape_cast %90 : vector<8xf32> to vector<8x1xf32>
    %cst_42 = arith.constant 3.200000e+01 : f32
    %92 = vector.broadcast %cst_42 : f32 to vector<8x1xf32>
    %93 = arith.divf %91, %92 : vector<8x1xf32>
    %94 = vector.broadcast %93 : vector<8x1xf32> to vector<8x32xf32>
    %95 = arith.subf %89, %94 : vector<8x32xf32>
    %96 = arith.mulf %95, %95 : vector<8x32xf32>
    %cst_43 = arith.constant dense<0.000000e+00> : vector<8xf32>
    %97 = vector.multi_reduction <add>, %96, %cst_43 [1] : vector<8x32xf32> to vector<8xf32>
    %98 = vector.shape_cast %97 : vector<8xf32> to vector<8x1xf32>
    %cst_44 = arith.constant 3.200000e+01 : f32
    %99 = vector.broadcast %cst_44 : f32 to vector<8x1xf32>
    %100 = arith.divf %98, %99 : vector<8x1xf32>
    %101 = vector.broadcast %93 : vector<8x1xf32> to vector<8x32xf32>
    %102 = arith.subf %89, %101 : vector<8x32xf32>
    %cst_45 = arith.constant 9.99999974E-6 : f32
    %103 = vector.broadcast %cst_45 : f32 to vector<8x1xf32>
    %104 = arith.addf %100, %103 : vector<8x1xf32>
    %105 = math.rsqrt %104 : vector<8x1xf32>
    %106 = vector.broadcast %105 : vector<8x1xf32> to vector<8x32xf32>
    %107 = arith.mulf %102, %106 : vector<8x32xf32>
    %c0_46 = arith.constant 0 : index
    %c0_47 = arith.constant 0 : index
    %108 = vector.load %arg7[%c0_46, %c0_47] : memref<1x32xf32, #tpu.memory_space<vmem>>, vector<1x32xf32>
    %109 = vector.broadcast %108 : vector<1x32xf32> to vector<8x32xf32>
    %110 = arith.mulf %107, %109 : vector<8x32xf32>
    %c0_48 = arith.constant 0 : index
    %c0_49 = arith.constant 0 : index
    %111 = vector.load %arg8[%c0_48, %c0_49] : memref<1x32xf32, #tpu.memory_space<vmem>>, vector<1x32xf32>
    %112 = vector.broadcast %111 : vector<1x32xf32> to vector<8x32xf32>
    %113 = arith.addf %110, %112 : vector<8x32xf32>
    %c0_50 = arith.constant 0 : index
    %c0_51 = arith.constant 0 : index
    %c0_52 = arith.constant 0 : index
    %114 = vector.load %arg13[%c0_50, %c0_51, %c0_52] : memref<1x8x32xf32, #tpu.memory_space<vmem>>, vector<1x8x32xf32>
    %115 = vector.shape_cast %114 : vector<1x8x32xf32> to vector<8x32xf32>
    %116 = vector.shape_cast %113 : vector<8x32xf32> to vector<1x8x32xf32>
    tpu.vector_store %arg13[%c0_50, %c0_51, %c0_52], %116 {strides = array<i32>} : memref<1x8x32xf32, #tpu.memory_space<vmem>>, vector<1x8x32xf32>,
    return
  }
  func.func @transform_0(%arg0: i32, %arg1: i32) -> (i32, i32, i32) {
    %c0_i32 = arith.constant 0 : i32
    %c0_i32_0 = arith.constant 0 : i32
    return %arg0, %arg1, %c0_i32 : i32, i32, i32
  }
  func.func @transform_1(%arg0: i32, %arg1: i32) -> (i32, i32) {
    %c0_i32 = arith.constant 0 : i32
    %c0_i32_0 = arith.constant 0 : i32
    %c0_i32_1 = arith.constant 0 : i32
    return %c0_i32, %c0_i32_0 : i32, i32
  }
  func.func @transform_2(%arg0: i32, %arg1: i32) -> (i32, i32, i32) {
    %c0_i32 = arith.constant 0 : i32
    %c0_i32_0 = arith.constant 0 : i32
    %c0_i32_1 = arith.constant 0 : i32
    %c0_i32_2 = arith.constant 0 : i32
    return %c0_i32, %c0_i32_0, %c0_i32_1 : i32, i32, i32
  }
  func.func @transform_3(%arg0: i32, %arg1: i32) -> (i32, i32) {
    %c0_i32 = arith.constant 0 : i32
    %c0_i32_0 = arith.constant 0 : i32
    %c0_i32_1 = arith.constant 0 : i32
    return %c0_i32, %c0_i32_0 : i32, i32
  }
  func.func @transform_4(%arg0: i32, %arg1: i32) -> (i32, i32) {
    %c0_i32 = arith.constant 0 : i32
    %c0_i32_0 = arith.constant 0 : i32
    %c0_i32_1 = arith.constant 0 : i32
    return %c0_i32, %c0_i32_0 : i32, i32
  }
  func.func @transform_5(%arg0: i32, %arg1: i32) -> (i32, i32) {
    %c0_i32 = arith.constant 0 : i32
    %c0_i32_0 = arith.constant 0 : i32
    %c0_i32_1 = arith.constant 0 : i32
    return %c0_i32, %c0_i32_0 : i32, i32
  }
  func.func @transform_6(%arg0: i32, %arg1: i32) -> (i32, i32) {
    %c0_i32 = arith.constant 0 : i32
    %c0_i32_0 = arith.constant 0 : i32
    %c0_i32_1 = arith.constant 0 : i32
    return %c0_i32, %c0_i32_0 : i32, i32
  }
  func.func @transform_7(%arg0: i32, %arg1: i32) -> (i32, i32) {
    %c0_i32 = arith.constant 0 : i32
    %c0_i32_0 = arith.constant 0 : i32
    %c0_i32_1 = arith.constant 0 : i32
    return %c0_i32, %c0_i32_0 : i32, i32
  }
  func.func @transform_8(%arg0: i32, %arg1: i32) -> (i32, i32) {
    %c0_i32 = arith.constant 0 : i32
    %c0_i32_0 = arith.constant 0 : i32
    %c0_i32_1 = arith.constant 0 : i32
    return %c0_i32, %c0_i32_0 : i32, i32
  }
  func.func @transform_9(%arg0: i32, %arg1: i32) -> (i32, i32) {
    %c0_i32 = arith.constant 0 : i32
    %c0_i32_0 = arith.constant 0 : i32
    %c0_i32_1 = arith.constant 0 : i32
    return %c0_i32, %c0_i32_0 : i32, i32
  }
  func.func @transform_10(%arg0: i32, %arg1: i32) -> (i32, i32) {
    %c0_i32 = arith.constant 0 : i32
    %c0_i32_0 = arith.constant 0 : i32
    %c0_i32_1 = arith.constant 0 : i32
    return %c0_i32, %c0_i32_0 : i32, i32
  }
  func.func @transform_11(%arg0: i32, %arg1: i32) -> (i32, i32, i32) {
    %c0_i32 = arith.constant 0 : i32
    %c0_i32_0 = arith.constant 0 : i32
    return %arg0, %arg1, %c0_i32 : i32, i32, i32
  }
}

</mosaic_0001>

<bundles_post_ra>
// kernel: tpu_custom_call.1
= control target key start
LH: loop header
LB: loop body
LE: loop exit
PB: predicated region body
PF: predicated region fallthrough
CT: control target
= control target key end

     0   :  { %16 = vsyncpa [#allocation5], 0  ;;  %s2988_s0 = inlined_call_operand.vmem [shape: f32[2,16,32], index: 0, kind: input, shape index: {}]   ;;  %s2989_s1 = inlined_call_operand.vmem [shape: bf16[32,96], index: 1, kind: input, shape index: {}]   ;;  %s2990_s2 = inlined_call_operand.vmem [shape: bf16[4,8,32], index: 2, kind: input, shape index: {}]   ;;  %s2991_s3 = inlined_call_operand.vmem [shape: f32[1,32], index: 3, kind: input, shape index: {}]   ;;  %s2992_s4 = inlined_call_operand.vmem [shape: f32[1,32], index: 4, kind: input, shape index: {}]   ;;  %s2993_s5 = inlined_call_operand.vmem [shape: f32[1,32], index: 5, kind: input, shape index: {}]   ;;  %s2994_s6 = inlined_call_operand.vmem [shape: f32[1,32], index: 6, kind: input, shape index: {}]   ;;  %s2995_s7 = inlined_call_operand.vmem [shape: bf16[32,128], index: 7, kind: input, shape index: {}]   ;;  %s2996_s8 = inlined_call_operand.vmem [shape: f32[1,128], index: 8, kind: input, shape index: {}]   ;;  %s2997_s9 = inlined_call_operand.vmem [shape: bf16[128,32], index: 9, kind: input, shape index: {}]   ;;  %s2998_s10 = inlined_call_operand.vmem [shape: f32[1,32], index: 10, kind: input, shape index: {}]   ;;  %s2999_s11 = inlined_call_operand.hbm [shape: f32[2,16,32], index: 11, kind: output, shape index: {}]  }
   0x1   :  { %18 = vsyncpa [#allocation5 + $0x1], 0  ;;  %s2361_s17 = smov 0   ;;  %s2363_s18 = smov 0  }
   0x2   :  { %s2365_s19 = smov 0   ;;  %s2367_s20 = smov 0  }
   0x3   :  { %s2369_s21 = smov 0   ;;  %s2371_s22 = smov 0  }
   0x4   :  { %s2373_s23 = smov 0   ;;  %s2375_s24 = smov 0  }
   0x5 LB: > { %3006 = sst [smem:[#allocation7_spill]] %s2187_s19  ;;  %s1643_s25 = sadd.s32 4294967295, %s2207_s24   ;;  %s2207_s24 = sphi %s2375_s24, %s24_s24   ;;  %s2203_s23 = sphi %s2373_s23, %s3046_s23   ;;  %s2199_s22 = sphi %s2371_s22, %s3045_s22   ;;  %s2195_s21 = sphi %s2369_s21, %s3044_s21   ;;  %s2191_s20 = sphi %s2367_s20, %s3049_s20   ;;  %s2187_s19 = sphi %s2365_s19, %s3042_s19   ;;  %s2183_s18 = sphi %s2363_s18, %s3048_s18   ;;  %s2179_s17 = sphi %s2361_s17, %s3047_s17  }
   0x6   : > { %3007 = sst [smem:[#allocation8_spill]] %s2199_s22  ;;  %s1644_s26 = sadd.s32 4294967294, %s2207_s24  }
   0x7   : > { %3008 = sst [smem:[#allocation9_spill]] %s2203_s23  ;;  %s33_s27 = sadd.s32 1, %s2199_s22 }
   0x8   : > { %p34_p0 = scmp.ge.s32.totalorder %s33_s27, 2  ;;  %s36_s28 = sadd.s32 1, %s2203_s23 }
   0x9   : > { %p293_p1 = scmp.ne.s32.totalorder %s2187_s19, %s2183_s18  ;;  %p294_p2 = scmp.eq.s32.totalorder %s1643_s25, 3 }
   0xa   : > { %s3051_s27 = smov (%p34_p0, %s33_s27), 0  ;;  %s3053_s28 = smov (!%p34_p0, %s36_s28), %s2203_s23 }
   0xb   : > { %3009 = sst [smem:[#allocation10_spill]] %s3051_s27  ;;  %s279_s29 = ssub.s32 %s2199_s22, %s3051_s27 }
   0xc   : > { %p2412_p3 = por %p294_p2, %p293_p1  ;;  %p38_p4 = scmp.ge.s32.totalorder %s3053_s28, 2 }
   0xd   : > { %p299_p5 = scmp.ne.s32.totalorder %s2183_s18, %s2179_s17  ;;  %p300_p6 = scmp.eq.s32.totalorder %s1644_s26, 3 }
   0xe   : > { %p1647_p7 = scmp.ge.s32.totalorder %s2207_s24, 1  ;;  %s3055_s28 = smov (%p38_p4, %s3053_s28), 0 }
   0xf   : > { %3011 = sst [smem:[#allocation11_spill]] %s3055_s28  ;;  %p2421_p8 = por %p300_p6, %p299_p5 }
  0x10   : > { %p359_p9 = scmp.lt.s32.totalorder %s2207_s24, 5  ;;  %s278_s13 = ssub.s32 %s2203_s23, %s3055_s28 }
  0x11   : > { %s3012_s12 = scalar_select %p2421_p8, 1, 0 }
  0x12   : > { %s283_s14 = sadd.s32 1, %s2187_s19  ;;  %s280_s15 = sor.u32 %s279_s29, %s278_s13 }
  0x13   : > { %3013 = sst [smem:[#allocation12_spill]] %s3012_s12  ;;  %p360_p10 = pnand %p1647_p7, %p359_p9 }
  0x14   : > { %p281_p11 = scmp.eq.s32.totalorder %s280_s15, 0  ;;  %s399_s25 = sand.u32 (!%p360_p10), 1, %s2183_s18  }
  0x15   : > { %363 = sbr.rel (%p360_p10) target bundleno = 1900 (0x76c), region = 64  ;;  %p402_p12 = scmp.lt.s32.totalorder (!%p360_p10), %s2195_s21, 1 }
  0x16   : > { %s2430_s16 = scalar_select %p281_p11, %s2187_s19, %s283_s14  }
  0x17   : > { %s2439_s28 = sshll.u32 (!%p360_p10), %s399_s25, 3  ;;  %p404_p13 = scmp.lt.s32.totalorder (!%p360_p10), %s2191_s20, 1 }
  0x18   : > { %3014 = sst [smem:[#allocation13_spill]] %s2430_s16  ;;  %s2293_s26 = smov (!%p360_p10), 64  }
  0x19   : > { %s2294_s29 = smov (!%p360_p10), 104   ;;  %s2296_s19 = smov (!%p360_p10), 96  }
  0x1a   : > { %v1729_v0 = vld [vmem:[%s2989_s1 + $0x8] sm:$0xff]  ;;  %v1728_v1 = vld [vmem:[%s2989_s1] sm:$0xff]  ;;  %s403_s14 = scalar_select %p402_p12, %s2195_s21, 1  ;;  %vm429_vm0 = vcmask 261120   ;;  %v2298_v7 = vmov 1983009808  }
  0x1b   : > { %439 = vmatpush.bf16.msra.mxu0 %v1729_v0  ;;  %s405_s15 = scalar_select %p404_p13, %s2191_s20, 1  ;;  %v468_v8 = vunpack.c.l.s4 %v2298_v7  ;;  %v2299_v16 = vmov 1934713408   ;;  %vm477_vm1 = vcmask 1047556   ;;  %vm824_vm2 = vcmask 60416  }
  0x1c   : > { %s1649_s23 = sshll.u32 %s403_s14, 1  ;;  %v482_v17 = vunpack.c.l.s4 %v2299_v16  ;;  %s842_s12 = sadd.s32 1, %s2191_s20 }
  0x1d   : > { %s407_s22 = sadd.s32 %s1649_s23, %s405_s15  ;;  %s2297_s23 = smov 112   ;;  %v2457_v11 = vunpack.c.0.s8 %v468_v8 }
  0x1e   : > { %s1650_s16 = sshll.u32 %s407_s22, 3  ;;  %s2295_s22 = smov 120   ;;  %v2462_v24 = vunpack.c.0.s8 %v482_v17 }
  0x1f   : > { %440 = vmatpush.bf16.msra.mxu0 %v1728_v1  ;;  %s409_s27 = scalar_lea.vmem %s2988_s0, %s1650_s16  ;;  %s1663_s16 = sshll.u32 %s2191_s20, 3 }
  0x20   : > { %v2450_v2 = vld [vmem:[%s409_s27] sm:$0xff]  ;;  %s1730_s13 = sshll.u32 %s2191_s20, 4  ;;  %s401_s27 = scalar_lea.vmem [#allocation4], %s2439_s28 }
  0x21   : > { %v412_v3 = vpack.c.bf16 %v2450_v2, %v2450_v2  ;;  %s823_s14 = scalar_lea.vmem [#allocation2], %s1730_s13  ;;  %s830_s15 = scalar_lea.vmem [#allocation3], %s1730_s13 }
  0x22   : > { %p1664_p0 = scmp.le.s32.totalorder %s842_s12, 0 }
  0x23   : > { %1659 = vmatmul.msk.bf16.vlgmr.msra.gmra.mxu0 %vm429_vm0, %v412_v3 }
  0xa0   : > { %v442_v4 = vpop.f32.mrf.mxu0 }
  0xa1   : > { %v446_v5 = vpack.c.bf16 %v442_v4, %v442_v4 }
  0xa3   : > { %695 = vrot.lane.b32.xlu2 %v446_v5, %s2293_s26  ;;  %452 = vrot.lane.b32.xlu1 %v446_v5, %s2294_s29  ;;  %v457_v13 = vshrl.u32 %v446_v5, 16 }
  0xa4   : > { %448 = vrot.lane.b32.xlu0 %v446_v5, %s2295_s22 }
  0xa8   : > { %v444_v6 = vpop.f32.mrf.mxu0 }
  0xab   : > { %569 = vrot.lane.b32.xlu1 %v446_v5, %s2296_s19 }
  0xac   : > { %450 = vrot.lane.b32.xlu0 %v446_v5, %s2297_s23 }
 0x115   : > { %v453_v15 = vpop.permute.xlu1 %452 }
 0x116   : > { %v449_v9 = vpop.permute.xlu0 %448  ;;  %v464_v20 = vshrl.u32 %v453_v15, 16 }
 0x117   : > { %v458_v10 = vshrl.u32 %v449_v9, 16  ;;  %697 = vrot.lane.b32.xlu0 %v449_v9, %s2293_s26  ;;  %571 = vrot.lane.b32.xlu2 %v449_v9, %s2296_s19  ;;  %v456_v12 = vpack.i.b16 %v449_v9, %v446_v5 }
 0x119   : > { %v459_v14 = vpack.i.b16 %v458_v10, %v457_v13  ;;  %v470_v18 = vperm.slane %v456_v12, %v2457_v11 }
 0x11b   : > { %v497_v21 = vperm.slane %v459_v14, %v2457_v11  ;;  %v479_v25 = vrot.slane %v470_v18, 4  ;;  %v696_v14 = vpop.permute.xlu2 %695 }
 0x11d   : > { %v505_v28 = vrot.slane %v497_v21, 4  ;;  %v570_v17 = vpop.permute.xlu1 %569 }
 0x11e   : > { %v451_v19 = vpop.permute.xlu0 %450 }
 0x11f   : > { %v462_v22 = vpack.i.b16 %v453_v15, %v451_v19  ;;  %v463_v23 = vshrl.u32 %v451_v19, 16  ;;  %575 = vrot.lane.b32.xlu2 %v453_v15, %s2296_s19  ;;  %699 = vrot.lane.b32.xlu0 %v451_v19, %s2293_s26 }
 0x120   : > { %573 = vrot.lane.b32.xlu1 %v451_v19, %s2296_s19 }
 0x121   : > { %v465_v26 = vpack.i.b16 %v464_v20, %v463_v23  ;;  %v475_v27 = vperm.slane %v462_v22, %v2457_v11  ;;  %v580_v20 = vshrl.u32 %v570_v17, 16  ;;  %v706_v22 = vshrl.u32 %v696_v14, 16 }
 0x123   : > { %v476_v29 = vrot.slane %v475_v27, 4  ;;  %v480_v30 = vsel %vm477_vm1, %v475_v27, %v479_v25  ;;  %v502_v31 = vperm.slane %v465_v26, %v2457_v11 }
 0x124   : > { %v488_v32 = vperm.slane %v480_v30, %v2462_v24 }
 0x125   : > { %v478_v33 = vsel %vm477_vm1, %v476_v29, %v470_v18  ;;  %v503_v34 = vrot.slane %v502_v31, 4  ;;  %v506_v35 = vsel %vm477_vm1, %v502_v31, %v505_v28 }
 0x126   : > { %v484_v36 = vperm.slane %v478_v33, %v2462_v24  ;;  %v491_v37 = vrot.slane %v488_v32, 4  ;;  %v514_v38 = vperm.slane %v506_v35, %v2462_v24 }
 0x127   : > { %v504_v39 = vsel %vm477_vm1, %v503_v34, %v497_v21 }
 0x128   : > { %v489_v40 = vrot.slane %v484_v36, 4  ;;  %v492_v41 = vsel %vm477_vm1, 0, %v491_v37  ;;  %v510_v42 = vperm.slane %v504_v39, %v2462_v24  ;;  %v517_v43 = vrot.slane %v514_v38, 4  ;;  %701 = vrot.lane.b32.xlu1 %v453_v15, %s2293_s26  ;;  %s2641_s26 = smov (!%p1664_p0), 0  }
 0x129   : > { %v519_v44 = vsel %vm477_vm1, %v491_v37, %v484_v36  ;;  %v524_v45 = vrot.slane %v492_v41, 4 }
 0x12a   : > { %v490_v46 = vsel %vm477_vm1, 0, %v489_v40  ;;  %v515_v47 = vrot.slane %v510_v42, 4  ;;  %v518_v48 = vsel %vm477_vm1, 0, %v517_v43  ;;  %v538_v50 = vsel %vm477_vm1, %v517_v43, %v510_v42 }
 0x12b   : > { %v525_v49 = vsel %vm477_vm1, %v524_v45, %v490_v46  ;;  %v543_v51 = vrot.slane %v518_v48, 4  ;;  %v523_v55 = vperm.slane %v519_v44, %v2457_v11  ;;  %v542_v59 = vperm.slane %v538_v50, %v2457_v11 }
 0x12c   : > { %v516_v52 = vsel %vm477_vm1, 0, %v515_v47  ;;  %v529_v53 = vperm.slane %v525_v49, %v2457_v11  ;;  %v836_v47 = vlaneseq }
 0x12d   : > { %v544_v54 = vsel %vm477_vm1, %v543_v51, %v516_v52 }
 0x12e   : > { %v530_v56 = vrot.slane %v529_v53, 4  ;;  %v548_v57 = vperm.slane %v544_v54, %v2457_v11 }
 0x130   : > { %v531_v58 = vsel %vm477_vm1, %v530_v56, %v523_v55  ;;  %v549_v60 = vrot.slane %v548_v57, 4  ;;  %v837_v56 = vshrl.u32 %v836_v47, 7 }
 0x131   : > { %v2489_v61 = vperm.slane %v531_v58, %v2462_v24 }
 0x132   : > { %v550_v62 = vsel %vm477_vm1, %v549_v60, %v542_v59  ;;  %v838_v60 = vstv %s1663_s16 }
 0x133   : > { %v536_v63 = vrot.slane %v2489_v61, 4  ;;  %v2494_v0 = vperm.slane %v550_v62, %v2462_v24  ;;  %v560_v1 = vshrl.u32 %v2489_v61, 16 }
 0x135   : > { %v2498_v3 = vsel %vm477_vm1, 0, %v536_v63  ;;  %v555_v4 = vrot.slane %v2494_v0, 4  ;;  %v559_v5 = vpack.i.b16 %v2494_v0, %v2489_v61  ;;  %v561_v6 = vshrl.u32 %v2494_v0, 16 }
 0x136   : > { %v566_v10 = vshrl.u32 %v2498_v3, 16 }
 0x137   : > { %v2505_v7 = vsel %vm477_vm1, 0, %v555_v4  ;;  %v2507_v8 = vpack.i.b16 %v561_v6, %v560_v1 }
 0x138   : > { %v565_v9 = vpack.i.b16 %v2505_v7, %v2498_v3  ;;  %v567_v12 = vshrl.u32 %v2505_v7, 16 }
 0x13a   : > { %v2513_v13 = vpack.i.b16 %v567_v12, %v566_v10 }
 0x171   : > { %v572_v15 = vpop.permute.xlu2 %571 }
 0x172   : > { %v581_v18 = vshrl.u32 %v572_v15, 16  ;;  %v579_v21 = vpack.i.b16 %v572_v15, %v570_v17 }
 0x174   : > { %v582_v23 = vpack.i.b16 %v581_v18, %v580_v20  ;;  %v593_v28 = vperm.slane %v579_v21, %v2457_v11 }
 0x176   : > { %v619_v30 = vperm.slane %v582_v23, %v2457_v11  ;;  %v601_v36 = vrot.slane %v593_v28, 4 }
 0x178   : > { %v627_v40 = vrot.slane %v619_v30, 4 }
 0x179   : > { %v576_v25 = vpop.permute.xlu2 %575 }
 0x17a   : > { %v587_v31 = vshrl.u32 %v576_v25, 16 }
 0x189   : > { %v698_v16 = vpop.permute.xlu0 %697 }
 0x18a   : > { %v707_v19 = vshrl.u32 %v698_v16, 16  ;;  %v705_v26 = vpack.i.b16 %v698_v16, %v696_v14 }
 0x18c   : > { %v708_v27 = vpack.i.b16 %v707_v19, %v706_v22  ;;  %v719_v34 = vperm.slane %v705_v26, %v2457_v11 }
 0x18e   : > { %v2520_v35 = vperm.slane %v708_v27, %v2457_v11  ;;  %v727_v44 = vrot.slane %v719_v34, 4 }
 0x190   : > { %v753_v45 = vrot.slane %v2520_v35, 4 }
 0x191   : > { %v700_v39 = vpop.permute.xlu0 %699 }
 0x192   : > { %v574_v29 = vpop.permute.xlu1 %573  ;;  %v712_v51 = vshrl.u32 %v700_v39, 16 }
 0x193   : > { %v585_v32 = vpack.i.b16 %v576_v25, %v574_v29  ;;  %v586_v33 = vshrl.u32 %v574_v29, 16 }
 0x195   : > { %v588_v37 = vpack.i.b16 %v587_v31, %v586_v33  ;;  %v598_v38 = vperm.slane %v585_v32, %v2457_v11 }
 0x197   : > { %v599_v41 = vrot.slane %v598_v38, 4  ;;  %v602_v42 = vsel %vm477_vm1, %v598_v38, %v601_v36  ;;  %v624_v43 = vperm.slane %v588_v37, %v2457_v11  ;;  %v2552_v37 = vadd.s32 %v838_v60, %v837_v56 }
 0x198   : > { %v610_v46 = vperm.slane %v602_v42, %v2462_v24 }
 0x199   : > { %v600_v48 = vsel %vm477_vm1, %v599_v41, %v593_v28  ;;  %v625_v49 = vrot.slane %v624_v43, 4  ;;  %v628_v50 = vsel %vm477_vm1, %v624_v43, %v627_v40  ;;  %v2555_v41 = vand.u32 127, %v836_v47 }
 0x19a   : > { %v606_v52 = vperm.slane %v600_v48, %v2462_v24  ;;  %v613_v53 = vrot.slane %v610_v46, 4  ;;  %v636_v54 = vperm.slane %v628_v50, %v2462_v24  ;;  %v702_v55 = vpop.permute.xlu1 %701 }
 0x19b   : > { %v626_v57 = vsel %vm477_vm1, %v625_v49, %v619_v30  ;;  %v711_v58 = vpack.i.b16 %v702_v55, %v700_v39  ;;  %v713_v59 = vshrl.u32 %v702_v55, 16 }
 0x19c   : > { %v611_v62 = vrot.slane %v606_v52, 4  ;;  %v614_v63 = vsel %vm477_vm1, 0, %v613_v53  ;;  %v632_v1 = vperm.slane %v626_v57, %v2462_v24  ;;  %v639_v4 = vrot.slane %v636_v54, 4 }
 0x19d   : > { %v641_v6 = vsel %vm477_vm1, %v613_v53, %v606_v52  ;;  %v646_v10 = vrot.slane %v614_v63, 4  ;;  %v714_v12 = vpack.i.b16 %v713_v59, %v712_v51  ;;  %v724_v14 = vperm.slane %v711_v58, %v2457_v11 }
 0x19e   : > { %v612_v15 = vsel %vm477_vm1, 0, %v611_v62  ;;  %v637_v16 = vrot.slane %v632_v1, 4  ;;  %v640_v17 = vsel %vm477_vm1, 0, %v639_v4  ;;  %v645_v18 = vperm.slane %v641_v6, %v2457_v11 }
 0x19f   : > { %v647_v19 = vsel %vm477_vm1, %v646_v10, %v612_v15  ;;  %v660_v20 = vsel %vm477_vm1, %v639_v4, %v632_v1  ;;  %v665_v21 = vrot.slane %v640_v17, 4  ;;  %v725_v22 = vrot.slane %v724_v14, 4 }
 0x1a0   : > { %v638_v23 = vsel %vm477_vm1, 0, %v637_v16  ;;  %v651_v25 = vperm.slane %v647_v19, %v2457_v11  ;;  %v664_v26 = vperm.slane %v660_v20, %v2457_v11  ;;  %v728_v27 = vsel %vm477_vm1, %v724_v14, %v727_v44 }
 0x1a1   : > { %v666_v28 = vsel %vm477_vm1, %v665_v21, %v638_v23  ;;  %v726_v29 = vsel %vm477_vm1, %v725_v22, %v719_v34  ;;  %v736_v30 = vperm.slane %v728_v27, %v2462_v24  ;;  %v750_v31 = vperm.slane %v714_v12, %v2457_v11 }
 0x1a2   : > { %v652_v32 = vrot.slane %v651_v25, 4  ;;  %v670_v33 = vperm.slane %v666_v28, %v2457_v11  ;;  %v732_v36 = vperm.slane %v726_v29, %v2462_v24 }
 0x1a3   : > { %v739_v38 = vrot.slane %v736_v30, 4  ;;  %v751_v39 = vrot.slane %v750_v31, 4  ;;  %v754_v40 = vsel %vm477_vm1, %v750_v31, %v753_v45 }
 0x1a4   : > { %v653_v42 = vsel %vm477_vm1, %v652_v32, %v645_v18  ;;  %v671_v34 = vrot.slane %v670_v33, 4  ;;  %v737_v43 = vrot.slane %v732_v36, 4  ;;  %v762_v44 = vperm.slane %v754_v40, %v2462_v24 }
 0x1a5   : > { %v657_v46 = vperm.slane %v653_v42, %v2462_v24  ;;  %v740_v48 = vsel %vm477_vm1, 0, %v739_v38  ;;  %v752_v49 = vsel %vm477_vm1, %v751_v39, %v2520_v35  ;;  %v767_v63 = vsel %vm477_vm1, %v739_v38, %v732_v36 }
 0x1a6   : > { %v672_v50 = vsel %vm477_vm1, %v671_v34, %v664_v26  ;;  %v758_v45 = vperm.slane %v752_v49, %v2462_v24  ;;  %v765_v47 = vrot.slane %v762_v44, 4  ;;  %v738_v53 = vsel %vm477_vm1, 0, %v737_v43 }
 0x1a7   : > { %v658_v51 = vrot.slane %v657_v46, 4  ;;  %v676_v52 = vperm.slane %v672_v50, %v2462_v24  ;;  %v683_v54 = vshrl.u32 %v657_v46, 16  ;;  %v772_v57 = vrot.slane %v740_v48, 4 }
 0x1a8   : > { %v763_v55 = vrot.slane %v758_v45, 4  ;;  %v766_v56 = vsel %vm477_vm1, 0, %v765_v47  ;;  %v771_v17 = vperm.slane %v767_v63, %v2457_v11  ;;  %v786_v19 = vsel %vm477_vm1, %v765_v47, %v758_v45 }
 0x1a9   : > { %v659_v58 = vsel %vm477_vm1, 0, %v658_v51  ;;  %v677_v35 = vrot.slane %v676_v52, 4  ;;  %v681_v59 = vpack.i.b16 %v676_v52, %v657_v46  ;;  %v684_v60 = vshrl.u32 %v676_v52, 16 }
 0x1aa   : > { %v764_v62 = vsel %vm477_vm1, 0, %v763_v55  ;;  %v773_v1 = vsel %vm477_vm1, %v772_v57, %v738_v53  ;;  %v791_v12 = vrot.slane %v766_v56, 4  ;;  %v691_v15 = vshrl.u32 %v659_v58, 16 }
 0x1ab   : > { %v678_v4 = vsel %vm477_vm1, 0, %v677_v35  ;;  %v685_v6 = vpack.i.b16 %v684_v60, %v683_v54  ;;  %825 = vst.msk [vmem:[%s823_s14] sm:$0xf] %vm824_vm2, %v681_v59  ;;  %v777_v10 = vperm.slane %v773_v1, %v2457_v11  ;;  %v790_v26 = vperm.slane %v786_v19, %v2457_v11 }
 0x1ac   : > { %v689_v14 = vpack.i.b16 %v678_v4, %v659_v58  ;;  %v692_v16 = vshrl.u32 %v678_v4, 16  ;;  %v792_v20 = vsel %vm477_vm1, %v791_v12, %v764_v62  ;;  %v2601_v43 = vmov 0.0  }
 0x1ad   : > { %826 = vst.msk [vmem:[%s823_s14 + $0x4] sm:$0xf] %vm824_vm2, %v685_v6  ;;  %v778_v18 = vrot.slane %v777_v10, 4  ;;  %v796_v22 = vperm.slane %v792_v20, %v2457_v11  ;;  %v2603_v44 = vmov 0.0   ;;  %v2605_v46 = vmov 0.0  }
 0x1ae   : > { %v693_v21 = vpack.i.b16 %v692_v16, %v691_v15  ;;  %827 = vst.msk [vmem:[%s823_s14 + $0x8] sm:$0xf] %vm824_vm2, %v689_v14  ;;  %v2607_v48 = vmov 0.0   ;;  %v2609_v49 = vmov 0.0   ;;  %v2611_v50 = vmov 0.0  }
 0x1af   : > { %v779_v23 = vsel %vm477_vm1, %v778_v18, %v771_v17  ;;  %v797_v27 = vrot.slane %v796_v22, 4  ;;  %v2613_v45 = vmov 0.0   ;;  %v2615_v47 = vmov 0.0  }
 0x1b0   : > { %828 = vst.msk [vmem:[%s823_s14 + $0xc] sm:$0xf] %vm824_vm2, %v693_v21  ;;  %v783_v25 = vperm.slane %v779_v23, %v2462_v24 }
 0x1b1   : > { %v798_v29 = vsel %vm477_vm1, %v797_v27, %v790_v26 }
 0x1b2   : > { %v784_v28 = vrot.slane %v783_v25, 4  ;;  %v802_v30 = vperm.slane %v798_v29, %v2462_v24  ;;  %v809_v31 = vshrl.u32 %v783_v25, 16 }
 0x1b4   : > { %v785_v32 = vsel %vm477_vm1, 0, %v784_v28  ;;  %v803_v33 = vrot.slane %v802_v30, 4  ;;  %v807_v36 = vpack.i.b16 %v802_v30, %v783_v25  ;;  %v810_v38 = vshrl.u32 %v802_v30, 16 }
 0x1b5   : > { %v817_v42 = vshrl.u32 %v785_v32, 16 }
 0x1b6   : > { %v804_v39 = vsel %vm477_vm1, 0, %v803_v33  ;;  %v811_v40 = vpack.i.b16 %v810_v38, %v809_v31  ;;  %831 = vst.msk [vmem:[%s830_s15] sm:$0xf] %vm824_vm2, %v807_v36 }
 0x1b7   : > { %v815_v11 = vpack.i.b16 %v804_v39, %v785_v32  ;;  %v818_v34 = vshrl.u32 %v804_v39, 16  ;;  %1584 = sbr.rel (%p1664_p0) target bundleno = 872 (0x368), region = 104 }
 0x1b8   : > { %832 = vst.msk [vmem:[%s830_s15 + $0x4] sm:$0xf] %vm824_vm2, %v811_v40 }
 0x1b9   : > { %v819_v24 = vpack.i.b16 %v818_v34, %v817_v42  ;;  %833 = vst.msk [vmem:[%s830_s15 + $0x8] sm:$0xf] %vm824_vm2, %v815_v11 }
 0x1bb   : > { %834 = vst.msk [vmem:[%s830_s15 + $0xc] sm:$0xf] %vm824_vm2, %v819_v24 }
 0x1bc   : > { %v2617_v51 = vmov 0.0   ;;  %v2619_v52 = vmov 0.0   ;;  %v2621_v53 = vmov 0.0   ;;  %v2623_v54 = vmov 0.0  }
 0x1bd   : > { %v2625_v55 = vmov 0.0   ;;  %v2627_v56 = vmov 0.0   ;;  %v2629_v57 = vmov 0.0   ;;  %v2631_v58 = vmov 0.0  }
 0x1be   : > { %v2633_v35 = vmov -inf   ;;  %v2635_v59 = vmov -inf   ;;  %v2637_v60 = vmov -inf   ;;  %v2639_v62 = vmov -inf  }
 0x1bf LB: >> { %s1732_s29 = sshll.u32 %s2259_s26, 4  ;;  %vm874_vm3 = vcmask 64512   ;;  %s1672_s19 = sshll.u32 %s2259_s26, 3  ;;  %vm1030_vm5 = vcmask 1043456   ;;  %s2259_s26 = sphi %s2641_s26, %s846_s26   ;;  %v2255_v62 = vphi %v2639_v62, %v3027_v62   ;;  %v2251_v60 = vphi %v2637_v60, %v3026_v60   ;;  %v2247_v59 = vphi %v2635_v59, %v3025_v59   ;;  %v2243_v35 = vphi %v2633_v35, %v3024_v35   ;;  %v2239_v58 = vphi %v2631_v58, %v3023_v58   ;;  %v2235_v57 = vphi %v2629_v57, %v3022_v57   ;;  %v2231_v56 = vphi %v2627_v56, %v3021_v56   ;;  %v2227_v55 = vphi %v2625_v55, %v3020_v55   ;;  %v2223_v54 = vphi %v2623_v54, %v3019_v54   ;;  %v2219_v53 = vphi %v2621_v53, %v3018_v53   ;;  %v2215_v52 = vphi %v2619_v52, %v3017_v52   ;;  %v2211_v51 = vphi %v2617_v51, %v3016_v51  }
 0x1c0   : >> { %s863_s22 = scalar_lea.vmem [#allocation2], %s1732_s29  ;;  %v952_v16 = vstv %s1672_s19  ;;  %s869_s23 = scalar_lea.vmem [#allocation3], %s1732_s29 }
 0x1c1   : >> { %v864_v63 = vld [vmem:[%s863_s22] sm:$0xf]  ;;  %v866_v1 = vld [vmem:[%s863_s22 + $0x8] sm:$0xf]  ;;  %v867_v4 = vld [vmem:[%s863_s22 + $0xc] sm:$0xf]  ;;  %v953_v17 = vadd.s32 %v952_v16, %v2555_v41 }
 0x1c2   : >> { %v879_v6 = vsel %vm874_vm3, %v864_v63, 0  ;;  %v917_v10 = vsel %vm874_vm3, %v866_v1, 0  ;;  %v936_v12 = vsel %vm874_vm3, %v867_v4, 0  ;;  %v865_v14 = vld [vmem:[%s863_s22 + $0x4] sm:$0xf]  ;;  %s846_s26 = sadd.s32 1, %s2259_s26  }
 0x1c3   : >> { %888 = vmatpush.bf16.xpose.msra.mxu0 %v879_v6  ;;  %926 = vmatpush.bf16.xpose.msra.mxu2 %v917_v10  ;;  %v898_v15 = vsel %vm874_vm3, %v865_v14, 0  ;;  %vm954_vm4 = vcmp.le.s32.totalorder %v953_v17, %v2552_v37  ;;  %v870_v38 = vld [vmem:[%s869_s23] sm:$0xf]  ;;  %v872_v40 = vld [vmem:[%s869_s23 + $0x8] sm:$0xf]  ;;  %p2753_p1 = scmp.ge.s32.totalorder %s846_s26, %s842_s12 }
 0x1c4   : >> { %945 = vmatpush.bf16.xpose.msra.mxu3 %v936_v12  ;;  %907 = vmatpush.bf16.xpose.msra.mxu1 %v898_v15  ;;  %v1032_v39 = vsel %vm1030_vm5, %v870_v38, 0  ;;  %v873_v11 = vld [vmem:[%s869_s23 + $0xc] sm:$0xf]  ;;  %v1070_v42 = vsel %vm1030_vm5, %v872_v40, 0  ;;  %v871_v24 = vld [vmem:[%s869_s23 + $0x4] sm:$0xf] }
 0x1c5   : >> { %v1089_v34 = vsel %vm1030_vm5, %v873_v11, 0  ;;  %v1051_v43 = vsel %vm1030_vm5, %v871_v24, 0 }
 0x1ca   : >> { %1668 = vmatmul.msk.bf16.vlgmr.msra.gmra.mxu0 %vm874_vm3, %v559_v5  ;;  %1670 = vmatmul.msk.bf16.vlgmr.msra.gmra.mxu2 %vm874_vm3, %v565_v9 }
 0x1cb   : >> { %1671 = vmatmul.msk.bf16.vlgmr.msra.gmra.mxu3 %vm874_vm3, %v2513_v13  ;;  %1669 = vmatmul.msk.bf16.vlgmr.msra.gmra.mxu1 %vm874_vm3, %v2507_v8 }
 0x1cc   : >> { %1041 = vmatpush.bf16.msrb.mxu0 %v1032_v39  ;;  %1079 = vmatpush.bf16.msrb.mxu2 %v1070_v42 }
 0x1cd   : >> { %1098 = vmatpush.bf16.msrb.mxu3 %v1089_v34  ;;  %1060 = vmatpush.bf16.msrb.mxu1 %v1051_v43 }
 0x247   : >> { %v890_v18 = vpop.f32.mrf.mxu0 }
 0x248   : >> { %v955_v19 = vsel %vm954_vm4, %v890_v18, -inf  ;;  %v909_v20 = vpop.f32.mrf.mxu1 }
 0x249   : >> { %v959_v21 = vsel %vm874_vm3, %v955_v19, -inf  ;;  %v956_v22 = vsel %vm954_vm4, %v909_v20, -inf }
 0x24a   : >> { %960 = vmax.xlane.f32.xlu1 %v959_v21  ;;  %v962_v28 = vsel %vm874_vm3, %v956_v22, -inf }
 0x24d   : >> { %v928_v23 = vpop.f32.mrf.mxu2 }
 0x24e   : >> { %v957_v25 = vsel %vm954_vm4, %v928_v23, -inf  ;;  %v947_v26 = vpop.f32.mrf.mxu3 }
 0x24f   : >> { %v965_v27 = vsel %vm874_vm3, %v957_v25, -inf  ;;  %v892_v29 = vpop.f32.mrf.mxu0  ;;  %v958_v31 = vsel %vm954_vm4, %v947_v26, -inf }
 0x250   : >> { %966 = vmax.xlane.f32.xlu0 %v965_v27  ;;  %v911_v30 = vpop.f32.mrf.mxu1  ;;  %v968_v33 = vsel %vm874_vm3, %v958_v31, -inf }
 0x252   : >> { %963 = vmax.xlane.f32.xlu1 %v962_v28 }
 0x255   : >> { %v930_v32 = vpop.f32.mrf.mxu2 }
 0x256   : >> { %v949_v36 = vpop.f32.mrf.mxu3 }
 0x258   : >> { %969 = vmax.xlane.f32.xlu0 %v968_v33 }
 0x2bd   : >> { %v961_v44 = vpop.xlane.xlu1 %960 }
 0x2be   : >> { %v2711_v46 = vmax.f32 %v2255_v62, %v961_v44  }
 0x2c0   : >> { %v975_v48 = vsub.f32 %v2255_v62, %v2711_v46  ;;  %v987_v49 = vsub.f32 %v955_v19, %v2711_v46 }
 0x2c2   : >> { %v991_v50 = vmul.f32 1.442695, %v987_v49  ;;  %v979_v30 = vmul.f32 1.442695, %v975_v48 }
 0x2c3   : >> { %v967_v45 = vpop.xlane.xlu0 %966 }
 0x2c4   : >> { %v2717_v47 = vmax.f32 %v2247_v59, %v967_v45   ;;  %1991 = vpow2.f32 %v991_v50 }
 0x2c5   : >> { %v964_v63 = vpop.xlane.xlu1 %963 }
 0x2c6   : >> { %v977_v1 = vsub.f32 %v2247_v59, %v2717_v47  ;;  %v989_v4 = vsub.f32 %v957_v25, %v2717_v47  ;;  %v2723_v6 = vmax.f32 %v2251_v60, %v964_v63  }
 0x2c8   : >> { %v995_v10 = vmul.f32 1.442695, %v989_v4  ;;  %v976_v62 = vsub.f32 %v2251_v60, %v2723_v6  ;;  %v988_v12 = vsub.f32 %v956_v22, %v2723_v6 }
 0x2ca   : >> { %v993_v14 = vmul.f32 1.442695, %v988_v12  ;;  %v1992_v15 = vpop.eup %1991  ;;  %1993 = vpow2.f32 %v995_v10  ;;  %v981_v32 = vmul.f32 1.442695, %v976_v62 }
 0x2cb   : >> { %v970_v16 = vpop.xlane.xlu0 %969  ;;  %v1003_v59 = vsel %vm874_vm3, %v1992_v15, 0.0  ;;  %v1023_v18 = vpack.c.bf16 %v1992_v15, %v1992_v15 }
 0x2cc   : >> { %v2729_v17 = vmax.f32 %v2243_v35, %v970_v16   ;;  %1995 = vpow2.f32 %v993_v14  ;;  %1004 = vadd.xlane.f32.xlu2 %v1003_v59 }
 0x2cd   : >> { %1673 = vmatmul.msk.bf16.vlgmr.msrb.gmra.mxu0 %vm874_vm3, %v1023_v18 }
 0x2ce   : >> { %v978_v19 = vsub.f32 %v2243_v35, %v2729_v17  ;;  %v990_v20 = vsub.f32 %v958_v31, %v2729_v17  ;;  %v983_v31 = vmul.f32 1.442695, %v977_v1 }
 0x2d0   : >> { %v997_v60 = vmul.f32 1.442695, %v990_v20  ;;  %v1994_v21 = vpop.eup %1993  ;;  %v985_v38 = vmul.f32 1.442695, %v978_v19 }
 0x2d1   : >> { %v1009_v22 = vsel %vm874_vm3, %v1994_v21, 0.0  ;;  %v1025_v23 = vpack.c.bf16 %v1994_v21, %v1994_v21 }
 0x2d2   : >> { %v1996_v25 = vpop.eup %1995  ;;  %1997 = vpow2.f32 %v997_v60  ;;  %1010 = vadd.xlane.f32.xlu0 %v1009_v22 }
 0x2d3   : >> { %1675 = vmatmul.msk.bf16.vlgmr.msrb.gmra.mxu2 %vm874_vm3, %v1025_v23  ;;  %v1006_v26 = vsel %vm874_vm3, %v1996_v25, 0.0  ;;  %v1024_v27 = vpack.c.bf16 %v1996_v25, %v1996_v25  ;;  %1999 = vpow2.f32 %v979_v30 }
 0x2d4   : >> { %1007 = vadd.xlane.f32.xlu2 %v1006_v26  ;;  %2001 = vpow2.f32 %v983_v31 }
 0x2d5   : >> { %1674 = vmatmul.msk.bf16.vlgmr.msrb.gmra.mxu1 %vm874_vm3, %v1024_v27  ;;  %2003 = vpow2.f32 %v981_v32 }
 0x2d6   : >> { %2005 = vpow2.f32 %v985_v38 }
 0x2d8   : >> { %v1998_v35 = vpop.eup %1997 }
 0x2d9   : >> { %v1012_v28 = vsel %vm874_vm3, %v1998_v35, 0.0  ;;  %v1026_v29 = vpack.c.bf16 %v1998_v35, %v1998_v35  ;;  %v2000_v33 = vpop.eup %1999  ;;  %v3024_v35 = vmov %v2729_v17 }
 0x2da   : >> { %1013 = vadd.xlane.f32.xlu1 %v1012_v28  ;;  %v999_v36 = vmul.f32 %v2239_v58, %v2000_v33  ;;  %v2002_v11 = vpop.eup %2001  ;;  %v1019_v49 = vmul.f32 %v2223_v54, %v2000_v33 }
 0x2db   : >> { %1676 = vmatmul.msk.bf16.vlgmr.msrb.gmra.mxu3 %vm874_vm3, %v1026_v29  ;;  %v2004_v42 = vpop.eup %2003  ;;  %v1001_v34 = vmul.f32 %v2231_v56, %v2002_v11  ;;  %v1021_v56 = vmul.f32 %v2215_v52, %v2002_v11 }
 0x2dc   : >> { %v1000_v43 = vmul.f32 %v2235_v57, %v2004_v42  ;;  %v2006_v48 = vpop.eup %2005  ;;  %v1020_v62 = vmul.f32 %v2219_v53, %v2004_v42 }
 0x2dd   : >> { %v1002_v58 = vmul.f32 %v2227_v55, %v2006_v48  ;;  %v1022_v59 = vmul.f32 %v2211_v51, %v2006_v48 }
 0x33f   : >> { %v1005_v39 = vpop.xlane.xlu2 %1004 }
 0x340   : >> { %v1015_v40 = vadd.f32 %v1005_v39, %v999_v36  }
 0x345   : >> { %v1011_v24 = vpop.xlane.xlu0 %1010 }
 0x346   : >> { %v1017_v50 = vadd.f32 %v1011_v24, %v1001_v34  }
 0x347   : >> { %v1008_v44 = vpop.xlane.xlu2 %1007 }
 0x348   : >> { %v1016_v45 = vadd.f32 %v1008_v44, %v1000_v43  }
 0x34a   : >> { %v1043_v63 = vpop.f32.mrf.mxu0 }
 0x34b   : >> { %v1104_v1 = vadd.f32 %v1043_v63, %v1019_v49  }
 0x34d   : >> { %v1014_v4 = vpop.xlane.xlu1 %1013  ;;  %v3031_v48 = vmov (%p2753_p1), %v1104_v1 }
 0x34e   : >> { %v1018_v10 = vadd.f32 %v1014_v4, %v1002_v58   ;;  %v3023_v58 = vmov %v1015_v40 }
 0x350   : >> { %v3020_v55 = vmov %v1018_v10  ;;  %v3032_v49 = vmov (%p2753_p1), %v1018_v10 }
 0x352   : >> { %v1045_v12 = vpop.f32.mrf.mxu0  ;;  %v1062_v14 = vpop.f32.mrf.mxu1 }
 0x353   : >> { %v1105_v15 = vadd.f32 %v1062_v14, %v1020_v62   ;;  %v3027_v62 = vmov %v2711_v46 }
 0x355   : >> { %v3018_v53 = vmov %v1105_v15  ;;  %v3030_v46 = vmov (%p2753_p1), %v1105_v15 }
 0x356   : >> { %v1081_v16 = vpop.f32.mrf.mxu2 }
 0x357   : >> { %v1106_v18 = vadd.f32 %v1081_v16, %v1021_v56   ;;  %v3021_v56 = vmov %v1017_v50 }
 0x359   : >> { %v3017_v52 = vmov %v1106_v18  ;;  %v3029_v44 = vmov (%p2753_p1), %v1106_v18 }
 0x35a   : >> { %v1064_v57 = vpop.f32.mrf.mxu1 }
 0x35b   : >> { %v3022_v57 = vmov %v1016_v45 }
 0x35e   : >> { %v1083_v19 = vpop.f32.mrf.mxu2  ;;  %v1100_v54 = vpop.f32.mrf.mxu3 }
 0x35f   : >> { %v1107_v20 = vadd.f32 %v1100_v54, %v1022_v59   ;;  %v3019_v54 = vmov %v1104_v1  ;;  %v3025_v59 = vmov %v2717_v47  ;;  %v3033_v47 = vmov (%p2753_p1), %v1015_v40 }
 0x361   : >> { %v3016_v51 = vmov %v1107_v20  ;;  %v3028_v43 = vmov (%p2753_p1), %v1107_v20 }
 0x363   : > { %848 = sbr.rel (!%p2753_p1) target bundleno = 447 (0x1bf), region = 110 }
 0x366   : >> { %v1102_v60 = vpop.f32.mrf.mxu3 }
 0x367   : >> { %v3026_v60 = vmov %v2723_v6 }
 0x368 PF: > { %v1173_v61 = vld [vmem:[%s2990_s2 + $0x4] sm:$0xf]  ;;  %vm1180_vm6 = vcmask 1043456   ;;  %2013 = vrcp.f32 %v2287_v45  ;;  %v1174_v3 = vld [vmem:[%s2990_s2 + $0x8] sm:$0xf]  ;;  %v1133_v41 = vand.u32 2147483648, %v2287_v45  ;;  %vm1127_vm7 = vweird.f32 %v2287_v45  ;;  %v2291_v47 = vphi %v2615_v47, %v3033_v47   ;;  %v2287_v45 = vphi %v2613_v45, %v1016_v45   ;;  %v2283_v50 = vphi %v2611_v50, %v1017_v50   ;;  %v2279_v49 = vphi %v2609_v49, %v3032_v49   ;;  %v2275_v48 = vphi %v2607_v48, %v3031_v48   ;;  %v2271_v46 = vphi %v2605_v46, %v3030_v46   ;;  %v2267_v44 = vphi %v2603_v44, %v3029_v44   ;;  %v2263_v43 = vphi %v2601_v43, %v3028_v43  }
 0x369   : > { %v1201_v0 = vsel %vm1180_vm6, %v1173_v61, 0  ;;  %2015 = vrcp.f32 %v2291_v47  ;;  %v1220_v5 = vsel %vm1180_vm6, %v1174_v3, 0  ;;  %v1172_v7 = vld [vmem:[%s2990_s2] sm:$0xf]  ;;  %v1175_v9 = vld [vmem:[%s2990_s2 + $0xc] sm:$0xf]  ;;  %vm1113_vm8 = vweird.f32 %v2291_v47 }
 0x36a   : > { %1210 = vmatpush.bf16.msra.mxu2 %v1201_v0  ;;  %v1182_v8 = vsel %vm1180_vm6, %v1172_v7, 0  ;;  %2017 = vrcp.f32 %v2279_v49  ;;  %v1239_v13 = vsel %vm1180_vm6, %v1175_v9, 0  ;;  %v1131_v53 = vand.u32 2147483647, %v2287_v45  ;;  %v1734_v30 = vld [vmem:[%s2995_s7] sm:$0xff]  ;;  %s1724_s22 = sshll.u32 %s2195_s21, 1 }
 0x36b   : > { %1191 = vmatpush.bf16.msra.mxu0 %v1182_v8  ;;  %1248 = vmatpush.bf16.msra.mxu3 %v1239_v13  ;;  %2019 = vrcp.f32 %v2283_v50  ;;  %v1117_v21 = vand.u32 2147483647, %v2291_v47  ;;  %v1119_v22 = vand.u32 2147483648, %v2291_v47  ;;  %v1134_v23 = vor.u32 1.1754944e-38, %v1133_v41  ;;  %s1509_s19 = sadd.s32 %s2191_s20, %s1724_s22  ;;  %s1513_s26 = sshll.u32 %s401_s27, 4  ;;  %s1514_s26 = int_to_ptr.vmem [resolvable:$true] %s1513_s26 }
 0x36c   : > { %vm1155_vm11 = vweird.f32 %v2279_v49  ;;  %v1159_v28 = vand.u32 2147483647, %v2279_v49  ;;  %v1161_v29 = vand.u32 2147483648, %v2279_v49  ;;  %vm1132_vm14 = vcmp.eq.f32.partialorder %v1131_v53, 8.507059e+37  ;;  %s1725_s23 = sshll.u32 %s1509_s19, 3  ;;  %s1499_s22 = scalar_lea.sflag [#allocation5], %s399_s25 }
 0x36d   : > { %v1120_v39 = vor.u32 1.1754944e-38, %v1119_v22  ;;  %vm1118_vm1 = vcmp.eq.f32.partialorder %v1117_v21, 8.507059e+37  ;;  %vm1141_vm4 = vweird.f32 %v2283_v50  ;;  %vm1176_vm6 = vcmask 64512   ;;  %s1511_s15 = scalar_lea.hbm %s2999_s11, %s1725_s23  ;;  %s2049_s13 = scalar_lea.hbm %s2999_s11, 32 }
 0x36e   : > { %1229 = vmatpush.bf16.msrb.mxu2 %v1220_v5  ;;  %v2014_v37 = vpop.eup %2013  ;;  %vm1160_vm3 = vcmp.eq.f32.partialorder %v1159_v28, 8.507059e+37  ;;  %v1147_v12 = vand.u32 2147483648, %v2283_v50  ;;  %v1145_v16 = vand.u32 2147483647, %v2283_v50  ;;  %s1515_s29 = sshll.u32 %s1511_s15, 4  ;;  %s1516_s29 = int_to_ptr.hbm [resolvable:$true] %s1515_s29 }
 0x36f   : > { %v2016_v51 = vpop.eup %2015  ;;  %v1123_v52 = vmul.f32 %v2287_v45, %v2014_v37  ;;  %vm1128_vm9 = vweird.f32 %v2014_v37  ;;  %v1162_v45 = vor.u32 1.1754944e-38, %v1161_v29  ;;  %v1735_v29 = vld [vmem:[%s2995_s7 + $0x8] sm:$0xff]  ;;  %s2043_s19 = sshra.s32 %s1516_s29, 4  ;;  %s2044_s19 = int_to_ptr.hbm [resolvable:$true] %s2043_s19 }
 0x370   : > { %v1109_v55 = vmul.f32 %v2291_v47, %v2016_v51  ;;  %v2018_v6 = vpop.eup %2017  ;;  %vm1114_vm10 = vweird.f32 %v2016_v51  ;;  %vm2837_vm12 = vmor %vm1127_vm7, %vm1128_vm9  ;;  %1331 = vmatpush.bf16.msrb.mxu0 %v1735_v29  ;;  %s2045_s23 = scalar_lea.hbm %s2044_s19, 8  ;;  %p2050_p6 = scmp.lt.s32.totalorder %s2044_s19, %s2999_s11 }
 0x371   : > { %v1124_v17 = vsub.f32 1.0, %v1123_v52  ;;  %v1151_v26 = vmul.f32 %v2279_v49, %v2018_v6  ;;  %v2020_v27 = vpop.eup %2019  ;;  %vm1156_vm13 = vweird.f32 %v2018_v6  ;;  %vm2843_vm15 = vmor %vm1113_vm8, %vm1114_vm10  ;;  %vm1146_vm8 = vcmp.eq.f32.partialorder %v1145_v16, 8.507059e+37  ;;  %p2046_p2 = scmp.ne.s32.totalorder %s2044_s19, %s2045_s23  ;;  %p2051_p7 = scmp.lt.s32.totalorder %s2049_s13, %s2045_s23 }
 0x372   : > { %v1110_v25 = vsub.f32 1.0, %v1109_v55  ;;  %v1137_v33 = vmul.f32 %v2283_v50, %v2020_v27  ;;  %vm2850_vm2 = vmor %vm1155_vm11, %vm1156_vm13  ;;  %vm1142_vm5 = vweird.f32 %v2020_v27  ;;  %v2300_v55 = vmov 32.0  }
 0x373   : > { %v1125_v35 = vmul.f32 %v2014_v37, %v1124_v17  ;;  %v1152_v32 = vsub.f32 1.0, %v1151_v26  ;;  %vm1143_vm7 = vmor %vm1141_vm4, %vm1142_vm5  ;;  %2021 = vrcp.f32 %v2300_v55  ;;  %p2047_p4 = pnand %p2046_p2, %p2412_p3  ;;  %p2052_p9 = por %p2051_p7, %p2050_p6 }
 0x374   : > { %v1111_v31 = vmul.f32 %v2016_v51, %v1110_v25  ;;  %v1138_v42 = vsub.f32 1.0, %v1137_v33  ;;  %1332 = vmatpush.bf16.msrb.mxu0 %v1734_v30 }
 0x375   : > { %v1126_v36 = vadd.f32 %v2014_v37, %v1125_v35  ;;  %v1153_v11 = vmul.f32 %v2018_v6, %v1152_v32  ;;  %p2048_p5 = pneg %p2047_p4 }
 0x376   : > { %v1112_v40 = vadd.f32 %v2016_v51, %v1111_v31  ;;  %v1139_v58 = vmul.f32 %v2020_v27, %v1138_v42 }
 0x377   : > { %v1130_v34 = vsel %vm2837_vm12, %v2014_v37, %v1126_v36  ;;  %v1154_v1 = vadd.f32 %v2018_v6, %v1153_v11  ;;  %p2053_p10 = pnand %p2052_p9, %p2048_p5 }
 0x378   : > { %v1135_v47 = vsel %vm1132_vm14, %v1134_v23, %v1130_v34  ;;  %v1116_v63 = vsel %vm2843_vm15, %v2016_v51, %v1112_v40  ;;  %v1140_v56 = vadd.f32 %v2020_v27, %v1139_v58  ;;  %v2007_v34 = vld [vmem:[%s2991_s3] ss:$0 sm:$0xff] }
 0x379   : > { %v1165_v4 = vmul.f32 %v2271_v46, %v1135_v47  ;;  %v1121_v10 = vsel %vm1118_vm1, %v1120_v39, %v1116_v63  ;;  %v1158_v62 = vsel %vm2850_vm2, %v2018_v6, %v1154_v1  ;;  %v2022_v6 = vpop.eup %2021  ;;  %v2008_v47 = vld [vmem:[%s2992_s4] ss:$0 sm:$0xff] }
 0x37a   : > { %v1164_v49 = vmul.f32 %v2275_v48, %v1121_v10  ;;  %v1163_v15 = vsel %vm1160_vm3, %v1162_v45, %v1158_v62  ;;  %v1148_v48 = vor.u32 1.1754944e-38, %v1147_v12  ;;  %v1144_v59 = vsel %vm1143_vm7, %v2020_v27, %v1140_v56  ;;  %v1742_v10 = vld [vmem:[%s2997_s9 + $0x30] sm:$0xff]  ;;  %v1741_v62 = vld [vmem:[%s2997_s9 + $0x28] sm:$0xff] }
 0x37b   : > { %v1169_v14 = vpack.c.bf16 %v1165_v4, %v1165_v4  ;;  %v1167_v46 = vmul.f32 %v2263_v43, %v1163_v15  ;;  %v1266_v17 = vmul.f32 32.0, %v2022_v6  ;;  %vm1270_vm9 = vweird.f32 %v2022_v6  ;;  %v1743_v4 = vld [vmem:[%s2997_s9 + $0x38] sm:$0xff]  ;;  %v1740_v15 = vld [vmem:[%s2997_s9 + $0x20] sm:$0xff] }
 0x37c   : > { %v1168_v18 = vpack.c.bf16 %v1164_v49, %v1164_v49  ;;  %v1149_v19 = vsel %vm1146_vm8, %v1148_v48, %v1144_v59  ;;  %1451 = vmatpush.bf16.msra.mxu1 %v1743_v4  ;;  %v2009_v49 = vld [vmem:[%s2996_s8] ss:$0 sm:$0xff]  ;;  %v1738_v59 = vld [vmem:[%s2997_s9 + $0x10] sm:$0xff] }
 0x37d   : > { %1678 = vmatmul.msk.bf16.vlgmr.msra.gmra.mxu2 %vm1176_vm6, %v1169_v14  ;;  %v1171_v57 = vpack.c.bf16 %v1167_v46, %v1167_v46  ;;  %v1166_v54 = vmul.f32 %v2267_v44, %v1149_v19  ;;  %v1267_v21 = vsub.f32 1.0, %v1266_v17 }
 0x37e   : > { %1677 = vmatmul.msk.bf16.vlgmr.msra.gmra.mxu0 %vm1176_vm6, %v1168_v18  ;;  %v1739_v18 = vld [vmem:[%s2997_s9 + $0x18] sm:$0xff] }
 0x37f   : > { %1680 = vmatmul.msk.bf16.vlgmr.msra.gmra.mxu3 %vm1176_vm6, %v1171_v57  ;;  %v1170_v20 = vpack.c.bf16 %v1166_v54, %v1166_v54  ;;  %v1268_v22 = vmul.f32 %v2022_v6, %v1267_v21 }
 0x380   : > { %1452 = vmatpush.bf16.msra.mxu1 %v1742_v10 }
 0x381   : > { %v1269_v23 = vadd.f32 %v2022_v6, %v1268_v22 }
 0x383   : > { %v2875_v25 = vsel %vm1270_vm9, %v2022_v6, %v1269_v23 }
 0x384   : > { %1453 = vmatpush.bf16.msra.mxu1 %v1741_v62 }
 0x388   : > { %1454 = vmatpush.bf16.msra.mxu1 %v1740_v15 }
 0x38c   : > { %1455 = vmatpush.bf16.msra.mxu1 %v1739_v18 }
 0x38d   : > { %1679 = vmatmul.msk.bf16.vlgmr.msrb.gmra.mxu2 %vm1176_vm6, %v1170_v20 }
 0x390   : > { %1456 = vmatpush.bf16.msra.mxu1 %v1738_v59 }
 0x3fb   : > { %v1193_v50 = vpop.f32.mrf.mxu0 }
 0x3fc   : > { %v1254_v5 = vsel %vm429_vm0, %v1193_v50, 0.0 }
 0x400   : > { %v1212_v60 = vpop.f32.mrf.mxu2 }
 0x401   : > { %v1255_v7 = vsel %vm429_vm0, %v1212_v60, 0.0  ;;  %v1737_v60 = vld [vmem:[%s2997_s9 + $0x8] sm:$0xff] }
 0x402   : > { %v1250_v43 = vpop.f32.mrf.mxu3  ;;  %v1256_v8 = vadd.f32 %v1255_v7, %v1254_v5  ;;  %1457 = vmatpush.bf16.msra.mxu1 %v1737_v60 }
 0x403   : > { %v1195_v61 = vpop.f32.mrf.mxu0  ;;  %v1259_v13 = vsel %vm429_vm0, %v1250_v43, 0.0 }
 0x408   : > { %v1214_v0 = vpop.f32.mrf.mxu2 }
 0x40a   : > { %v1252_v3 = vpop.f32.mrf.mxu3 }
 0x40b   : > { %v1736_v3 = vld [vmem:[%s2997_s9] sm:$0xff] }
 0x40c   : > { %1458 = vmatpush.bf16.msra.mxu1 %v1736_v3 }
 0x410   : > { %v1231_v9 = vpop.f32.mrf.mxu2 }
 0x411   : > { %v1257_v37 = vsel %vm429_vm0, %v1231_v9, 0.0 }
 0x412   : > { %v1258_v44 = vadd.f32 %v1257_v37, %v1256_v8 }
 0x414   : > { %v1260_v41 = vadd.f32 %v1259_v13, %v1258_v44 }
 0x416   : > { %v1261_v51 = vadd.f32 %v1260_v41, %v2450_v2 }
 0x418   : > { %v1233_v52 = vpop.f32.mrf.mxu2  ;;  %v1262_v53 = vsel %vm429_vm0, %v1261_v51, 0.0 }
 0x419   : > { %1263 = vadd.xlane.f32.xlu0 %v1262_v53 }
 0x48c   : > { %v1264_v26 = vpop.xlane.xlu0 %1263 }
 0x48d   : > { %v1272_v27 = vmul.f32 %v2875_v25, %v1264_v26 }
 0x48f   : > { %v1273_v35 = vsub.f32 %v1261_v51, %v1272_v27 }
 0x491   : > { %v1274_v28 = vmul.f32 %v1273_v35, %v1273_v35 }
 0x493   : > { %v1275_v2 = vsel %vm429_vm0, %v1274_v28, 0.0 }
 0x494   : > { %1276 = vadd.xlane.f32.xlu0 %v1275_v2 }
 0x507   : > { %v1277_v31 = vpop.xlane.xlu0 %1276 }
 0x508   : > { %v1278_v32 = vmul.f32 %v1277_v31, %v2875_v25 }
 0x50a   : > { %v1279_v33 = vadd.f32 1e-05, %v1278_v32 }
 0x50c   : > { %2023 = vrsqrt.f32 %v1279_v33  ;;  %vm1286_vm11 = vweird.f32 %v1279_v33 }
 0x512   : > { %v2024_v36 = vpop.eup %2023 }
 0x513   : > { %v1281_v38 = vmul.f32 %v2024_v36, %v1279_v33  ;;  %vm1287_vm10 = vweird.f32 %v2024_v36 }
 0x514   : > { %vm1288_vm12 = vmor %vm1286_vm11, %vm1287_vm10 }
 0x515   : > { %v1282_v39 = vmul.f32 %v2024_v36, %v1281_v38 }
 0x517   : > { %v1283_v40 = vmul.f32 0.5, %v1282_v39  ;;  %v2010_v39 = vld [vmem:[%s2998_s10] ss:$0 sm:$0xff] }
 0x519   : > { %v1284_v11 = vsub.f32 1.5, %v1283_v40 }
 0x51b   : > { %v1285_v42 = vmul.f32 %v2024_v36, %v1284_v11 }
 0x51d   : > { %v1289_v24 = vsel %vm1288_vm12, %v2024_v36, %v1285_v42 }
 0x51e   : > { %v1290_v45 = vmul.f32 %v1289_v24, %v1273_v35 }
 0x520   : > { %v1295_v63 = vmul.f32 %v2007_v34, %v1290_v45 }
 0x522   : > { %v2892_v1 = vadd.f32 %v2008_v47, %v1295_v63 }
 0x524   : > { %v1301_v58 = vpack.c.bf16 %v2892_v1, %v2892_v1 }
 0x526   : > { %1689 = vmatmul.msk.bf16.vlgmr.msrb.gmra.mxu0 %vm429_vm0, %v1301_v58 }
 0x5a3   : > { %v1334_v12 = vpop.f32.mrf.mxu0 }
 0x5a4   : > { %v1335_v14 = vadd.f32 %v2009_v49, %v1334_v12 }
 0x5a6   : > { %v1339_v56 = vmul.f32 0.70710677, %v1335_v14  ;;  %v1338_v32 = vmul.f32 0.5, %v1335_v14 }
 0x5a8   : > { %v1340_v16 = vmul.f32 %v1339_v56, %v1339_v56 }
 0x5aa   : > { %v1341_v46 = vmin.f32 %v1340_v16, 16.0 }
 0x5ab   : > { %v1336_v57 = vpop.f32.mrf.mxu0 }
 0x5ac   : > { %v1342_v48 = vmul.f32 2.1237322e-06, %v1341_v46  ;;  %v1353_v19 = vmul.f32 3.8918573e-05, %v1341_v46  ;;  %v2012_v57 = vld [vmem:[%s2994_s6] ss:$0 sm:$0xff] }
 0x5ae   : > { %v1343_v54 = vadd.f32 0.00028619796, %v1342_v48  ;;  %v1354_v20 = vadd.f32 0.001143296, %v1353_v19 }
 0x5b0   : > { %v1344_v50 = vmul.f32 %v1343_v54, %v1341_v46  ;;  %v1355_v43 = vmul.f32 %v1354_v20, %v1341_v46 }
 0x5b2   : > { %v1356_v61 = vadd.f32 0.014752088, %v1355_v43  ;;  %v1345_v0 = vadd.f32 0.0036580483, %v1344_v50 }
 0x5b4   : > { %v1357_v5 = vmul.f32 %v1356_v61, %v1341_v46  ;;  %v1346_v8 = vmul.f32 %v1345_v0, %v1341_v46 }
 0x5b6   : > { %v1358_v7 = vadd.f32 0.112945676, %v1357_v5  ;;  %v1347_v37 = vadd.f32 0.05243302, %v1346_v8 }
 0x5b8   : > { %v1359_v9 = vmul.f32 %v1358_v7, %v1341_v46  ;;  %v1348_v51 = vmul.f32 %v1347_v37, %v1341_v46 }
 0x5ba   : > { %v1360_v13 = vadd.f32 0.4994258, %v1359_v9  ;;  %v1349_v52 = vadd.f32 0.18741608, %v1348_v51 }
 0x5bc   : > { %v1361_v44 = vmul.f32 %v1360_v13, %v1341_v46  ;;  %v1350_v55 = vmul.f32 %v1349_v52, %v1341_v46 }
 0x5be   : > { %v1362_v41 = vadd.f32 1.0, %v1361_v44  ;;  %v1351_v22 = vadd.f32 1.1283791, %v1350_v55 }
 0x5c0   : > { %2025 = vrcp.f32 %v1362_v41  ;;  %v1374_v21 = vand.u32 2147483648, %v1362_v41  ;;  %v1372_v26 = vand.u32 2147483647, %v1362_v41  ;;  %vm1368_vm14 = vweird.f32 %v1362_v41 }
 0x5c1   : > { %v1352_v28 = vmul.f32 %v1351_v22, %v1339_v56 }
 0x5c2   : > { %v1375_v35 = vor.u32 1.1754944e-38, %v1374_v21  ;;  %vm1373_vm1 = vcmp.eq.f32.partialorder %v1372_v26, 8.507059e+37 }
 0x5c6   : > { %v2026_v53 = vpop.eup %2025 }
 0x5c7   : > { %v1364_v6 = vmul.f32 %v2026_v53, %v1362_v41  ;;  %vm1369_vm13 = vweird.f32 %v2026_v53 }
 0x5c8   : > { %vm1370_vm15 = vmor %vm1368_vm14, %vm1369_vm13 }
 0x5c9   : > { %v1365_v17 = vsub.f32 1.0, %v1364_v6 }
 0x5cb   : > { %v1366_v23 = vmul.f32 %v2026_v53, %v1365_v17 }
 0x5cd   : > { %v1367_v27 = vadd.f32 %v2026_v53, %v1366_v23 }
 0x5cf   : > { %v1371_v2 = vsel %vm1370_vm15, %v2026_v53, %v1367_v27 }
 0x5d0   : > { %v1376_v29 = vsel %vm1373_vm1, %v1375_v35, %v1371_v2 }
 0x5d1   : > { %v1377_v30 = vmul.f32 %v1376_v29, %v1352_v28 }
 0x5d3   : > { %v1690_v31 = vclamps-f32 %v1377_v30, 1.0 }
 0x5d5   : > { %v1380_v33 = vadd.f32 1.0, %v1690_v31 }
 0x5d7   : > { %v1381_v36 = vmul.f32 %v1380_v33, %v1338_v32 }
 0x5d9   : > { %v1382_v38 = vpack.c.bf16 %v1381_v36, %v1381_v36 }
 0x5db   : > { %1459 = vmatmul.bf16.vlgmr.msra.gmra.mxu1 %v1382_v38 }
 0x658   : > { %v1460_v40 = vpop.f32.mrf.mxu1 }
 0x659   : > { %v1461_v11 = vadd.f32 %v2010_v39, %v1460_v40 }
 0x65b   : > { %v1464_v42 = vadd.f32 %v1461_v11, %v2892_v1 }
 0x65d   : > { %v1465_v34 = vsel %vm429_vm0, %v1464_v42, 0.0 }
 0x65e   : > { %1466 = vadd.xlane.f32.xlu1 %v1465_v34 }
 0x660   : > { %v1462_v24 = vpop.f32.mrf.mxu1 }
 0x6d1   : > { %v1467_v45 = vpop.xlane.xlu1 %1466 }
 0x6d2   : > { %v1468_v47 = vmul.f32 %v1467_v45, %v2875_v25 }
 0x6d4   : > { %v1469_v63 = vsub.f32 %v1464_v42, %v1468_v47 }
 0x6d6   : > { %v1470_v58 = vmul.f32 %v1469_v63, %v1469_v63 }
 0x6d8   : > { %v1471_v4 = vsel %vm429_vm0, %v1470_v58, 0.0 }
 0x6d9   : > { %1472 = vadd.xlane.f32.xlu1 %v1471_v4 }
 0x74c   : > { %v1473_v10 = vpop.xlane.xlu1 %1472 }
 0x74d   : > { %v1474_v49 = vmul.f32 %v1473_v10, %v2875_v25  ;;  %v2011_v25 = vld [vmem:[%s2993_s5] ss:$0 sm:$0xff] }
 0x74f   : > { %v1475_v62 = vadd.f32 1e-05, %v1474_v49 }
 0x751   : > { %2027 = vrsqrt.f32 %v1475_v62  ;;  %vm1482_vm3 = vweird.f32 %v1475_v62 }
 0x757   : > { %v2028_v1 = vpop.eup %2027 }
 0x758   : > { %v1477_v12 = vmul.f32 %v2028_v1, %v1475_v62  ;;  %vm1483_vm2 = vweird.f32 %v2028_v1 }
 0x759   : > { %vm1484_vm4 = vmor %vm1482_vm3, %vm1483_vm2 }
 0x75a   : > { %v1478_v14 = vmul.f32 %v2028_v1, %v1477_v12 }
 0x75c   : > { %v1479_v15 = vmul.f32 0.5, %v1478_v14 }
 0x75e   : > { %v1480_v56 = vsub.f32 1.5, %v1479_v15 }
 0x760   : > { %v1481_v16 = vmul.f32 %v2028_v1, %v1480_v56 }
 0x762   : > { %v1485_v18 = vsel %vm1484_vm4, %v2028_v1, %v1481_v16 }
 0x763   : > { %v1486_v46 = vmul.f32 %v1485_v18, %v1469_v63 }
 0x765   : > { %v1491_v48 = vmul.f32 %v2011_v25, %v1486_v46 }
 0x767   : > { %v1496_v59 = vadd.f32 %v2012_v57, %v1491_v48 }
 0x769   : > { %1497 = vst.msk [vmem:[%s401_s27] sm:$0xff] %vm429_vm0, %v1496_v59 }
 0x76a   : > { %2056 = shalt.err (!%p2053_p10)
}
 0x76b   : > { %1744 = dma.vmem_to_hbm [thread:$0]  (%p2412_p3), %s1514_s26, 128, %s1516_s29, %s1499_s22  }
 0x76c PF: > { %p1750_p11 = scmp.ge.s32.totalorder %s2207_s24, 2  ;;  %s1527_s25 = sand.u32 1, %s2179_s17  }
 0x76d   : > { %s1528_s27 = scalar_lea.sflag [#allocation5], %s1527_s25 }
 0x76e   : > { %p1747_p12 = pnand %p1750_p11, %p2421_p8 }
 0x770   : > { %p1748_p13 = pneg %p1747_p12 }
 0x772   : > { %2174 = dma.done.wait (%p1748_p13), %s1528_s27, 128  }
 0x773   : > { %2176 = vsyncadd (%p1748_p13), %s1528_s27, 4294967168  ;;  %s24_s24 = sadd.s32 1, %s2207_s24   ;;  %s3041_s20 = sld [smem:[#allocation7_spill]] }
 0x774   : > { %p21_p0 = scmp.ge.s32.totalorder %s24_s24, 6   ;;  %s3042_s19 = sld [smem:[#allocation13_spill]] }
 0x775   : > { %s3043_s30 = sld [smem:[#allocation8_spill]]  ;;  %s3047_s17 = smov %s2183_s18 }
 0x776   : > { %s3044_s21 = sld [smem:[#allocation9_spill]] }
 0x777   : > { %s3045_s22 = sld [smem:[#allocation10_spill]]  ;;  %23 = sbr.rel (!%p21_p0) target bundleno = 5 (0x5), region = 121 }
 0x778   : > { %s3046_s23 = sld [smem:[#allocation11_spill]] }
 0x779   : > { %s3048_s18 = smov %s3041_s20 }
 0x77b   : > { %s3049_s20 = smov %s3043_s30 }
 0x77c   :  { %1534 = vsyncpa [#allocation5], 1 }
 0x77d   :  { %1536 = vsyncpa [#allocation5 + $0x1], 1 }

// kernel: tpu_custom_call.1
= control target key start
LH: loop header
LB: loop body
LE: loop exit
PB: predicated region body
PF: predicated region fallthrough
CT: control target
= control target key end

     0   :  { %16 = vsyncpa [#allocation5], 0  ;;  %s2988_s0 = inlined_call_operand.vmem [shape: f32[2,16,32], index: 0, kind: input, shape index: {}]   ;;  %s2989_s1 = inlined_call_operand.vmem [shape: bf16[32,96], index: 1, kind: input, shape index: {}]   ;;  %s2990_s2 = inlined_call_operand.vmem [shape: bf16[4,8,32], index: 2, kind: input, shape index: {}]   ;;  %s2991_s3 = inlined_call_operand.vmem [shape: f32[1,32], index: 3, kind: input, shape index: {}]   ;;  %s2992_s4 = inlined_call_operand.vmem [shape: f32[1,32], index: 4, kind: input, shape index: {}]   ;;  %s2993_s5 = inlined_call_operand.vmem [shape: f32[1,32], index: 5, kind: input, shape index: {}]   ;;  %s2994_s6 = inlined_call_operand.vmem [shape: f32[1,32], index: 6, kind: input, shape index: {}]   ;;  %s2995_s7 = inlined_call_operand.vmem [shape: bf16[32,128], index: 7, kind: input, shape index: {}]   ;;  %s2996_s8 = inlined_call_operand.vmem [shape: f32[1,128], index: 8, kind: input, shape index: {}]   ;;  %s2997_s9 = inlined_call_operand.vmem [shape: bf16[128,32], index: 9, kind: input, shape index: {}]   ;;  %s2998_s10 = inlined_call_operand.vmem [shape: f32[1,32], index: 10, kind: input, shape index: {}]   ;;  %s2999_s11 = inlined_call_operand.hbm [shape: f32[2,16,32], index: 11, kind: output, shape index: {}]  }
   0x1   :  { %18 = vsyncpa [#allocation5 + $0x1], 0  ;;  %s2361_s17 = smov 0   ;;  %s2363_s18 = smov 0  }
   0x2   :  { %s2365_s19 = smov 0   ;;  %s2367_s20 = smov 0  }
   0x3   :  { %s2369_s21 = smov 0   ;;  %s2371_s22 = smov 0  }
   0x4   :  { %s2373_s23 = smov 0   ;;  %s2375_s24 = smov 0  }
   0x5 LB: > { %3006 = sst [smem:[#allocation7_spill]] %s2187_s19  ;;  %s1643_s25 = sadd.s32 4294967295, %s2207_s24   ;;  %s2207_s24 = sphi %s2375_s24, %s24_s24   ;;  %s2203_s23 = sphi %s2373_s23, %s3046_s23   ;;  %s2199_s22 = sphi %s2371_s22, %s3045_s22   ;;  %s2195_s21 = sphi %s2369_s21, %s3044_s21   ;;  %s2191_s20 = sphi %s2367_s20, %s3049_s20   ;;  %s2187_s19 = sphi %s2365_s19, %s3042_s19   ;;  %s2183_s18 = sphi %s2363_s18, %s3048_s18   ;;  %s2179_s17 = sphi %s2361_s17, %s3047_s17  }
   0x6   : > { %3007 = sst [smem:[#allocation8_spill]] %s2199_s22  ;;  %s1644_s26 = sadd.s32 4294967294, %s2207_s24  }
   0x7   : > { %3008 = sst [smem:[#allocation9_spill]] %s2203_s23  ;;  %s33_s27 = sadd.s32 1, %s2199_s22 }
   0x8   : > { %p34_p0 = scmp.ge.s32.totalorder %s33_s27, 2  ;;  %s36_s28 = sadd.s32 1, %s2203_s23 }
   0x9   : > { %p293_p1 = scmp.ne.s32.totalorder %s2187_s19, %s2183_s18  ;;  %p294_p2 = scmp.eq.s32.totalorder %s1643_s25, 3 }
   0xa   : > { %s3051_s27 = smov (%p34_p0, %s33_s27), 0  ;;  %s3053_s28 = smov (!%p34_p0, %s36_s28), %s2203_s23 }
   0xb   : > { %3009 = sst [smem:[#allocation10_spill]] %s3051_s27  ;;  %s279_s29 = ssub.s32 %s2199_s22, %s3051_s27 }
   0xc   : > { %p2412_p3 = por %p294_p2, %p293_p1  ;;  %p38_p4 = scmp.ge.s32.totalorder %s3053_s28, 2 }
   0xd   : > { %p299_p5 = scmp.ne.s32.totalorder %s2183_s18, %s2179_s17  ;;  %p300_p6 = scmp.eq.s32.totalorder %s1644_s26, 3 }
   0xe   : > { %p1647_p7 = scmp.ge.s32.totalorder %s2207_s24, 1  ;;  %s3055_s28 = smov (%p38_p4, %s3053_s28), 0 }
   0xf   : > { %3011 = sst [smem:[#allocation11_spill]] %s3055_s28  ;;  %p2421_p8 = por %p300_p6, %p299_p5 }
  0x10   : > { %p359_p9 = scmp.lt.s32.totalorder %s2207_s24, 5  ;;  %s278_s13 = ssub.s32 %s2203_s23, %s3055_s28 }
  0x11   : > { %s3012_s12 = scalar_select %p2421_p8, 1, 0 }
  0x12   : > { %s283_s14 = sadd.s32 1, %s2187_s19  ;;  %s280_s15 = sor.u32 %s279_s29, %s278_s13 }
  0x13   : > { %3013 = sst [smem:[#allocation12_spill]] %s3012_s12  ;;  %p360_p10 = pnand %p1647_p7, %p359_p9 }
  0x14   : > { %p281_p11 = scmp.eq.s32.totalorder %s280_s15, 0  ;;  %s399_s25 = sand.u32 (!%p360_p10), 1, %s2183_s18  }
  0x15   : > { %363 = sbr.rel (%p360_p10) target bundleno = 1900 (0x76c), region = 64  ;;  %p402_p12 = scmp.lt.s32.totalorder (!%p360_p10), %s2195_s21, 1 }
  0x16   : > { %s2430_s16 = scalar_select %p281_p11, %s2187_s19, %s283_s14  }
  0x17   : > { %s2439_s28 = sshll.u32 (!%p360_p10), %s399_s25, 3  ;;  %p404_p13 = scmp.lt.s32.totalorder (!%p360_p10), %s2191_s20, 1 }
  0x18   : > { %3014 = sst [smem:[#allocation13_spill]] %s2430_s16  ;;  %s2293_s26 = smov (!%p360_p10), 64  }
  0x19   : > { %s2294_s29 = smov (!%p360_p10), 104   ;;  %s2296_s19 = smov (!%p360_p10), 96  }
  0x1a   : > { %v1729_v0 = vld [vmem:[%s2989_s1 + $0x8] sm:$0xff]  ;;  %v1728_v1 = vld [vmem:[%s2989_s1] sm:$0xff]  ;;  %s403_s14 = scalar_select %p402_p12, %s2195_s21, 1  ;;  %vm429_vm0 = vcmask 261120   ;;  %v2298_v7 = vmov 1983009808  }
  0x1b   : > { %439 = vmatpush.bf16.msra.mxu0 %v1729_v0  ;;  %s405_s15 = scalar_select %p404_p13, %s2191_s20, 1  ;;  %v468_v8 = vunpack.c.l.s4 %v2298_v7  ;;  %v2299_v16 = vmov 1934713408   ;;  %vm477_vm1 = vcmask 1047556   ;;  %vm824_vm2 = vcmask 60416  }
  0x1c   : > { %s1649_s23 = sshll.u32 %s403_s14, 1  ;;  %v482_v17 = vunpack.c.l.s4 %v2299_v16  ;;  %s842_s12 = sadd.s32 1, %s2191_s20 }
  0x1d   : > { %s407_s22 = sadd.s32 %s1649_s23, %s405_s15  ;;  %s2297_s23 = smov 112   ;;  %v2457_v11 = vunpack.c.0.s8 %v468_v8 }
  0x1e   : > { %s1650_s16 = sshll.u32 %s407_s22, 3  ;;  %s2295_s22 = smov 120   ;;  %v2462_v24 = vunpack.c.0.s8 %v482_v17 }
  0x1f   : > { %440 = vmatpush.bf16.msra.mxu0 %v1728_v1  ;;  %s409_s27 = scalar_lea.vmem %s2988_s0, %s1650_s16  ;;  %s1663_s16 = sshll.u32 %s2191_s20, 3 }
  0x20   : > { %v2450_v2 = vld [vmem:[%s409_s27] sm:$0xff]  ;;  %s1730_s13 = sshll.u32 %s2191_s20, 4  ;;  %s401_s27 = scalar_lea.vmem [#allocation4], %s2439_s28 }
  0x21   : > { %v412_v3 = vpack.c.bf16 %v2450_v2, %v2450_v2  ;;  %s823_s14 = scalar_lea.vmem [#allocation2], %s1730_s13  ;;  %s830_s15 = scalar_lea.vmem [#allocation3], %s1730_s13 }
  0x22   : > { %p1664_p0 = scmp.le.s32.totalorder %s842_s12, 0 }
  0x23   : > { %1659 = vmatmul.msk.bf16.vlgmr.msra.gmra.mxu0 %vm429_vm0, %v412_v3 }
  0xa0   : > { %v442_v4 = vpop.f32.mrf.mxu0 }
  0xa1   : > { %v446_v5 = vpack.c.bf16 %v442_v4, %v442_v4 }
  0xa3   : > { %695 = vrot.lane.b32.xlu2 %v446_v5, %s2293_s26  ;;  %452 = vrot.lane.b32.xlu1 %v446_v5, %s2294_s29  ;;  %v457_v13 = vshrl.u32 %v446_v5, 16 }
  0xa4   : > { %448 = vrot.lane.b32.xlu0 %v446_v5, %s2295_s22 }
  0xa8   : > { %v444_v6 = vpop.f32.mrf.mxu0 }
  0xab   : > { %569 = vrot.lane.b32.xlu1 %v446_v5, %s2296_s19 }
  0xac   : > { %450 = vrot.lane.b32.xlu0 %v446_v5, %s2297_s23 }
 0x115   : > { %v453_v15 = vpop.permute.xlu1 %452 }
 0x116   : > { %v449_v9 = vpop.permute.xlu0 %448  ;;  %v464_v20 = vshrl.u32 %v453_v15, 16 }
 0x117   : > { %v458_v10 = vshrl.u32 %v449_v9, 16  ;;  %697 = vrot.lane.b32.xlu0 %v449_v9, %s2293_s26  ;;  %571 = vrot.lane.b32.xlu2 %v449_v9, %s2296_s19  ;;  %v456_v12 = vpack.i.b16 %v449_v9, %v446_v5 }
 0x119   : > { %v459_v14 = vpack.i.b16 %v458_v10, %v457_v13  ;;  %v470_v18 = vperm.slane %v456_v12, %v2457_v11 }
 0x11b   : > { %v497_v21 = vperm.slane %v459_v14, %v2457_v11  ;;  %v479_v25 = vrot.slane %v470_v18, 4  ;;  %v696_v14 = vpop.permute.xlu2 %695 }
 0x11d   : > { %v505_v28 = vrot.slane %v497_v21, 4  ;;  %v570_v17 = vpop.permute.xlu1 %569 }
 0x11e   : > { %v451_v19 = vpop.permute.xlu0 %450 }
 0x11f   : > { %v462_v22 = vpack.i.b16 %v453_v15, %v451_v19  ;;  %v463_v23 = vshrl.u32 %v451_v19, 16  ;;  %575 = vrot.lane.b32.xlu2 %v453_v15, %s2296_s19  ;;  %699 = vrot.lane.b32.xlu0 %v451_v19, %s2293_s26 }
 0x120   : > { %573 = vrot.lane.b32.xlu1 %v451_v19, %s2296_s19 }
 0x121   : > { %v465_v26 = vpack.i.b16 %v464_v20, %v463_v23  ;;  %v475_v27 = vperm.slane %v462_v22, %v2457_v11  ;;  %v580_v20 = vshrl.u32 %v570_v17, 16  ;;  %v706_v22 = vshrl.u32 %v696_v14, 16 }
 0x123   : > { %v476_v29 = vrot.slane %v475_v27, 4  ;;  %v480_v30 = vsel %vm477_vm1, %v475_v27, %v479_v25  ;;  %v502_v31 = vperm.slane %v465_v26, %v2457_v11 }
 0x124   : > { %v488_v32 = vperm.slane %v480_v30, %v2462_v24 }
 0x125   : > { %v478_v33 = vsel %vm477_vm1, %v476_v29, %v470_v18  ;;  %v503_v34 = vrot.slane %v502_v31, 4  ;;  %v506_v35 = vsel %vm477_vm1, %v502_v31, %v505_v28 }
 0x126   : > { %v484_v36 = vperm.slane %v478_v33, %v2462_v24  ;;  %v491_v37 = vrot.slane %v488_v32, 4  ;;  %v514_v38 = vperm.slane %v506_v35, %v2462_v24 }
 0x127   : > { %v504_v39 = vsel %vm477_vm1, %v503_v34, %v497_v21 }
 0x128   : > { %v489_v40 = vrot.slane %v484_v36, 4  ;;  %v492_v41 = vsel %vm477_vm1, 0, %v491_v37  ;;  %v510_v42 = vperm.slane %v504_v39, %v2462_v24  ;;  %v517_v43 = vrot.slane %v514_v38, 4  ;;  %701 = vrot.lane.b32.xlu1 %v453_v15, %s2293_s26  ;;  %s2641_s26 = smov (!%p1664_p0), 0  }
 0x129   : > { %v519_v44 = vsel %vm477_vm1, %v491_v37, %v484_v36  ;;  %v524_v45 = vrot.slane %v492_v41, 4 }
 0x12a   : > { %v490_v46 = vsel %vm477_vm1, 0, %v489_v40  ;;  %v515_v47 = vrot.slane %v510_v42, 4  ;;  %v518_v48 = vsel %vm477_vm1, 0, %v517_v43  ;;  %v538_v50 = vsel %vm477_vm1, %v517_v43, %v510_v42 }
 0x12b   : > { %v525_v49 = vsel %vm477_vm1, %v524_v45, %v490_v46  ;;  %v543_v51 = vrot.slane %v518_v48, 4  ;;  %v523_v55 = vperm.slane %v519_v44, %v2457_v11  ;;  %v542_v59 = vperm.slane %v538_v50, %v2457_v11 }
 0x12c   : > { %v516_v52 = vsel %vm477_vm1, 0, %v515_v47  ;;  %v529_v53 = vperm.slane %v525_v49, %v2457_v11  ;;  %v836_v47 = vlaneseq }
 0x12d   : > { %v544_v54 = vsel %vm477_vm1, %v543_v51, %v516_v52 }
 0x12e   : > { %v530_v56 = vrot.slane %v529_v53, 4  ;;  %v548_v57 = vperm.slane %v544_v54, %v2457_v11 }
 0x130   : > { %v531_v58 = vsel %vm477_vm1, %v530_v56, %v523_v55  ;;  %v549_v60 = vrot.slane %v548_v57, 4  ;;  %v837_v56 = vshrl.u32 %v836_v47, 7 }
 0x131   : > { %v2489_v61 = vperm.slane %v531_v58, %v2462_v24 }
 0x132   : > { %v550_v62 = vsel %vm477_vm1, %v549_v60, %v542_v59  ;;  %v838_v60 = vstv %s1663_s16 }
 0x133   : > { %v536_v63 = vrot.slane %v2489_v61, 4  ;;  %v2494_v0 = vperm.slane %v550_v62, %v2462_v24  ;;  %v560_v1 = vshrl.u32 %v2489_v61, 16 }
 0x135   : > { %v2498_v3 = vsel %vm477_vm1, 0, %v536_v63  ;;  %v555_v4 = vrot.slane %v2494_v0, 4  ;;  %v559_v5 = vpack.i.b16 %v2494_v0, %v2489_v61  ;;  %v561_v6 = vshrl.u32 %v2494_v0, 16 }
 0x136   : > { %v566_v10 = vshrl.u32 %v2498_v3, 16 }
 0x137   : > { %v2505_v7 = vsel %vm477_vm1, 0, %v555_v4  ;;  %v2507_v8 = vpack.i.b16 %v561_v6, %v560_v1 }
 0x138   : > { %v565_v9 = vpack.i.b16 %v2505_v7, %v2498_v3  ;;  %v567_v12 = vshrl.u32 %v2505_v7, 16 }
 0x13a   : > { %v2513_v13 = vpack.i.b16 %v567_v12, %v566_v10 }
 0x171   : > { %v572_v15 = vpop.permute.xlu2 %571 }
 0x172   : > { %v581_v18 = vshrl.u32 %v572_v15, 16  ;;  %v579_v21 = vpack.i.b16 %v572_v15, %v570_v17 }
 0x174   : > { %v582_v23 = vpack.i.b16 %v581_v18, %v580_v20  ;;  %v593_v28 = vperm.slane %v579_v21, %v2457_v11 }
 0x176   : > { %v619_v30 = vperm.slane %v582_v23, %v2457_v11  ;;  %v601_v36 = vrot.slane %v593_v28, 4 }
 0x178   : > { %v627_v40 = vrot.slane %v619_v30, 4 }
 0x179   : > { %v576_v25 = vpop.permute.xlu2 %575 }
 0x17a   : > { %v587_v31 = vshrl.u32 %v576_v25, 16 }
 0x189   : > { %v698_v16 = vpop.permute.xlu0 %697 }
 0x18a   : > { %v707_v19 = vshrl.u32 %v698_v16, 16  ;;  %v705_v26 = vpack.i.b16 %v698_v16, %v696_v14 }
 0x18c   : > { %v708_v27 = vpack.i.b16 %v707_v19, %v706_v22  ;;  %v719_v34 = vperm.slane %v705_v26, %v2457_v11 }
 0x18e   : > { %v2520_v35 = vperm.slane %v708_v27, %v2457_v11  ;;  %v727_v44 = vrot.slane %v719_v34, 4 }
 0x190   : > { %v753_v45 = vrot.slane %v2520_v35, 4 }
 0x191   : > { %v700_v39 = vpop.permute.xlu0 %699 }
 0x192   : > { %v574_v29 = vpop.permute.xlu1 %573  ;;  %v712_v51 = vshrl.u32 %v700_v39, 16 }
 0x193   : > { %v585_v32 = vpack.i.b16 %v576_v25, %v574_v29  ;;  %v586_v33 = vshrl.u32 %v574_v29, 16 }
 0x195   : > { %v588_v37 = vpack.i.b16 %v587_v31, %v586_v33  ;;  %v598_v38 = vperm.slane %v585_v32, %v2457_v11 }
 0x197   : > { %v599_v41 = vrot.slane %v598_v38, 4  ;;  %v602_v42 = vsel %vm477_vm1, %v598_v38, %v601_v36  ;;  %v624_v43 = vperm.slane %v588_v37, %v2457_v11  ;;  %v2552_v37 = vadd.s32 %v838_v60, %v837_v56 }
 0x198   : > { %v610_v46 = vperm.slane %v602_v42, %v2462_v24 }
 0x199   : > { %v600_v48 = vsel %vm477_vm1, %v599_v41, %v593_v28  ;;  %v625_v49 = vrot.slane %v624_v43, 4  ;;  %v628_v50 = vsel %vm477_vm1, %v624_v43, %v627_v40  ;;  %v2555_v41 = vand.u32 127, %v836_v47 }
 0x19a   : > { %v606_v52 = vperm.slane %v600_v48, %v2462_v24  ;;  %v613_v53 = vrot.slane %v610_v46, 4  ;;  %v636_v54 = vperm.slane %v628_v50, %v2462_v24  ;;  %v702_v55 = vpop.permute.xlu1 %701 }
 0x19b   : > { %v626_v57 = vsel %vm477_vm1, %v625_v49, %v619_v30  ;;  %v711_v58 = vpack.i.b16 %v702_v55, %v700_v39  ;;  %v713_v59 = vshrl.u32 %v702_v55, 16 }
 0x19c   : > { %v611_v62 = vrot.slane %v606_v52, 4  ;;  %v614_v63 = vsel %vm477_vm1, 0, %v613_v53  ;;  %v632_v1 = vperm.slane %v626_v57, %v2462_v24  ;;  %v639_v4 = vrot.slane %v636_v54, 4 }
 0x19d   : > { %v641_v6 = vsel %vm477_vm1, %v613_v53, %v606_v52  ;;  %v646_v10 = vrot.slane %v614_v63, 4  ;;  %v714_v12 = vpack.i.b16 %v713_v59, %v712_v51  ;;  %v724_v14 = vperm.slane %v711_v58, %v2457_v11 }
 0x19e   : > { %v612_v15 = vsel %vm477_vm1, 0, %v611_v62  ;;  %v637_v16 = vrot.slane %v632_v1, 4  ;;  %v640_v17 = vsel %vm477_vm1, 0, %v639_v4  ;;  %v645_v18 = vperm.slane %v641_v6, %v2457_v11 }
 0x19f   : > { %v647_v19 = vsel %vm477_vm1, %v646_v10, %v612_v15  ;;  %v660_v20 = vsel %vm477_vm1, %v639_v4, %v632_v1  ;;  %v665_v21 = vrot.slane %v640_v17, 4  ;;  %v725_v22 = vrot.slane %v724_v14, 4 }
 0x1a0   : > { %v638_v23 = vsel %vm477_vm1, 0, %v637_v16  ;;  %v651_v25 = vperm.slane %v647_v19, %v2457_v11  ;;  %v664_v26 = vperm.slane %v660_v20, %v2457_v11  ;;  %v728_v27 = vsel %vm477_vm1, %v724_v14, %v727_v44 }
 0x1a1   : > { %v666_v28 = vsel %vm477_vm1, %v665_v21, %v638_v23  ;;  %v726_v29 = vsel %vm477_vm1, %v725_v22, %v719_v34  ;;  %v736_v30 = vperm.slane %v728_v27, %v2462_v24  ;;  %v750_v31 = vperm.slane %v714_v12, %v2457_v11 }
 0x1a2   : > { %v652_v32 = vrot.slane %v651_v25, 4  ;;  %v670_v33 = vperm.slane %v666_v28, %v2457_v11  ;;  %v732_v36 = vperm.slane %v726_v29, %v2462_v24 }
 0x1a3   : > { %v739_v38 = vrot.slane %v736_v30, 4  ;;  %v751_v39 = vrot.slane %v750_v31, 4  ;;  %v754_v40 = vsel %vm477_vm1, %v750_v31, %v753_v45 }
 0x1a4   : > { %v653_v42 = vsel %vm477_vm1, %v652_v32, %v645_v18  ;;  %v671_v34 = vrot.slane %v670_v33, 4  ;;  %v737_v43 = vrot.slane %v732_v36, 4  ;;  %v762_v44 = vperm.slane %v754_v40, %v2462_v24 }
 0x1a5   : > { %v657_v46 = vperm.slane %v653_v42, %v2462_v24  ;;  %v740_v48 = vsel %vm477_vm1, 0, %v739_v38  ;;  %v752_v49 = vsel %vm477_vm1, %v751_v39, %v2520_v35  ;;  %v767_v63 = vsel %vm477_vm1, %v739_v38, %v732_v36 }
 0x1a6   : > { %v672_v50 = vsel %vm477_vm1, %v671_v34, %v664_v26  ;;  %v758_v45 = vperm.slane %v752_v49, %v2462_v24  ;;  %v765_v47 = vrot.slane %v762_v44, 4  ;;  %v738_v53 = vsel %vm477_vm1, 0, %v737_v43 }
 0x1a7   : > { %v658_v51 = vrot.slane %v657_v46, 4  ;;  %v676_v52 = vperm.slane %v672_v50, %v2462_v24  ;;  %v683_v54 = vshrl.u32 %v657_v46, 16  ;;  %v772_v57 = vrot.slane %v740_v48, 4 }
 0x1a8   : > { %v763_v55 = vrot.slane %v758_v45, 4  ;;  %v766_v56 = vsel %vm477_vm1, 0, %v765_v47  ;;  %v771_v17 = vperm.slane %v767_v63, %v2457_v11  ;;  %v786_v19 = vsel %vm477_vm1, %v765_v47, %v758_v45 }
 0x1a9   : > { %v659_v58 = vsel %vm477_vm1, 0, %v658_v51  ;;  %v677_v35 = vrot.slane %v676_v52, 4  ;;  %v681_v59 = vpack.i.b16 %v676_v52, %v657_v46  ;;  %v684_v60 = vshrl.u32 %v676_v52, 16 }
 0x1aa   : > { %v764_v62 = vsel %vm477_vm1, 0, %v763_v55  ;;  %v773_v1 = vsel %vm477_vm1, %v772_v57, %v738_v53  ;;  %v791_v12 = vrot.slane %v766_v56, 4  ;;  %v691_v15 = vshrl.u32 %v659_v58, 16 }
 0x1ab   : > { %v678_v4 = vsel %vm477_vm1, 0, %v677_v35  ;;  %v685_v6 = vpack.i.b16 %v684_v60, %v683_v54  ;;  %825 = vst.msk [vmem:[%s823_s14] sm:$0xf] %vm824_vm2, %v681_v59  ;;  %v777_v10 = vperm.slane %v773_v1, %v2457_v11  ;;  %v790_v26 = vperm.slane %v786_v19, %v2457_v11 }
 0x1ac   : > { %v689_v14 = vpack.i.b16 %v678_v4, %v659_v58  ;;  %v692_v16 = vshrl.u32 %v678_v4, 16  ;;  %v792_v20 = vsel %vm477_vm1, %v791_v12, %v764_v62  ;;  %v2601_v43 = vmov 0.0  }
 0x1ad   : > { %826 = vst.msk [vmem:[%s823_s14 + $0x4] sm:$0xf] %vm824_vm2, %v685_v6  ;;  %v778_v18 = vrot.slane %v777_v10, 4  ;;  %v796_v22 = vperm.slane %v792_v20, %v2457_v11  ;;  %v2603_v44 = vmov 0.0   ;;  %v2605_v46 = vmov 0.0  }
 0x1ae   : > { %v693_v21 = vpack.i.b16 %v692_v16, %v691_v15  ;;  %827 = vst.msk [vmem:[%s823_s14 + $0x8] sm:$0xf] %vm824_vm2, %v689_v14  ;;  %v2607_v48 = vmov 0.0   ;;  %v2609_v49 = vmov 0.0   ;;  %v2611_v50 = vmov 0.0  }
 0x1af   : > { %v779_v23 = vsel %vm477_vm1, %v778_v18, %v771_v17  ;;  %v797_v27 = vrot.slane %v796_v22, 4  ;;  %v2613_v45 = vmov 0.0   ;;  %v2615_v47 = vmov 0.0  }
 0x1b0   : > { %828 = vst.msk [vmem:[%s823_s14 + $0xc] sm:$0xf] %vm824_vm2, %v693_v21  ;;  %v783_v25 = vperm.slane %v779_v23, %v2462_v24 }
 0x1b1   : > { %v798_v29 = vsel %vm477_vm1, %v797_v27, %v790_v26 }
 0x1b2   : > { %v784_v28 = vrot.slane %v783_v25, 4  ;;  %v802_v30 = vperm.slane %v798_v29, %v2462_v24  ;;  %v809_v31 = vshrl.u32 %v783_v25, 16 }
 0x1b4   : > { %v785_v32 = vsel %vm477_vm1, 0, %v784_v28  ;;  %v803_v33 = vrot.slane %v802_v30, 4  ;;  %v807_v36 = vpack.i.b16 %v802_v30, %v783_v25  ;;  %v810_v38 = vshrl.u32 %v802_v30, 16 }
 0x1b5   : > { %v817_v42 = vshrl.u32 %v785_v32, 16 }
 0x1b6   : > { %v804_v39 = vsel %vm477_vm1, 0, %v803_v33  ;;  %v811_v40 = vpack.i.b16 %v810_v38, %v809_v31  ;;  %831 = vst.msk [vmem:[%s830_s15] sm:$0xf] %vm824_vm2, %v807_v36 }
 0x1b7   : > { %v815_v11 = vpack.i.b16 %v804_v39, %v785_v32  ;;  %v818_v34 = vshrl.u32 %v804_v39, 16  ;;  %1584 = sbr.rel (%p1664_p0) target bundleno = 872 (0x368), region = 104 }
 0x1b8   : > { %832 = vst.msk [vmem:[%s830_s15 + $0x4] sm:$0xf] %vm824_vm2, %v811_v40 }
 0x1b9   : > { %v819_v24 = vpack.i.b16 %v818_v34, %v817_v42  ;;  %833 = vst.msk [vmem:[%s830_s15 + $0x8] sm:$0xf] %vm824_vm2, %v815_v11 }
 0x1bb   : > { %834 = vst.msk [vmem:[%s830_s15 + $0xc] sm:$0xf] %vm824_vm2, %v819_v24 }
 0x1bc   : > { %v2617_v51 = vmov 0.0   ;;  %v2619_v52 = vmov 0.0   ;;  %v2621_v53 = vmov 0.0   ;;  %v2623_v54 = vmov 0.0  }
 0x1bd   : > { %v2625_v55 = vmov 0.0   ;;  %v2627_v56 = vmov 0.0   ;;  %v2629_v57 = vmov 0.0   ;;  %v2631_v58 = vmov 0.0  }
 0x1be   : > { %v2633_v35 = vmov -inf   ;;  %v2635_v59 = vmov -inf   ;;  %v2637_v60 = vmov -inf   ;;  %v2639_v62 = vmov -inf  }
 0x1bf LB: >> { %s1732_s29 = sshll.u32 %s2259_s26, 4  ;;  %vm874_vm3 = vcmask 64512   ;;  %s1672_s19 = sshll.u32 %s2259_s26, 3  ;;  %vm1030_vm5 = vcmask 1043456   ;;  %s2259_s26 = sphi %s2641_s26, %s846_s26   ;;  %v2255_v62 = vphi %v2639_v62, %v3027_v62   ;;  %v2251_v60 = vphi %v2637_v60, %v3026_v60   ;;  %v2247_v59 = vphi %v2635_v59, %v3025_v59   ;;  %v2243_v35 = vphi %v2633_v35, %v3024_v35   ;;  %v2239_v58 = vphi %v2631_v58, %v3023_v58   ;;  %v2235_v57 = vphi %v2629_v57, %v3022_v57   ;;  %v2231_v56 = vphi %v2627_v56, %v3021_v56   ;;  %v2227_v55 = vphi %v2625_v55, %v3020_v55   ;;  %v2223_v54 = vphi %v2623_v54, %v3019_v54   ;;  %v2219_v53 = vphi %v2621_v53, %v3018_v53   ;;  %v2215_v52 = vphi %v2619_v52, %v3017_v52   ;;  %v2211_v51 = vphi %v2617_v51, %v3016_v51  }
 0x1c0   : >> { %s863_s22 = scalar_lea.vmem [#allocation2], %s1732_s29  ;;  %v952_v16 = vstv %s1672_s19  ;;  %s869_s23 = scalar_lea.vmem [#allocation3], %s1732_s29 }
 0x1c1   : >> { %v864_v63 = vld [vmem:[%s863_s22] sm:$0xf]  ;;  %v866_v1 = vld [vmem:[%s863_s22 + $0x8] sm:$0xf]  ;;  %v867_v4 = vld [vmem:[%s863_s22 + $0xc] sm:$0xf]  ;;  %v953_v17 = vadd.s32 %v952_v16, %v2555_v41 }
 0x1c2   : >> { %v879_v6 = vsel %vm874_vm3, %v864_v63, 0  ;;  %v917_v10 = vsel %vm874_vm3, %v866_v1, 0  ;;  %v936_v12 = vsel %vm874_vm3, %v867_v4, 0  ;;  %v865_v14 = vld [vmem:[%s863_s22 + $0x4] sm:$0xf]  ;;  %s846_s26 = sadd.s32 1, %s2259_s26  }
 0x1c3   : >> { %888 = vmatpush.bf16.xpose.msra.mxu0 %v879_v6  ;;  %926 = vmatpush.bf16.xpose.msra.mxu2 %v917_v10  ;;  %v898_v15 = vsel %vm874_vm3, %v865_v14, 0  ;;  %vm954_vm4 = vcmp.le.s32.totalorder %v953_v17, %v2552_v37  ;;  %v870_v38 = vld [vmem:[%s869_s23] sm:$0xf]  ;;  %v872_v40 = vld [vmem:[%s869_s23 + $0x8] sm:$0xf]  ;;  %p2753_p1 = scmp.ge.s32.totalorder %s846_s26, %s842_s12 }
 0x1c4   : >> { %945 = vmatpush.bf16.xpose.msra.mxu3 %v936_v12  ;;  %907 = vmatpush.bf16.xpose.msra.mxu1 %v898_v15  ;;  %v1032_v39 = vsel %vm1030_vm5, %v870_v38, 0  ;;  %v873_v11 = vld [vmem:[%s869_s23 + $0xc] sm:$0xf]  ;;  %v1070_v42 = vsel %vm1030_vm5, %v872_v40, 0  ;;  %v871_v24 = vld [vmem:[%s869_s23 + $0x4] sm:$0xf] }
 0x1c5   : >> { %v1089_v34 = vsel %vm1030_vm5, %v873_v11, 0  ;;  %v1051_v43 = vsel %vm1030_vm5, %v871_v24, 0 }
 0x1ca   : >> { %1668 = vmatmul.msk.bf16.vlgmr.msra.gmra.mxu0 %vm874_vm3, %v559_v5  ;;  %1670 = vmatmul.msk.bf16.vlgmr.msra.gmra.mxu2 %vm874_vm3, %v565_v9 }
 0x1cb   : >> { %1671 = vmatmul.msk.bf16.vlgmr.msra.gmra.mxu3 %vm874_vm3, %v2513_v13  ;;  %1669 = vmatmul.msk.bf16.vlgmr.msra.gmra.mxu1 %vm874_vm3, %v2507_v8 }
 0x1cc   : >> { %1041 = vmatpush.bf16.msrb.mxu0 %v1032_v39  ;;  %1079 = vmatpush.bf16.msrb.mxu2 %v1070_v42 }
 0x1cd   : >> { %1098 = vmatpush.bf16.msrb.mxu3 %v1089_v34  ;;  %1060 = vmatpush.bf16.msrb.mxu1 %v1051_v43 }
 0x247   : >> { %v890_v18 = vpop.f32.mrf.mxu0 }
 0x248   : >> { %v955_v19 = vsel %vm954_vm4, %v890_v18, -inf  ;;  %v909_v20 = vpop.f32.mrf.mxu1 }
 0x249   : >> { %v959_v21 = vsel %vm874_vm3, %v955_v19, -inf  ;;  %v956_v22 = vsel %vm954_vm4, %v909_v20, -inf }
 0x24a   : >> { %960 = vmax.xlane.f32.xlu1 %v959_v21  ;;  %v962_v28 = vsel %vm874_vm3, %v956_v22, -inf }
 0x24d   : >> { %v928_v23 = vpop.f32.mrf.mxu2 }
 0x24e   : >> { %v957_v25 = vsel %vm954_vm4, %v928_v23, -inf  ;;  %v947_v26 = vpop.f32.mrf.mxu3 }
 0x24f   : >> { %v965_v27 = vsel %vm874_vm3, %v957_v25, -inf  ;;  %v892_v29 = vpop.f32.mrf.mxu0  ;;  %v958_v31 = vsel %vm954_vm4, %v947_v26, -inf }
 0x250   : >> { %966 = vmax.xlane.f32.xlu0 %v965_v27  ;;  %v911_v30 = vpop.f32.mrf.mxu1  ;;  %v968_v33 = vsel %vm874_vm3, %v958_v31, -inf }
 0x252   : >> { %963 = vmax.xlane.f32.xlu1 %v962_v28 }
 0x255   : >> { %v930_v32 = vpop.f32.mrf.mxu2 }
 0x256   : >> { %v949_v36 = vpop.f32.mrf.mxu3 }
 0x258   : >> { %969 = vmax.xlane.f32.xlu0 %v968_v33 }
 0x2bd   : >> { %v961_v44 = vpop.xlane.xlu1 %960 }
 0x2be   : >> { %v2711_v46 = vmax.f32 %v2255_v62, %v961_v44  }
 0x2c0   : >> { %v975_v48 = vsub.f32 %v2255_v62, %v2711_v46  ;;  %v987_v49 = vsub.f32 %v955_v19, %v2711_v46 }
 0x2c2   : >> { %v991_v50 = vmul.f32 1.442695, %v987_v49  ;;  %v979_v30 = vmul.f32 1.442695, %v975_v48 }
 0x2c3   : >> { %v967_v45 = vpop.xlane.xlu0 %966 }
 0x2c4   : >> { %v2717_v47 = vmax.f32 %v2247_v59, %v967_v45   ;;  %1991 = vpow2.f32 %v991_v50 }
 0x2c5   : >> { %v964_v63 = vpop.xlane.xlu1 %963 }
 0x2c6   : >> { %v977_v1 = vsub.f32 %v2247_v59, %v2717_v47  ;;  %v989_v4 = vsub.f32 %v957_v25, %v2717_v47  ;;  %v2723_v6 = vmax.f32 %v2251_v60, %v964_v63  }
 0x2c8   : >> { %v995_v10 = vmul.f32 1.442695, %v989_v4  ;;  %v976_v62 = vsub.f32 %v2251_v60, %v2723_v6  ;;  %v988_v12 = vsub.f32 %v956_v22, %v2723_v6 }
 0x2ca   : >> { %v993_v14 = vmul.f32 1.442695, %v988_v12  ;;  %v1992_v15 = vpop.eup %1991  ;;  %1993 = vpow2.f32 %v995_v10  ;;  %v981_v32 = vmul.f32 1.442695, %v976_v62 }
 0x2cb   : >> { %v970_v16 = vpop.xlane.xlu0 %969  ;;  %v1003_v59 = vsel %vm874_vm3, %v1992_v15, 0.0  ;;  %v1023_v18 = vpack.c.bf16 %v1992_v15, %v1992_v15 }
 0x2cc   : >> { %v2729_v17 = vmax.f32 %v2243_v35, %v970_v16   ;;  %1995 = vpow2.f32 %v993_v14  ;;  %1004 = vadd.xlane.f32.xlu2 %v1003_v59 }
 0x2cd   : >> { %1673 = vmatmul.msk.bf16.vlgmr.msrb.gmra.mxu0 %vm874_vm3, %v1023_v18 }
 0x2ce   : >> { %v978_v19 = vsub.f32 %v2243_v35, %v2729_v17  ;;  %v990_v20 = vsub.f32 %v958_v31, %v2729_v17  ;;  %v983_v31 = vmul.f32 1.442695, %v977_v1 }
 0x2d0   : >> { %v997_v60 = vmul.f32 1.442695, %v990_v20  ;;  %v1994_v21 = vpop.eup %1993  ;;  %v985_v38 = vmul.f32 1.442695, %v978_v19 }
 0x2d1   : >> { %v1009_v22 = vsel %vm874_vm3, %v1994_v21, 0.0  ;;  %v1025_v23 = vpack.c.bf16 %v1994_v21, %v1994_v21 }
 0x2d2   : >> { %v1996_v25 = vpop.eup %1995  ;;  %1997 = vpow2.f32 %v997_v60  ;;  %1010 = vadd.xlane.f32.xlu0 %v1009_v22 }
 0x2d3   : >> { %1675 = vmatmul.msk.bf16.vlgmr.msrb.gmra.mxu2 %vm874_vm3, %v1025_v23  ;;  %v1006_v26 = vsel %vm874_vm3, %v1996_v25, 0.0  ;;  %v1024_v27 = vpack.c.bf16 %v1996_v25, %v1996_v25  ;;  %1999 = vpow2.f32 %v979_v30 }
 0x2d4   : >> { %1007 = vadd.xlane.f32.xlu2 %v1006_v26  ;;  %2001 = vpow2.f32 %v983_v31 }
 0x2d5   : >> { %1674 = vmatmul.msk.bf16.vlgmr.msrb.gmra.mxu1 %vm874_vm3, %v1024_v27  ;;  %2003 = vpow2.f32 %v981_v32 }
 0x2d6   : >> { %2005 = vpow2.f32 %v985_v38 }
 0x2d8   : >> { %v1998_v35 = vpop.eup %1997 }
 0x2d9   : >> { %v1012_v28 = vsel %vm874_vm3, %v1998_v35, 0.0  ;;  %v1026_v29 = vpack.c.bf16 %v1998_v35, %v1998_v35  ;;  %v2000_v33 = vpop.eup %1999  ;;  %v3024_v35 = vmov %v2729_v17 }
 0x2da   : >> { %1013 = vadd.xlane.f32.xlu1 %v1012_v28  ;;  %v999_v36 = vmul.f32 %v2239_v58, %v2000_v33  ;;  %v2002_v11 = vpop.eup %2001  ;;  %v1019_v49 = vmul.f32 %v2223_v54, %v2000_v33 }
 0x2db   : >> { %1676 = vmatmul.msk.bf16.vlgmr.msrb.gmra.mxu3 %vm874_vm3, %v1026_v29  ;;  %v2004_v42 = vpop.eup %2003  ;;  %v1001_v34 = vmul.f32 %v2231_v56, %v2002_v11  ;;  %v1021_v56 = vmul.f32 %v2215_v52, %v2002_v11 }
 0x2dc   : >> { %v1000_v43 = vmul.f32 %v2235_v57, %v2004_v42  ;;  %v2006_v48 = vpop.eup %2005  ;;  %v1020_v62 = vmul.f32 %v2219_v53, %v2004_v42 }
 0x2dd   : >> { %v1002_v58 = vmul.f32 %v2227_v55, %v2006_v48  ;;  %v1022_v59 = vmul.f32 %v2211_v51, %v2006_v48 }
 0x33f   : >> { %v1005_v39 = vpop.xlane.xlu2 %1004 }
 0x340   : >> { %v1015_v40 = vadd.f32 %v1005_v39, %v999_v36  }
 0x345   : >> { %v1011_v24 = vpop.xlane.xlu0 %1010 }
 0x346   : >> { %v1017_v50 = vadd.f32 %v1011_v24, %v1001_v34  }
 0x347   : >> { %v1008_v44 = vpop.xlane.xlu2 %1007 }
 0x348   : >> { %v1016_v45 = vadd.f32 %v1008_v44, %v1000_v43  }
 0x34a   : >> { %v1043_v63 = vpop.f32.mrf.mxu0 }
 0x34b   : >> { %v1104_v1 = vadd.f32 %v1043_v63, %v1019_v49  }
 0x34d   : >> { %v1014_v4 = vpop.xlane.xlu1 %1013  ;;  %v3031_v48 = vmov (%p2753_p1), %v1104_v1 }
 0x34e   : >> { %v1018_v10 = vadd.f32 %v1014_v4, %v1002_v58   ;;  %v3023_v58 = vmov %v1015_v40 }
 0x350   : >> { %v3020_v55 = vmov %v1018_v10  ;;  %v3032_v49 = vmov (%p2753_p1), %v1018_v10 }
 0x352   : >> { %v1045_v12 = vpop.f32.mrf.mxu0  ;;  %v1062_v14 = vpop.f32.mrf.mxu1 }
 0x353   : >> { %v1105_v15 = vadd.f32 %v1062_v14, %v1020_v62   ;;  %v3027_v62 = vmov %v2711_v46 }
 0x355   : >> { %v3018_v53 = vmov %v1105_v15  ;;  %v3030_v46 = vmov (%p2753_p1), %v1105_v15 }
 0x356   : >> { %v1081_v16 = vpop.f32.mrf.mxu2 }
 0x357   : >> { %v1106_v18 = vadd.f32 %v1081_v16, %v1021_v56   ;;  %v3021_v56 = vmov %v1017_v50 }
 0x359   : >> { %v3017_v52 = vmov %v1106_v18  ;;  %v3029_v44 = vmov (%p2753_p1), %v1106_v18 }
 0x35a   : >> { %v1064_v57 = vpop.f32.mrf.mxu1 }
 0x35b   : >> { %v3022_v57 = vmov %v1016_v45 }
 0x35e   : >> { %v1083_v19 = vpop.f32.mrf.mxu2  ;;  %v1100_v54 = vpop.f32.mrf.mxu3 }
 0x35f   : >> { %v1107_v20 = vadd.f32 %v1100_v54, %v1022_v59   ;;  %v3019_v54 = vmov %v1104_v1  ;;  %v3025_v59 = vmov %v2717_v47  ;;  %v3033_v47 = vmov (%p2753_p1), %v1015_v40 }
 0x361   : >> { %v3016_v51 = vmov %v1107_v20  ;;  %v3028_v43 = vmov (%p2753_p1), %v1107_v20 }
 0x363   : > { %848 = sbr.rel (!%p2753_p1) target bundleno = 447 (0x1bf), region = 110 }
 0x366   : >> { %v1102_v60 = vpop.f32.mrf.mxu3 }
 0x367   : >> { %v3026_v60 = vmov %v2723_v6 }
 0x368 PF: > { %v1173_v61 = vld [vmem:[%s2990_s2 + $0x4] sm:$0xf]  ;;  %vm1180_vm6 = vcmask 1043456   ;;  %2013 = vrcp.f32 %v2287_v45  ;;  %v1174_v3 = vld [vmem:[%s2990_s2 + $0x8] sm:$0xf]  ;;  %v1133_v41 = vand.u32 2147483648, %v2287_v45  ;;  %vm1127_vm7 = vweird.f32 %v2287_v45  ;;  %v2291_v47 = vphi %v2615_v47, %v3033_v47   ;;  %v2287_v45 = vphi %v2613_v45, %v1016_v45   ;;  %v2283_v50 = vphi %v2611_v50, %v1017_v50   ;;  %v2279_v49 = vphi %v2609_v49, %v3032_v49   ;;  %v2275_v48 = vphi %v2607_v48, %v3031_v48   ;;  %v2271_v46 = vphi %v2605_v46, %v3030_v46   ;;  %v2267_v44 = vphi %v2603_v44, %v3029_v44   ;;  %v2263_v43 = vphi %v2601_v43, %v3028_v43  }
 0x369   : > { %v1201_v0 = vsel %vm1180_vm6, %v1173_v61, 0  ;;  %2015 = vrcp.f32 %v2291_v47  ;;  %v1220_v5 = vsel %vm1180_vm6, %v1174_v3, 0  ;;  %v1172_v7 = vld [vmem:[%s2990_s2] sm:$0xf]  ;;  %v1175_v9 = vld [vmem:[%s2990_s2 + $0xc] sm:$0xf]  ;;  %vm1113_vm8 = vweird.f32 %v2291_v47 }
 0x36a   : > { %1210 = vmatpush.bf16.msra.mxu2 %v1201_v0  ;;  %v1182_v8 = vsel %vm1180_vm6, %v1172_v7, 0  ;;  %2017 = vrcp.f32 %v2279_v49  ;;  %v1239_v13 = vsel %vm1180_vm6, %v1175_v9, 0  ;;  %v1131_v53 = vand.u32 2147483647, %v2287_v45  ;;  %v1734_v30 = vld [vmem:[%s2995_s7] sm:$0xff]  ;;  %s1724_s22 = sshll.u32 %s2195_s21, 1 }
 0x36b   : > { %1191 = vmatpush.bf16.msra.mxu0 %v1182_v8  ;;  %1248 = vmatpush.bf16.msra.mxu3 %v1239_v13  ;;  %2019 = vrcp.f32 %v2283_v50  ;;  %v1117_v21 = vand.u32 2147483647, %v2291_v47  ;;  %v1119_v22 = vand.u32 2147483648, %v2291_v47  ;;  %v1134_v23 = vor.u32 1.1754944e-38, %v1133_v41  ;;  %s1509_s19 = sadd.s32 %s2191_s20, %s1724_s22  ;;  %s1513_s26 = sshll.u32 %s401_s27, 4  ;;  %s1514_s26 = int_to_ptr.vmem [resolvable:$true] %s1513_s26 }
 0x36c   : > { %vm1155_vm11 = vweird.f32 %v2279_v49  ;;  %v1159_v28 = vand.u32 2147483647, %v2279_v49  ;;  %v1161_v29 = vand.u32 2147483648, %v2279_v49  ;;  %vm1132_vm14 = vcmp.eq.f32.partialorder %v1131_v53, 8.507059e+37  ;;  %s1725_s23 = sshll.u32 %s1509_s19, 3  ;;  %s1499_s22 = scalar_lea.sflag [#allocation5], %s399_s25 }
 0x36d   : > { %v1120_v39 = vor.u32 1.1754944e-38, %v1119_v22  ;;  %vm1118_vm1 = vcmp.eq.f32.partialorder %v1117_v21, 8.507059e+37  ;;  %vm1141_vm4 = vweird.f32 %v2283_v50  ;;  %vm1176_vm6 = vcmask 64512   ;;  %s1511_s15 = scalar_lea.hbm %s2999_s11, %s1725_s23  ;;  %s2049_s13 = scalar_lea.hbm %s2999_s11, 32 }
 0x36e   : > { %1229 = vmatpush.bf16.msrb.mxu2 %v1220_v5  ;;  %v2014_v37 = vpop.eup %2013  ;;  %vm1160_vm3 = vcmp.eq.f32.partialorder %v1159_v28, 8.507059e+37  ;;  %v1147_v12 = vand.u32 2147483648, %v2283_v50  ;;  %v1145_v16 = vand.u32 2147483647, %v2283_v50  ;;  %s1515_s29 = sshll.u32 %s1511_s15, 4  ;;  %s1516_s29 = int_to_ptr.hbm [resolvable:$true] %s1515_s29 }
 0x36f   : > { %v2016_v51 = vpop.eup %2015  ;;  %v1123_v52 = vmul.f32 %v2287_v45, %v2014_v37  ;;  %vm1128_vm9 = vweird.f32 %v2014_v37  ;;  %v1162_v45 = vor.u32 1.1754944e-38, %v1161_v29  ;;  %v1735_v29 = vld [vmem:[%s2995_s7 + $0x8] sm:$0xff]  ;;  %s2043_s19 = sshra.s32 %s1516_s29, 4  ;;  %s2044_s19 = int_to_ptr.hbm [resolvable:$true] %s2043_s19 }
 0x370   : > { %v1109_v55 = vmul.f32 %v2291_v47, %v2016_v51  ;;  %v2018_v6 = vpop.eup %2017  ;;  %vm1114_vm10 = vweird.f32 %v2016_v51  ;;  %vm2837_vm12 = vmor %vm1127_vm7, %vm1128_vm9  ;;  %1331 = vmatpush.bf16.msrb.mxu0 %v1735_v29  ;;  %s2045_s23 = scalar_lea.hbm %s2044_s19, 8  ;;  %p2050_p6 = scmp.lt.s32.totalorder %s2044_s19, %s2999_s11 }
 0x371   : > { %v1124_v17 = vsub.f32 1.0, %v1123_v52  ;;  %v1151_v26 = vmul.f32 %v2279_v49, %v2018_v6  ;;  %v2020_v27 = vpop.eup %2019  ;;  %vm1156_vm13 = vweird.f32 %v2018_v6  ;;  %vm2843_vm15 = vmor %vm1113_vm8, %vm1114_vm10  ;;  %vm1146_vm8 = vcmp.eq.f32.partialorder %v1145_v16, 8.507059e+37  ;;  %p2046_p2 = scmp.ne.s32.totalorder %s2044_s19, %s2045_s23  ;;  %p2051_p7 = scmp.lt.s32.totalorder %s2049_s13, %s2045_s23 }
 0x372   : > { %v1110_v25 = vsub.f32 1.0, %v1109_v55  ;;  %v1137_v33 = vmul.f32 %v2283_v50, %v2020_v27  ;;  %vm2850_vm2 = vmor %vm1155_vm11, %vm1156_vm13  ;;  %vm1142_vm5 = vweird.f32 %v2020_v27  ;;  %v2300_v55 = vmov 32.0  }
 0x373   : > { %v1125_v35 = vmul.f32 %v2014_v37, %v1124_v17  ;;  %v1152_v32 = vsub.f32 1.0, %v1151_v26  ;;  %vm1143_vm7 = vmor %vm1141_vm4, %vm1142_vm5  ;;  %2021 = vrcp.f32 %v2300_v55  ;;  %p2047_p4 = pnand %p2046_p2, %p2412_p3  ;;  %p2052_p9 = por %p2051_p7, %p2050_p6 }
 0x374   : > { %v1111_v31 = vmul.f32 %v2016_v51, %v1110_v25  ;;  %v1138_v42 = vsub.f32 1.0, %v1137_v33  ;;  %1332 = vmatpush.bf16.msrb.mxu0 %v1734_v30 }
 0x375   : > { %v1126_v36 = vadd.f32 %v2014_v37, %v1125_v35  ;;  %v1153_v11 = vmul.f32 %v2018_v6, %v1152_v32  ;;  %p2048_p5 = pneg %p2047_p4 }
 0x376   : > { %v1112_v40 = vadd.f32 %v2016_v51, %v1111_v31  ;;  %v1139_v58 = vmul.f32 %v2020_v27, %v1138_v42 }
 0x377   : > { %v1130_v34 = vsel %vm2837_vm12, %v2014_v37, %v1126_v36  ;;  %v1154_v1 = vadd.f32 %v2018_v6, %v1153_v11  ;;  %p2053_p10 = pnand %p2052_p9, %p2048_p5 }
 0x378   : > { %v1135_v47 = vsel %vm1132_vm14, %v1134_v23, %v1130_v34  ;;  %v1116_v63 = vsel %vm2843_vm15, %v2016_v51, %v1112_v40  ;;  %v1140_v56 = vadd.f32 %v2020_v27, %v1139_v58  ;;  %v2007_v34 = vld [vmem:[%s2991_s3] ss:$0 sm:$0xff] }
 0x379   : > { %v1165_v4 = vmul.f32 %v2271_v46, %v1135_v47  ;;  %v1121_v10 = vsel %vm1118_vm1, %v1120_v39, %v1116_v63  ;;  %v1158_v62 = vsel %vm2850_vm2, %v2018_v6, %v1154_v1  ;;  %v2022_v6 = vpop.eup %2021  ;;  %v2008_v47 = vld [vmem:[%s2992_s4] ss:$0 sm:$0xff] }
 0x37a   : > { %v1164_v49 = vmul.f32 %v2275_v48, %v1121_v10  ;;  %v1163_v15 = vsel %vm1160_vm3, %v1162_v45, %v1158_v62  ;;  %v1148_v48 = vor.u32 1.1754944e-38, %v1147_v12  ;;  %v1144_v59 = vsel %vm1143_vm7, %v2020_v27, %v1140_v56  ;;  %v1742_v10 = vld [vmem:[%s2997_s9 + $0x30] sm:$0xff]  ;;  %v1741_v62 = vld [vmem:[%s2997_s9 + $0x28] sm:$0xff] }
 0x37b   : > { %v1169_v14 = vpack.c.bf16 %v1165_v4, %v1165_v4  ;;  %v1167_v46 = vmul.f32 %v2263_v43, %v1163_v15  ;;  %v1266_v17 = vmul.f32 32.0, %v2022_v6  ;;  %vm1270_vm9 = vweird.f32 %v2022_v6  ;;  %v1743_v4 = vld [vmem:[%s2997_s9 + $0x38] sm:$0xff]  ;;  %v1740_v15 = vld [vmem:[%s2997_s9 + $0x20] sm:$0xff] }
 0x37c   : > { %v1168_v18 = vpack.c.bf16 %v1164_v49, %v1164_v49  ;;  %v1149_v19 = vsel %vm1146_vm8, %v1148_v48, %v1144_v59  ;;  %1451 = vmatpush.bf16.msra.mxu1 %v1743_v4  ;;  %v2009_v49 = vld [vmem:[%s2996_s8] ss:$0 sm:$0xff]  ;;  %v1738_v59 = vld [vmem:[%s2997_s9 + $0x10] sm:$0xff] }
 0x37d   : > { %1678 = vmatmul.msk.bf16.vlgmr.msra.gmra.mxu2 %vm1176_vm6, %v1169_v14  ;;  %v1171_v57 = vpack.c.bf16 %v1167_v46, %v1167_v46  ;;  %v1166_v54 = vmul.f32 %v2267_v44, %v1149_v19  ;;  %v1267_v21 = vsub.f32 1.0, %v1266_v17 }
 0x37e   : > { %1677 = vmatmul.msk.bf16.vlgmr.msra.gmra.mxu0 %vm1176_vm6, %v1168_v18  ;;  %v1739_v18 = vld [vmem:[%s2997_s9 + $0x18] sm:$0xff] }
 0x37f   : > { %1680 = vmatmul.msk.bf16.vlgmr.msra.gmra.mxu3 %vm1176_vm6, %v1171_v57  ;;  %v1170_v20 = vpack.c.bf16 %v1166_v54, %v1166_v54  ;;  %v1268_v22 = vmul.f32 %v2022_v6, %v1267_v21 }
 0x380   : > { %1452 = vmatpush.bf16.msra.mxu1 %v1742_v10 }
 0x381   : > { %v1269_v23 = vadd.f32 %v2022_v6, %v1268_v22 }
 0x383   : > { %v2875_v25 = vsel %vm1270_vm9, %v2022_v6, %v1269_v23 }
 0x384   : > { %1453 = vmatpush.bf16.msra.mxu1 %v1741_v62 }
 0x388   : > { %1454 = vmatpush.bf16.msra.mxu1 %v1740_v15 }
 0x38c   : > { %1455 = vmatpush.bf16.msra.mxu1 %v1739_v18 }
 0x38d   : > { %1679 = vmatmul.msk.bf16.vlgmr.msrb.gmra.mxu2 %vm1176_vm6, %v1170_v20 }
 0x390   : > { %1456 = vmatpush.bf16.msra.mxu1 %v1738_v59 }
 0x3fb   : > { %v1193_v50 = vpop.f32.mrf.mxu0 }
 0x3fc   : > { %v1254_v5 = vsel %vm429_vm0, %v1193_v50, 0.0 }
 0x400   : > { %v1212_v60 = vpop.f32.mrf.mxu2 }
 0x401   : > { %v1255_v7 = vsel %vm429_vm0, %v1212_v60, 0.0  ;;  %v1737_v60 = vld [vmem:[%s2997_s9 + $0x8] sm:$0xff] }
 0x402   : > { %v1250_v43 = vpop.f32.mrf.mxu3  ;;  %v1256_v8 = vadd.f32 %v1255_v7, %v1254_v5  ;;  %1457 = vmatpush.bf16.msra.mxu1 %v1737_v60 }
 0x403   : > { %v1195_v61 = vpop.f32.mrf.mxu0  ;;  %v1259_v13 = vsel %vm429_vm0, %v1250_v43, 0.0 }
 0x408   : > { %v1214_v0 = vpop.f32.mrf.mxu2 }
 0x40a   : > { %v1252_v3 = vpop.f32.mrf.mxu3 }
 0x40b   : > { %v1736_v3 = vld [vmem:[%s2997_s9] sm:$0xff] }
 0x40c   : > { %1458 = vmatpush.bf16.msra.mxu1 %v1736_v3 }
 0x410   : > { %v1231_v9 = vpop.f32.mrf.mxu2 }
 0x411   : > { %v1257_v37 = vsel %vm429_vm0, %v1231_v9, 0.0 }
 0x412   : > { %v1258_v44 = vadd.f32 %v1257_v37, %v1256_v8 }
 0x414   : > { %v1260_v41 = vadd.f32 %v1259_v13, %v1258_v44 }
 0x416   : > { %v1261_v51 = vadd.f32 %v1260_v41, %v2450_v2 }
 0x418   : > { %v1233_v52 = vpop.f32.mrf.mxu2  ;;  %v1262_v53 = vsel %vm429_vm0, %v1261_v51, 0.0 }
 0x419   : > { %1263 = vadd.xlane.f32.xlu0 %v1262_v53 }
 0x48c   : > { %v1264_v26 = vpop.xlane.xlu0 %1263 }
 0x48d   : > { %v1272_v27 = vmul.f32 %v2875_v25, %v1264_v26 }
 0x48f   : > { %v1273_v35 = vsub.f32 %v1261_v51, %v1272_v27 }
 0x491   : > { %v1274_v28 = vmul.f32 %v1273_v35, %v1273_v35 }
 0x493   : > { %v1275_v2 = vsel %vm429_vm0, %v1274_v28, 0.0 }
 0x494   : > { %1276 = vadd.xlane.f32.xlu0 %v1275_v2 }
 0x507   : > { %v1277_v31 = vpop.xlane.xlu0 %1276 }
 0x508   : > { %v1278_v32 = vmul.f32 %v1277_v31, %v2875_v25 }
 0x50a   : > { %v1279_v33 = vadd.f32 1e-05, %v1278_v32 }
 0x50c   : > { %2023 = vrsqrt.f32 %v1279_v33  ;;  %vm1286_vm11 = vweird.f32 %v1279_v33 }
 0x512   : > { %v2024_v36 = vpop.eup %2023 }
 0x513   : > { %v1281_v38 = vmul.f32 %v2024_v36, %v1279_v33  ;;  %vm1287_vm10 = vweird.f32 %v2024_v36 }
 0x514   : > { %vm1288_vm12 = vmor %vm1286_vm11, %vm1287_vm10 }
 0x515   : > { %v1282_v39 = vmul.f32 %v2024_v36, %v1281_v38 }
 0x517   : > { %v1283_v40 = vmul.f32 0.5, %v1282_v39  ;;  %v2010_v39 = vld [vmem:[%s2998_s10] ss:$0 sm:$0xff] }
 0x519   : > { %v1284_v11 = vsub.f32 1.5, %v1283_v40 }
 0x51b   : > { %v1285_v42 = vmul.f32 %v2024_v36, %v1284_v11 }
 0x51d   : > { %v1289_v24 = vsel %vm1288_vm12, %v2024_v36, %v1285_v42 }
 0x51e   : > { %v1290_v45 = vmul.f32 %v1289_v24, %v1273_v35 }
 0x520   : > { %v1295_v63 = vmul.f32 %v2007_v34, %v1290_v45 }
 0x522   : > { %v2892_v1 = vadd.f32 %v2008_v47, %v1295_v63 }
 0x524   : > { %v1301_v58 = vpack.c.bf16 %v2892_v1, %v2892_v1 }
 0x526   : > { %1689 = vmatmul.msk.bf16.vlgmr.msrb.gmra.mxu0 %vm429_vm0, %v1301_v58 }
 0x5a3   : > { %v1334_v12 = vpop.f32.mrf.mxu0 }
 0x5a4   : > { %v1335_v14 = vadd.f32 %v2009_v49, %v1334_v12 }
 0x5a6   : > { %v1339_v56 = vmul.f32 0.70710677, %v1335_v14  ;;  %v1338_v32 = vmul.f32 0.5, %v1335_v14 }
 0x5a8   : > { %v1340_v16 = vmul.f32 %v1339_v56, %v1339_v56 }
 0x5aa   : > { %v1341_v46 = vmin.f32 %v1340_v16, 16.0 }
 0x5ab   : > { %v1336_v57 = vpop.f32.mrf.mxu0 }
 0x5ac   : > { %v1342_v48 = vmul.f32 2.1237322e-06, %v1341_v46  ;;  %v1353_v19 = vmul.f32 3.8918573e-05, %v1341_v46  ;;  %v2012_v57 = vld [vmem:[%s2994_s6] ss:$0 sm:$0xff] }
 0x5ae   : > { %v1343_v54 = vadd.f32 0.00028619796, %v1342_v48  ;;  %v1354_v20 = vadd.f32 0.001143296, %v1353_v19 }
 0x5b0   : > { %v1344_v50 = vmul.f32 %v1343_v54, %v1341_v46  ;;  %v1355_v43 = vmul.f32 %v1354_v20, %v1341_v46 }
 0x5b2   : > { %v1356_v61 = vadd.f32 0.014752088, %v1355_v43  ;;  %v1345_v0 = vadd.f32 0.0036580483, %v1344_v50 }
 0x5b4   : > { %v1357_v5 = vmul.f32 %v1356_v61, %v1341_v46  ;;  %v1346_v8 = vmul.f32 %v1345_v0, %v1341_v46 }
 0x5b6   : > { %v1358_v7 = vadd.f32 0.112945676, %v1357_v5  ;;  %v1347_v37 = vadd.f32 0.05243302, %v1346_v8 }
 0x5b8   : > { %v1359_v9 = vmul.f32 %v1358_v7, %v1341_v46  ;;  %v1348_v51 = vmul.f32 %v1347_v37, %v1341_v46 }
 0x5ba   : > { %v1360_v13 = vadd.f32 0.4994258, %v1359_v9  ;;  %v1349_v52 = vadd.f32 0.18741608, %v1348_v51 }
 0x5bc   : > { %v1361_v44 = vmul.f32 %v1360_v13, %v1341_v46  ;;  %v1350_v55 = vmul.f32 %v1349_v52, %v1341_v46 }
 0x5be   : > { %v1362_v41 = vadd.f32 1.0, %v1361_v44  ;;  %v1351_v22 = vadd.f32 1.1283791, %v1350_v55 }
 0x5c0   : > { %2025 = vrcp.f32 %v1362_v41  ;;  %v1374_v21 = vand.u32 2147483648, %v1362_v41  ;;  %v1372_v26 = vand.u32 2147483647, %v1362_v41  ;;  %vm1368_vm14 = vweird.f32 %v1362_v41 }
 0x5c1   : > { %v1352_v28 = vmul.f32 %v1351_v22, %v1339_v56 }
 0x5c2   : > { %v1375_v35 = vor.u32 1.1754944e-38, %v1374_v21  ;;  %vm1373_vm1 = vcmp.eq.f32.partialorder %v1372_v26, 8.507059e+37 }
 0x5c6   : > { %v2026_v53 = vpop.eup %2025 }
 0x5c7   : > { %v1364_v6 = vmul.f32 %v2026_v53, %v1362_v41  ;;  %vm1369_vm13 = vweird.f32 %v2026_v53 }
 0x5c8   : > { %vm1370_vm15 = vmor %vm1368_vm14, %vm1369_vm13 }
 0x5c9   : > { %v1365_v17 = vsub.f32 1.0, %v1364_v6 }
 0x5cb   : > { %v1366_v23 = vmul.f32 %v2026_v53, %v1365_v17 }
 0x5cd   : > { %v1367_v27 = vadd.f32 %v2026_v53, %v1366_v23 }
 0x5cf   : > { %v1371_v2 = vsel %vm1370_vm15, %v2026_v53, %v1367_v27 }
 0x5d0   : > { %v1376_v29 = vsel %vm1373_vm1, %v1375_v35, %v1371_v2 }
 0x5d1   : > { %v1377_v30 = vmul.f32 %v1376_v29, %v1352_v28 }
 0x5d3   : > { %v1690_v31 = vclamps-f32 %v1377_v30, 1.0 }
 0x5d5   : > { %v1380_v33 = vadd.f32 1.0, %v1690_v31 }
 0x5d7   : > { %v1381_v36 = vmul.f32 %v1380_v33, %v1338_v32 }
 0x5d9   : > { %v1382_v38 = vpack.c.bf16 %v1381_v36, %v1381_v36 }
 0x5db   : > { %1459 = vmatmul.bf16.vlgmr.msra.gmra.mxu1 %v1382_v38 }
 0x658   : > { %v1460_v40 = vpop.f32.mrf.mxu1 }
 0x659   : > { %v1461_v11 = vadd.f32 %v2010_v39, %v1460_v40 }
 0x65b   : > { %v1464_v42 = vadd.f32 %v1461_v11, %v2892_v1 }
 0x65d   : > { %v1465_v34 = vsel %vm429_vm0, %v1464_v42, 0.0 }
 0x65e   : > { %1466 = vadd.xlane.f32.xlu1 %v1465_v34 }
 0x660   : > { %v1462_v24 = vpop.f32.mrf.mxu1 }
 0x6d1   : > { %v1467_v45 = vpop.xlane.xlu1 %1466 }
 0x6d2   : > { %v1468_v47 = vmul.f32 %v1467_v45, %v2875_v25 }
 0x6d4   : > { %v1469_v63 = vsub.f32 %v1464_v42, %v1468_v47 }
 0x6d6   : > { %v1470_v58 = vmul.f32 %v1469_v63, %v1469_v63 }
 0x6d8   : > { %v1471_v4 = vsel %vm429_vm0, %v1470_v58, 0.0 }
 0x6d9   : > { %1472 = vadd.xlane.f32.xlu1 %v1471_v4 }
 0x74c   : > { %v1473_v10 = vpop.xlane.xlu1 %1472 }
 0x74d   : > { %v1474_v49 = vmul.f32 %v1473_v10, %v2875_v25  ;;  %v2011_v25 = vld [vmem:[%s2993_s5] ss:$0 sm:$0xff] }
 0x74f   : > { %v1475_v62 = vadd.f32 1e-05, %v1474_v49 }
 0x751   : > { %2027 = vrsqrt.f32 %v1475_v62  ;;  %vm1482_vm3 = vweird.f32 %v1475_v62 }
 0x757   : > { %v2028_v1 = vpop.eup %2027 }
 0x758   : > { %v1477_v12 = vmul.f32 %v2028_v1, %v1475_v62  ;;  %vm1483_vm2 = vweird.f32 %v2028_v1 }
 0x759   : > { %vm1484_vm4 = vmor %vm1482_vm3, %vm1483_vm2 }
 0x75a   : > { %v1478_v14 = vmul.f32 %v2028_v1, %v1477_v12 }
 0x75c   : > { %v1479_v15 = vmul.f32 0.5, %v1478_v14 }
 0x75e   : > { %v1480_v56 = vsub.f32 1.5, %v1479_v15 }
 0x760   : > { %v1481_v16 = vmul.f32 %v2028_v1, %v1480_v56 }
 0x762   : > { %v1485_v18 = vsel %vm1484_vm4, %v2028_v1, %v1481_v16 }
 0x763   : > { %v1486_v46 = vmul.f32 %v1485_v18, %v1469_v63 }
 0x765   : > { %v1491_v48 = vmul.f32 %v2011_v25, %v1486_v46 }
 0x767   : > { %v1496_v59 = vadd.f32 %v2012_v57, %v1491_v48 }
 0x769   : > { %1497 = vst.msk [vmem:[%s401_s27] sm:$0xff] %vm429_vm0, %v1496_v59 }
 0x76a   : > { %2056 = shalt.err (!%p2053_p10)
}
 0x76b   : > { %1744 = dma.vmem_to_hbm [thread:$0]  (%p2412_p3), %s1514_s26, 128, %s1516_s29, %s1499_s22  }
 0x76c PF: > { %p1750_p11 = scmp.ge.s32.totalorder %s2207_s24, 2  ;;  %s1527_s25 = sand.u32 1, %s2179_s17  }
 0x76d   : > { %s1528_s27 = scalar_lea.sflag [#allocation5], %s1527_s25 }
 0x76e   : > { %p1747_p12 = pnand %p1750_p11, %p2421_p8 }
 0x770   : > { %p1748_p13 = pneg %p1747_p12 }
 0x772   : > { %2174 = dma.done.wait (%p1748_p13), %s1528_s27, 128  }
 0x773   : > { %2176 = vsyncadd (%p1748_p13), %s1528_s27, 4294967168  ;;  %s24_s24 = sadd.s32 1, %s2207_s24   ;;  %s3041_s20 = sld [smem:[#allocation7_spill]] }
 0x774   : > { %p21_p0 = scmp.ge.s32.totalorder %s24_s24, 6   ;;  %s3042_s19 = sld [smem:[#allocation13_spill]] }
 0x775   : > { %s3043_s30 = sld [smem:[#allocation8_spill]]  ;;  %s3047_s17 = smov %s2183_s18 }
 0x776   : > { %s3044_s21 = sld [smem:[#allocation9_spill]] }
 0x777   : > { %s3045_s22 = sld [smem:[#allocation10_spill]]  ;;  %23 = sbr.rel (!%p21_p0) target bundleno = 5 (0x5), region = 121 }
 0x778   : > { %s3046_s23 = sld [smem:[#allocation11_spill]] }
 0x779   : > { %s3048_s18 = smov %s3041_s20 }
 0x77b   : > { %s3049_s20 = smov %s3043_s30 }
 0x77c   :  { %1534 = vsyncpa [#allocation5], 1 }
 0x77d   :  { %1536 = vsyncpa [#allocation5 + $0x1], 1 }

</bundles_post_ra>
